<compile_context>
chip_gen: v7x
topology: tpu7x:2x2x1
jax: 0.10.0
libtpu: 0.0.40
codegen_flags: <defaults>
</compile_context>

<pallas_src>
import functools
from typing import NamedTuple

import numpy as np
import jax
import jax.numpy as jnp
from jax.experimental import pallas as pl
from jax.experimental.pallas import tpu as pltpu


class LayerCfg(NamedTuple):
    K: int
    stride: int
    pad: int
    reflect: bool      # ReflectionPad1d(pad) before the conv (layer 0 only)
    groups: int
    lrelu: bool


# ----------------------------- fused Pallas kernel ------------------------------

def _disc_fused_kernel(*refs, layer_cfgs, t_out, include_pool):
    """Full NLayerDiscriminator forward for one batch element (one grid step).

    refs layout:
      x_refl, [xe, xo, inv_cnt,]  (w0,b0)..(w4,b4),  o0..o4, [o_pool],  hpad, patches
    layer_cfgs: tuple of (K, pad, c_in, lrelu, reflect) per layer (static).
    """
    n_layers = len(layer_cfgs)
    i = 0
    x_refl_ref = refs[i]; i += 1
    if include_pool:
        xe_ref, xo_ref, invc_ref = refs[i], refs[i + 1], refs[i + 2]
        i += 3
    wb_refs = [(refs[i + 2 * l], refs[i + 2 * l + 1]) for l in range(n_layers)]
    i += 2 * n_layers
    o_refs = refs[i:i + n_layers]
    i += n_layers
    if include_pool:
        opool_ref = refs[i]; i += 1
    hpad_ref, patch_ref = refs[i], refs[i + 1]
    hpad_w = hpad_ref.shape[1]

    h = None  # previous activation value (c_in, t_out); layer 0 reads the padded input ref
    for li, (K, pad, c_in, lrelu, reflect) in enumerate(layer_cfgs):
        w_ref, b_ref = wb_refs[li]

        # --- im2col: patches[k*c_in + ci, t] = h_pad[ci, t + k] (stride 1) ---
        if reflect:
            # layer 0: input was reflect-padded on the host; gather windows directly.
            for k in range(K):
                patch_ref[k * c_in:(k + 1) * c_in, :] = x_refl_ref[0, :, k:k + t_out]
        else:
            # zero-pad the VMEM-resident previous activation into scratch, then gather.
            hpad_ref[0:c_in, :] = jnp.zeros((c_in, hpad_w), jnp.float32)
            hpad_ref[0:c_in, pad:pad + t_out] = h
            for k in range(K):
                patch_ref[k * c_in:(k + 1) * c_in, :] = hpad_ref[0:c_in, k:k + t_out]

        ck = K * c_in
        # --- one MXU matmul per layer (dense block-diagonal weights handle groups) ---
        acc = jnp.dot(w_ref[...], patch_ref[0:ck, :],
                      preferred_element_type=jnp.float32)
        acc = acc + b_ref[...]
        if lrelu:
            acc = jnp.where(acc > 0, acc, 0.2 * acc)       # LeakyReLU(0.2)
        o_refs[li][0, :, :] = acc.astype(o_refs[li].dtype)  # single dense store per layer
        h = acc

    if include_pool:
        # AvgPool1d(4, stride=2, padding=1, count_include_pad=False) on the raw input:
        #   out[t] = (xo[t-1] + xe[t] + xo[t] + xe[t+1]) * inv_cnt[t]
        # xe/xo are the host-deinterleaved even/odd samples; shifts done via scratch rows.
        tp = xe_ref.shape[-1]
        xe = xe_ref[0]
        xo = xo_ref[0]
        hpad_ref[0:2, :] = jnp.zeros((2, hpad_w), jnp.float32)
        hpad_ref[0:1, 1:1 + tp] = xo          # row0[t] = xo[t-1], row0[0] = 0
        hpad_ref[1:2, 0:tp] = xe              # row1[t] = xe[t]
        xo_right = hpad_ref[0:1, 0:tp]
        xe_left = hpad_ref[1:2, 1:1 + tp]     # xe[t+1], last entry = 0
        pooled = (xo_right + xe + xo + xe_left) * invc_ref[...]
        opool_ref[0, :, :] = pooled.astype(opool_ref.dtype)


# ------------------------------ host-side wrapper --------------------------------

def _wn_weight(v, g):
    # weight_norm: w = g * v / ||v|| (norm over (in/groups, K) per output channel)
    norm = jnp.sqrt(jnp.sum(v * v, axis=(1, 2), keepdims=True))
    return g.reshape(-1, 1, 1) * v / norm


def _pack_layer(cfg, p):
    """weight_norm + pack a (possibly grouped) conv weight into a dense block-diagonal
    (C_out, K*C_in) matrix whose column order matches the im2col row order (k-major)."""
    w = _wn_weight(p["v"], p["g"])               # (C_out, C_in/groups, K)
    c_out, cin_g, K = w.shape
    c_in = cin_g * cfg.groups
    cout_g = c_out // cfg.groups
    wd = jnp.zeros((c_out, K, c_in), jnp.float32)
    for g in range(cfg.groups):
        blk = jnp.transpose(w[g * cout_g:(g + 1) * cout_g], (0, 2, 1))   # (cout_g, K, cin_g)
        wd = wd.at[g * cout_g:(g + 1) * cout_g, :, g * cin_g:(g + 1) * cin_g].set(blk)
    return wd.reshape(c_out, K * c_in), p["b"].reshape(c_out, 1), c_in, c_out


def _nlayer_fused_call(cfgs, packed, x, include_pool):
    """One fused pallas_call for a whole NLayerDiscriminator. packed[i]=(wd,b2,c_in,c_out)."""
    B, C, T = x.shape
    assert C == 1 and cfgs[0].reflect and packed[0][2] == 1
    assert all(not c.reflect for c in cfgs[1:])
    # TODO(synk): strided convs (downsampling_factor > 1) are not implemented in the fused kernel.
    assert all(c.stride == 1 for c in cfgs)

    pad0 = cfgs[0].pad
    x_refl = jnp.pad(x, ((0, 0), (0, 0), (pad0, pad0)), mode="reflect")

    inputs = [x_refl]
    in_specs = [pl.BlockSpec((1, 1, T + 2 * pad0), lambda b: (b, 0, 0))]
    tp = None
    if include_pool:
        assert T % 2 == 0   # TODO(synk): odd-length pooling not supported in the fused kernel
        tp = (T - 2) // 2 + 1
        xe = x[:, :, 0::2]            # even samples (host-side deinterleave, trivial XLA slice)
        xo = x[:, :, 1::2]            # odd samples
        cnt = np.array([sum(1 for j in range(2 * t, 2 * t + 4) if 1 <= j <= T)
                        for t in range(tp)], np.float32)     # count_include_pad=False
        inv_cnt = jnp.asarray((1.0 / cnt).reshape(1, tp))
        inputs += [xe, xo, inv_cnt]
        in_specs += [pl.BlockSpec((1, 1, tp), lambda b: (b, 0, 0)),
                     pl.BlockSpec((1, 1, tp), lambda b: (b, 0, 0)),
                     pl.BlockSpec((1, tp), lambda b: (0, 0))]
    for wd, b2, _, _ in packed:
        inputs += [wd, b2]
        # constant index_map -> the tiny weights stay resident across batch grid steps
        in_specs += [pl.BlockSpec(wd.shape, lambda b: (0, 0)),
                     pl.BlockSpec(b2.shape, lambda b: (0, 0))]

    out_shape = [jax.ShapeDtypeStruct((B, c_out, T), jnp.float32) for _, _, _, c_out in packed]
    out_specs = [pl.BlockSpec((1, c_out, T), lambda b: (b, 0, 0)) for _, _, _, c_out in packed]
    if include_pool:
        out_shape.append(jax.ShapeDtypeStruct((B, 1, tp), jnp.float32))
        out_specs.append(pl.BlockSpec((1, 1, tp), lambda b: (b, 0, 0)))

    layer_cfgs = tuple((c.K, c.pad, c_in, c.lrelu, c.reflect)
                       for c, (_, _, c_in, _) in zip(cfgs, packed))
    pad_max = max([p for (_, p, _, _, r) in layer_cfgs if not r] + [1])
    c_pad_max = max([ci for (_, _, ci, _, r) in layer_cfgs if not r] + [2])
    ck_max = max(K * ci for (K, _, ci, _, _) in layer_cfgs)
    scratch_shapes = [
        pltpu.VMEM((c_pad_max, T + 2 * pad_max), jnp.float32),   # zero-padded activation / pool shifts
        pltpu.VMEM((ck_max, T), jnp.float32),                    # im2col patches
    ]

    kern = functools.partial(_disc_fused_kernel, layer_cfgs=layer_cfgs,
                             t_out=T, include_pool=include_pool)
    # TODO(synk): at realistic audio lengths (T ~ 8-16k) tile T on the lane axis with a
    # (K-1) halo instead of keeping full-T activations resident (v7x VMEM); trivial at T<=128.
    outs = pl.pallas_call(
        kern,
        out_shape=tuple(out_shape),
        grid=(B,),                     # batch kept as a "parallel" axis (shards across v7x TCs)
        in_specs=in_specs,
        out_specs=tuple(out_specs),
        scratch_shapes=scratch_shapes,
        compiler_params=pltpu.CompilerParams(dimension_semantics=("parallel",)),
    )(*inputs)
    feats = list(outs[:len(packed)])
    pooled = outs[len(packed)] if include_pool else None
    return feats, pooled


def _discriminator_forward(all_cfgs, all_params, x):
    results = []
    for i, (cfgs, dparams) in enumerate(zip(all_cfgs, all_params)):
        packed = [_pack_layer(c, p) for c, p in zip(cfgs, dparams)]
        include_pool = i < len(all_cfgs) - 1   # last scale's downsample is unused in torch too
        feats, pooled = _nlayer_fused_call(cfgs, packed, x, include_pool)
        results.append(feats)
        if include_pool:
            x = pooled
    return results


discriminator_forward = jax.jit(_discriminator_forward, static_argnums=0)


# ------------------------- parameters (weight_norm convs) -------------------------

def _init_conv(key, c_out, cin_g, K):
    k1, k2, k3 = jax.random.split(key, 3)
    return dict(
        v=0.02 * jax.random.normal(k1, (c_out, cin_g, K), jnp.float32),
        g=0.5 + jax.random.uniform(k2, (c_out,), jnp.float32),
        b=0.02 * jax.random.normal(k3, (c_out,), jnp.float32),
    )


def build_nlayer(key, ndf, n_layers, downsampling_factor):
    cfgs, params = [], []
    keys = jax.random.split(key, n_layers + 3)
    # layer_0: ReflectionPad1d(7) + Conv1d(1, ndf, 15) + LeakyReLU
    cfgs.append(LayerCfg(K=15, stride=1, pad=7, reflect=True, groups=1, lrelu=True))
    params.append(_init_conv(keys[0], ndf, 1, 15))
    nf = ndf
    stride = downsampling_factor
    nf_prev = nf
    for n in range(1, n_layers + 1):
        nf_prev = nf
        nf = min(nf * stride, 1024)
        groups = nf_prev // 4
        K = stride * 10 + 1
        cfgs.append(LayerCfg(K=K, stride=stride, pad=stride * 5, reflect=False,
                             groups=groups, lrelu=True))
        params.append(_init_conv(keys[n], nf, nf_prev // groups, K))
    nf_last = min(nf * 2, 1024)
    # NB: input channels = nf_prev, exactly as in the PyTorch __init__ quirk
    cfgs.append(LayerCfg(K=5, stride=1, pad=2, reflect=False, groups=1, lrelu=True))
    params.append(_init_conv(keys[n_layers + 1], nf_last, nf_prev, 5))
    cfgs.append(LayerCfg(K=3, stride=1, pad=1, reflect=False, groups=1, lrelu=False))
    params.append(_init_conv(keys[n_layers + 2], 1, nf_last, 3))
    return tuple(cfgs), params


def build_discriminator(key, num_D, ndf, n_layers, downsampling_factor):
    keys = jax.random.split(key, num_D)
    all_cfgs, all_params = [], []
    for k in keys:
        cfgs, params = build_nlayer(k, ndf, n_layers, downsampling_factor)
        all_cfgs.append(cfgs)
        all_params.append(params)
    return tuple(all_cfgs), all_params


# ------------------------------ pure-JAX reference --------------------------------

def _conv_ref(x, w, b, cfg):
    mode = "reflect" if cfg.reflect else "constant"
    x_pad = jnp.pad(x, ((0, 0), (0, 0), (cfg.pad, cfg.pad)), mode=mode)
    y = jax.lax.conv_general_dilated(
        x_pad, w, window_strides=(cfg.stride,), padding="VALID",
        dimension_numbers=("NCH", "OIH", "NCH"),
        feature_group_count=cfg.groups, precision=jax.lax.Precision.HIGHEST)
    y = y + b.reshape(1, -1, 1)
    if cfg.lrelu:
        y = jnp.where(y > 0, y, 0.2 * y)
    return y


def _avgpool_ref(x):
    B, C, T = x.shape
    T_out = (T + 2 - 4) // 2 + 1
    x_pad = jnp.pad(x, ((0, 0), (0, 0), (1, 1)))
    cols = []
    for t in range(T_out):
        lo, hi = 2 * t - 1, 2 * t + 2
        cnt = min(hi, T - 1) - max(lo, 0) + 1
        cols.append(x_pad[:, :, 2 * t:2 * t + 4].sum(-1) / cnt)
    return jnp.stack(cols, axis=-1)


def discriminator_forward_ref(all_cfgs, all_params, x):
    results = []
    for i, (cfgs, dparams) in enumerate(zip(all_cfgs, all_params)):
        res, h = [], x
        for c, p in zip(cfgs, dparams):
            h = _conv_ref(h, _wn_weight(p["v"], p["g"]), p["b"], c)
            res.append(h)
        results.append(res)
        if i < len(all_cfgs) - 1:
            x = _avgpool_ref(x)
    return results


# ----------------------------------- main ------------------------------------

if __name__ == "__main__":
    num_D, ndf, n_layers, downsampling_factor = 2, 8, 2, 1
    B, T = 2, 128

    key = jax.random.PRNGKey(0)
    kx, kp = jax.random.split(key)
    x = jax.random.normal(kx, (B, 1, T), jnp.float32)
    all_cfgs, all_params = build_discriminator(kp, num_D, ndf, n_layers, downsampling_factor)

    results = discriminator_forward(all_cfgs, all_params, x)
    results = jax.block_until_ready(results)

    # sanity: structure (num_D discriminators, n_layers+3 feature maps each) + values
    assert len(results) == num_D and all(len(r) == n_layers + 3 for r in results)
    ref = discriminator_forward_ref(all_cfgs, all_params, x)
    for r_disc, f_disc in zip(results, ref):
        for a, b in zip(r_disc, f_disc):
            np.testing.assert_allclose(np.asarray(a), np.asarray(b), rtol=1e-3, atol=1e-3)

    print("KERNEL_OK")
</pallas_src>

<mosaic_0001>
module attributes {stable_mosaic.version = 11 : i64} {
  func.func @_disc_fused_kernel(%arg0: i32, %arg1: memref<1x1x78xf32, #tpu.memory_space<vmem>>, %arg2: memref<8x15xf32, #tpu.memory_space<vmem>>, %arg3: memref<8x1xf32, #tpu.memory_space<vmem>>, %arg4: memref<8x88xf32, #tpu.memory_space<vmem>>, %arg5: memref<8x1xf32, #tpu.memory_space<vmem>>, %arg6: memref<8x88xf32, #tpu.memory_space<vmem>>, %arg7: memref<8x1xf32, #tpu.memory_space<vmem>>, %arg8: memref<16x40xf32, #tpu.memory_space<vmem>>, %arg9: memref<16x1xf32, #tpu.memory_space<vmem>>, %arg10: memref<1x48xf32, #tpu.memory_space<vmem>>, %arg11: memref<1x1xf32, #tpu.memory_space<vmem>>, %arg12: memref<1x8x64xf32, #tpu.memory_space<vmem>>, %arg13: memref<1x8x64xf32, #tpu.memory_space<vmem>>, %arg14: memref<1x8x64xf32, #tpu.memory_space<vmem>>, %arg15: memref<1x16x64xf32, #tpu.memory_space<vmem>>, %arg16: memref<1x1x64xf32, #tpu.memory_space<vmem>>, %arg17: memref<16x74xf32, #tpu.memory_space<vmem>>, %arg18: memref<88x64xf32, #tpu.memory_space<vmem>>) attributes {dimension_semantics = [#tpu.dimension_semantics<parallel>], iteration_bounds = array<i64: 2>, scalar_prefetch = 0 : i64, scratch_operands = 2 : i64, tpu.core_type = #tpu.core_type<tc>, window_params = [{transform_indices = @transform_0, window_bounds = array<i64: 1, 1, 78>}, {pipeline_mode = #tpu.pipeline_mode<synchronous>, transform_indices = @transform_1, window_bounds = array<i64: 8, 15>}, {pipeline_mode = #tpu.pipeline_mode<synchronous>, transform_indices = @transform_2, window_bounds = array<i64: 8, 1>}, {pipeline_mode = #tpu.pipeline_mode<synchronous>, transform_indices = @transform_3, window_bounds = array<i64: 8, 88>}, {pipeline_mode = #tpu.pipeline_mode<synchronous>, transform_indices = @transform_4, window_bounds = array<i64: 8, 1>}, {pipeline_mode = #tpu.pipeline_mode<synchronous>, transform_indices = @transform_5, window_bounds = array<i64: 8, 88>}, {pipeline_mode = #tpu.pipeline_mode<synchronous>, transform_indices = @transform_6, window_bounds = array<i64: 8, 1>}, {pipeline_mode = #tpu.pipeline_mode<synchronous>, transform_indices = @transform_7, window_bounds = array<i64: 16, 40>}, {pipeline_mode = #tpu.pipeline_mode<synchronous>, transform_indices = @transform_8, window_bounds = array<i64: 16, 1>}, {pipeline_mode = #tpu.pipeline_mode<synchronous>, transform_indices = @transform_9, window_bounds = array<i64: 1, 48>}, {pipeline_mode = #tpu.pipeline_mode<synchronous>, transform_indices = @transform_10, window_bounds = array<i64: 1, 1>}, {transform_indices = @transform_11, window_bounds = array<i64: 1, 8, 64>}, {transform_indices = @transform_12, window_bounds = array<i64: 1, 8, 64>}, {transform_indices = @transform_13, window_bounds = array<i64: 1, 8, 64>}, {transform_indices = @transform_14, window_bounds = array<i64: 1, 16, 64>}, {transform_indices = @transform_15, window_bounds = array<i64: 1, 1, 64>}]} {
    %c0 = arith.constant 0 : index
    %c0_0 = arith.constant 0 : index
    %c0_1 = arith.constant 0 : index
    %0 = vector.load %arg1[%c0, %c0_0, %c0_1] : memref<1x1x78xf32, #tpu.memory_space<vmem>>, vector<1x1x64xf32>
    %1 = vector.shape_cast %0 : vector<1x1x64xf32> to vector<1x64xf32>
    %c0_2 = arith.constant 0 : index
    %c0_3 = arith.constant 0 : index
    %2 = vector.load %arg18[%c0_2, %c0_3] : memref<88x64xf32, #tpu.memory_space<vmem>>, vector<1x64xf32>
    tpu.vector_store %arg18[%c0_2, %c0_3], %1 {strides = array<i32>} : memref<88x64xf32, #tpu.memory_space<vmem>>, vector<1x64xf32>,
    %c0_4 = arith.constant 0 : index
    %c0_5 = arith.constant 0 : index
    %c1 = arith.constant 1 : index
    %3 = vector.load %arg1[%c0_4, %c0_5, %c1] : memref<1x1x78xf32, #tpu.memory_space<vmem>>, vector<1x1x64xf32>
    %4 = vector.shape_cast %3 : vector<1x1x64xf32> to vector<1x64xf32>
    %c1_6 = arith.constant 1 : index
    %c0_7 = arith.constant 0 : index
    %5 = vector.load %arg18[%c1_6, %c0_7] : memref<88x64xf32, #tpu.memory_space<vmem>>, vector<1x64xf32>
    tpu.vector_store %arg18[%c1_6, %c0_7], %4 {strides = array<i32>} : memref<88x64xf32, #tpu.memory_space<vmem>>, vector<1x64xf32>,
    %c0_8 = arith.constant 0 : index
    %c0_9 = arith.constant 0 : index
    %c2 = arith.constant 2 : index
    %6 = vector.load %arg1[%c0_8, %c0_9, %c2] : memref<1x1x78xf32, #tpu.memory_space<vmem>>, vector<1x1x64xf32>
    %7 = vector.shape_cast %6 : vector<1x1x64xf32> to vector<1x64xf32>
    %c2_10 = arith.constant 2 : index
    %c0_11 = arith.constant 0 : index
    %8 = vector.load %arg18[%c2_10, %c0_11] : memref<88x64xf32, #tpu.memory_space<vmem>>, vector<1x64xf32>
    tpu.vector_store %arg18[%c2_10, %c0_11], %7 {strides = array<i32>} : memref<88x64xf32, #tpu.memory_space<vmem>>, vector<1x64xf32>,
    %c0_12 = arith.constant 0 : index
    %c0_13 = arith.constant 0 : index
    %c3 = arith.constant 3 : index
    %9 = vector.load %arg1[%c0_12, %c0_13, %c3] : memref<1x1x78xf32, #tpu.memory_space<vmem>>, vector<1x1x64xf32>
    %10 = vector.shape_cast %9 : vector<1x1x64xf32> to vector<1x64xf32>
    %c3_14 = arith.constant 3 : index
    %c0_15 = arith.constant 0 : index
    %11 = vector.load %arg18[%c3_14, %c0_15] : memref<88x64xf32, #tpu.memory_space<vmem>>, vector<1x64xf32>
    tpu.vector_store %arg18[%c3_14, %c0_15], %10 {strides = array<i32>} : memref<88x64xf32, #tpu.memory_space<vmem>>, vector<1x64xf32>,
    %c0_16 = arith.constant 0 : index
    %c0_17 = arith.constant 0 : index
    %c4 = arith.constant 4 : index
    %12 = vector.load %arg1[%c0_16, %c0_17, %c4] : memref<1x1x78xf32, #tpu.memory_space<vmem>>, vector<1x1x64xf32>
    %13 = vector.shape_cast %12 : vector<1x1x64xf32> to vector<1x64xf32>
    %c4_18 = arith.constant 4 : index
    %c0_19 = arith.constant 0 : index
    %14 = vector.load %arg18[%c4_18, %c0_19] : memref<88x64xf32, #tpu.memory_space<vmem>>, vector<1x64xf32>
    tpu.vector_store %arg18[%c4_18, %c0_19], %13 {strides = array<i32>} : memref<88x64xf32, #tpu.memory_space<vmem>>, vector<1x64xf32>,
    %c0_20 = arith.constant 0 : index
    %c0_21 = arith.constant 0 : index
    %c5 = arith.constant 5 : index
    %15 = vector.load %arg1[%c0_20, %c0_21, %c5] : memref<1x1x78xf32, #tpu.memory_space<vmem>>, vector<1x1x64xf32>
    %16 = vector.shape_cast %15 : vector<1x1x64xf32> to vector<1x64xf32>
    %c5_22 = arith.constant 5 : index
    %c0_23 = arith.constant 0 : index
    %17 = vector.load %arg18[%c5_22, %c0_23] : memref<88x64xf32, #tpu.memory_space<vmem>>, vector<1x64xf32>
    tpu.vector_store %arg18[%c5_22, %c0_23], %16 {strides = array<i32>} : memref<88x64xf32, #tpu.memory_space<vmem>>, vector<1x64xf32>,
    %c0_24 = arith.constant 0 : index
    %c0_25 = arith.constant 0 : index
    %c6 = arith.constant 6 : index
    %18 = vector.load %arg1[%c0_24, %c0_25, %c6] : memref<1x1x78xf32, #tpu.memory_space<vmem>>, vector<1x1x64xf32>
    %19 = vector.shape_cast %18 : vector<1x1x64xf32> to vector<1x64xf32>
    %c6_26 = arith.constant 6 : index
    %c0_27 = arith.constant 0 : index
    %20 = vector.load %arg18[%c6_26, %c0_27] : memref<88x64xf32, #tpu.memory_space<vmem>>, vector<1x64xf32>
    tpu.vector_store %arg18[%c6_26, %c0_27], %19 {strides = array<i32>} : memref<88x64xf32, #tpu.memory_space<vmem>>, vector<1x64xf32>,
    %c0_28 = arith.constant 0 : index
    %c0_29 = arith.constant 0 : index
    %c7 = arith.constant 7 : index
    %21 = vector.load %arg1[%c0_28, %c0_29, %c7] : memref<1x1x78xf32, #tpu.memory_space<vmem>>, vector<1x1x64xf32>
    %22 = vector.shape_cast %21 : vector<1x1x64xf32> to vector<1x64xf32>
    %c7_30 = arith.constant 7 : index
    %c0_31 = arith.constant 0 : index
    %23 = vector.load %arg18[%c7_30, %c0_31] : memref<88x64xf32, #tpu.memory_space<vmem>>, vector<1x64xf32>
    tpu.vector_store %arg18[%c7_30, %c0_31], %22 {strides = array<i32>} : memref<88x64xf32, #tpu.memory_space<vmem>>, vector<1x64xf32>,
    %c0_32 = arith.constant 0 : index
    %c0_33 = arith.constant 0 : index
    %c8 = arith.constant 8 : index
    %24 = vector.load %arg1[%c0_32, %c0_33, %c8] : memref<1x1x78xf32, #tpu.memory_space<vmem>>, vector<1x1x64xf32>
    %25 = vector.shape_cast %24 : vector<1x1x64xf32> to vector<1x64xf32>
    %c8_34 = arith.constant 8 : index
    %c0_35 = arith.constant 0 : index
    %26 = vector.load %arg18[%c8_34, %c0_35] : memref<88x64xf32, #tpu.memory_space<vmem>>, vector<1x64xf32>
    tpu.vector_store %arg18[%c8_34, %c0_35], %25 {strides = array<i32>} : memref<88x64xf32, #tpu.memory_space<vmem>>, vector<1x64xf32>,
    %c0_36 = arith.constant 0 : index
    %c0_37 = arith.constant 0 : index
    %c9 = arith.constant 9 : index
    %27 = vector.load %arg1[%c0_36, %c0_37, %c9] : memref<1x1x78xf32, #tpu.memory_space<vmem>>, vector<1x1x64xf32>
    %28 = vector.shape_cast %27 : vector<1x1x64xf32> to vector<1x64xf32>
    %c9_38 = arith.constant 9 : index
    %c0_39 = arith.constant 0 : index
    %29 = vector.load %arg18[%c9_38, %c0_39] : memref<88x64xf32, #tpu.memory_space<vmem>>, vector<1x64xf32>
    tpu.vector_store %arg18[%c9_38, %c0_39], %28 {strides = array<i32>} : memref<88x64xf32, #tpu.memory_space<vmem>>, vector<1x64xf32>,
    %c0_40 = arith.constant 0 : index
    %c0_41 = arith.constant 0 : index
    %c10 = arith.constant 10 : index
    %30 = vector.load %arg1[%c0_40, %c0_41, %c10] : memref<1x1x78xf32, #tpu.memory_space<vmem>>, vector<1x1x64xf32>
    %31 = vector.shape_cast %30 : vector<1x1x64xf32> to vector<1x64xf32>
    %c10_42 = arith.constant 10 : index
    %c0_43 = arith.constant 0 : index
    %32 = vector.load %arg18[%c10_42, %c0_43] : memref<88x64xf32, #tpu.memory_space<vmem>>, vector<1x64xf32>
    tpu.vector_store %arg18[%c10_42, %c0_43], %31 {strides = array<i32>} : memref<88x64xf32, #tpu.memory_space<vmem>>, vector<1x64xf32>,
    %c0_44 = arith.constant 0 : index
    %c0_45 = arith.constant 0 : index
    %c11 = arith.constant 11 : index
    %33 = vector.load %arg1[%c0_44, %c0_45, %c11] : memref<1x1x78xf32, #tpu.memory_space<vmem>>, vector<1x1x64xf32>
    %34 = vector.shape_cast %33 : vector<1x1x64xf32> to vector<1x64xf32>
    %c11_46 = arith.constant 11 : index
    %c0_47 = arith.constant 0 : index
    %35 = vector.load %arg18[%c11_46, %c0_47] : memref<88x64xf32, #tpu.memory_space<vmem>>, vector<1x64xf32>
    tpu.vector_store %arg18[%c11_46, %c0_47], %34 {strides = array<i32>} : memref<88x64xf32, #tpu.memory_space<vmem>>, vector<1x64xf32>,
    %c0_48 = arith.constant 0 : index
    %c0_49 = arith.constant 0 : index
    %c12 = arith.constant 12 : index
    %36 = vector.load %arg1[%c0_48, %c0_49, %c12] : memref<1x1x78xf32, #tpu.memory_space<vmem>>, vector<1x1x64xf32>
    %37 = vector.shape_cast %36 : vector<1x1x64xf32> to vector<1x64xf32>
    %c12_50 = arith.constant 12 : index
    %c0_51 = arith.constant 0 : index
    %38 = vector.load %arg18[%c12_50, %c0_51] : memref<88x64xf32, #tpu.memory_space<vmem>>, vector<1x64xf32>
    tpu.vector_store %arg18[%c12_50, %c0_51], %37 {strides = array<i32>} : memref<88x64xf32, #tpu.memory_space<vmem>>, vector<1x64xf32>,
    %c0_52 = arith.constant 0 : index
    %c0_53 = arith.constant 0 : index
    %c13 = arith.constant 13 : index
    %39 = vector.load %arg1[%c0_52, %c0_53, %c13] : memref<1x1x78xf32, #tpu.memory_space<vmem>>, vector<1x1x64xf32>
    %40 = vector.shape_cast %39 : vector<1x1x64xf32> to vector<1x64xf32>
    %c13_54 = arith.constant 13 : index
    %c0_55 = arith.constant 0 : index
    %41 = vector.load %arg18[%c13_54, %c0_55] : memref<88x64xf32, #tpu.memory_space<vmem>>, vector<1x64xf32>
    tpu.vector_store %arg18[%c13_54, %c0_55], %40 {strides = array<i32>} : memref<88x64xf32, #tpu.memory_space<vmem>>, vector<1x64xf32>,
    %c0_56 = arith.constant 0 : index
    %c0_57 = arith.constant 0 : index
    %c14 = arith.constant 14 : index
    %42 = vector.load %arg1[%c0_56, %c0_57, %c14] : memref<1x1x78xf32, #tpu.memory_space<vmem>>, vector<1x1x64xf32>
    %43 = vector.shape_cast %42 : vector<1x1x64xf32> to vector<1x64xf32>
    %c14_58 = arith.constant 14 : index
    %c0_59 = arith.constant 0 : index
    %44 = vector.load %arg18[%c14_58, %c0_59] : memref<88x64xf32, #tpu.memory_space<vmem>>, vector<1x64xf32>
    tpu.vector_store %arg18[%c14_58, %c0_59], %43 {strides = array<i32>} : memref<88x64xf32, #tpu.memory_space<vmem>>, vector<1x64xf32>,
    %c0_60 = arith.constant 0 : index
    %c0_61 = arith.constant 0 : index
    %45 = vector.load %arg2[%c0_60, %c0_61] : memref<8x15xf32, #tpu.memory_space<vmem>>, vector<8x15xf32>
    %c0_62 = arith.constant 0 : index
    %c0_63 = arith.constant 0 : index
    %46 = vector.load %arg18[%c0_62, %c0_63] : memref<88x64xf32, #tpu.memory_space<vmem>>, vector<15x64xf32>
    %cst = arith.constant dense<0.000000e+00> : vector<8x64xf32>
    %47 = tpu.matmul %45, %46, %cst {dimension_numbers = #tpu.dot_dimension_numbers<[1], [0], [0], [1], [0, 0, 1, 1], [], []>} : vector<8x15xf32>, vector<15x64xf32>, vector<8x64xf32> -> vector<8x64xf32>
    %c0_64 = arith.constant 0 : index
    %c0_65 = arith.constant 0 : index
    %48 = vector.load %arg3[%c0_64, %c0_65] : memref<8x1xf32, #tpu.memory_space<vmem>>, vector<8x1xf32>
    %49 = vector.broadcast %48 : vector<8x1xf32> to vector<8x64xf32>
    %50 = arith.addf %47, %49 : vector<8x64xf32>
    %cst_66 = arith.constant 0.000000e+00 : f32
    %51 = vector.broadcast %cst_66 : f32 to vector<8x64xf32>
    %52 = arith.cmpf ogt, %50, %51 : vector<8x64xf32>
    %cst_67 = arith.constant 2.000000e-01 : f32
    %53 = vector.broadcast %cst_67 : f32 to vector<8x64xf32>
    %54 = arith.mulf %53, %50 : vector<8x64xf32>
    %55 = arith.select %52, %50, %54 : vector<8x64xi1>, vector<8x64xf32>
    %c0_68 = arith.constant 0 : index
    %c0_69 = arith.constant 0 : index
    %c0_70 = arith.constant 0 : index
    %56 = vector.load %arg12[%c0_68, %c0_69, %c0_70] : memref<1x8x64xf32, #tpu.memory_space<vmem>>, vector<1x8x64xf32>
    %57 = vector.shape_cast %56 : vector<1x8x64xf32> to vector<8x64xf32>
    %58 = vector.shape_cast %55 : vector<8x64xf32> to vector<1x8x64xf32>
    tpu.vector_store %arg12[%c0_68, %c0_69, %c0_70], %58 {strides = array<i32>} : memref<1x8x64xf32, #tpu.memory_space<vmem>>, vector<1x8x64xf32>,
    %cst_71 = arith.constant 0.000000e+00 : f32
    %59 = vector.broadcast %cst_71 : f32 to vector<8x74xf32>
    %c0_72 = arith.constant 0 : index
    %c0_73 = arith.constant 0 : index
    %60 = vector.load %arg17[%c0_72, %c0_73] : memref<16x74xf32, #tpu.memory_space<vmem>>, vector<8x74xf32>
    tpu.vector_store %arg17[%c0_72, %c0_73], %59 {strides = array<i32>} : memref<16x74xf32, #tpu.memory_space<vmem>>, vector<8x74xf32>,
    %c0_74 = arith.constant 0 : index
    %c5_75 = arith.constant 5 : index
    %61 = vector.load %arg17[%c0_74, %c5_75] : memref<16x74xf32, #tpu.memory_space<vmem>>, vector<8x64xf32>
    tpu.vector_store %arg17[%c0_74, %c5_75], %55 {strides = array<i32>} : memref<16x74xf32, #tpu.memory_space<vmem>>, vector<8x64xf32>,
    %c0_76 = arith.constant 0 : index
    %c0_77 = arith.constant 0 : index
    %62 = vector.load %arg17[%c0_76, %c0_77] : memref<16x74xf32, #tpu.memory_space<vmem>>, vector<8x64xf32>
    %c0_78 = arith.constant 0 : index
    %c0_79 = arith.constant 0 : index
    %63 = vector.load %arg18[%c0_78, %c0_79] : memref<88x64xf32, #tpu.memory_space<vmem>>, vector<8x64xf32>
    tpu.vector_store %arg18[%c0_78, %c0_79], %62 {strides = array<i32>} : memref<88x64xf32, #tpu.memory_space<vmem>>, vector<8x64xf32>,
    %c0_80 = arith.constant 0 : index
    %c1_81 = arith.constant 1 : index
    %64 = vector.load %arg17[%c0_80, %c1_81] : memref<16x74xf32, #tpu.memory_space<vmem>>, vector<8x64xf32>
    %c8_82 = arith.constant 8 : index
    %c0_83 = arith.constant 0 : index
    %65 = vector.load %arg18[%c8_82, %c0_83] : memref<88x64xf32, #tpu.memory_space<vmem>>, vector<8x64xf32>
    tpu.vector_store %arg18[%c8_82, %c0_83], %64 {strides = array<i32>} : memref<88x64xf32, #tpu.memory_space<vmem>>, vector<8x64xf32>,
    %c0_84 = arith.constant 0 : index
    %c2_85 = arith.constant 2 : index
    %66 = vector.load %arg17[%c0_84, %c2_85] : memref<16x74xf32, #tpu.memory_space<vmem>>, vector<8x64xf32>
    %c16 = arith.constant 16 : index
    %c0_86 = arith.constant 0 : index
    %67 = vector.load %arg18[%c16, %c0_86] : memref<88x64xf32, #tpu.memory_space<vmem>>, vector<8x64xf32>
    tpu.vector_store %arg18[%c16, %c0_86], %66 {strides = array<i32>} : memref<88x64xf32, #tpu.memory_space<vmem>>, vector<8x64xf32>,
    %c0_87 = arith.constant 0 : index
    %c3_88 = arith.constant 3 : index
    %68 = vector.load %arg17[%c0_87, %c3_88] : memref<16x74xf32, #tpu.memory_space<vmem>>, vector<8x64xf32>
    %c24 = arith.constant 24 : index
    %c0_89 = arith.constant 0 : index
    %69 = vector.load %arg18[%c24, %c0_89] : memref<88x64xf32, #tpu.memory_space<vmem>>, vector<8x64xf32>
    tpu.vector_store %arg18[%c24, %c0_89], %68 {strides = array<i32>} : memref<88x64xf32, #tpu.memory_space<vmem>>, vector<8x64xf32>,
    %c0_90 = arith.constant 0 : index
    %c4_91 = arith.constant 4 : index
    %70 = vector.load %arg17[%c0_90, %c4_91] : memref<16x74xf32, #tpu.memory_space<vmem>>, vector<8x64xf32>
    %c32 = arith.constant 32 : index
    %c0_92 = arith.constant 0 : index
    %71 = vector.load %arg18[%c32, %c0_92] : memref<88x64xf32, #tpu.memory_space<vmem>>, vector<8x64xf32>
    tpu.vector_store %arg18[%c32, %c0_92], %70 {strides = array<i32>} : memref<88x64xf32, #tpu.memory_space<vmem>>, vector<8x64xf32>,
    %c0_93 = arith.constant 0 : index
    %c5_94 = arith.constant 5 : index
    %72 = vector.load %arg17[%c0_93, %c5_94] : memref<16x74xf32, #tpu.memory_space<vmem>>, vector<8x64xf32>
    %c40 = arith.constant 40 : index
    %c0_95 = arith.constant 0 : index
    %73 = vector.load %arg18[%c40, %c0_95] : memref<88x64xf32, #tpu.memory_space<vmem>>, vector<8x64xf32>
    tpu.vector_store %arg18[%c40, %c0_95], %72 {strides = array<i32>} : memref<88x64xf32, #tpu.memory_space<vmem>>, vector<8x64xf32>,
    %c0_96 = arith.constant 0 : index
    %c6_97 = arith.constant 6 : index
    %74 = vector.load %arg17[%c0_96, %c6_97] : memref<16x74xf32, #tpu.memory_space<vmem>>, vector<8x64xf32>
    %c48 = arith.constant 48 : index
    %c0_98 = arith.constant 0 : index
    %75 = vector.load %arg18[%c48, %c0_98] : memref<88x64xf32, #tpu.memory_space<vmem>>, vector<8x64xf32>
    tpu.vector_store %arg18[%c48, %c0_98], %74 {strides = array<i32>} : memref<88x64xf32, #tpu.memory_space<vmem>>, vector<8x64xf32>,
    %c0_99 = arith.constant 0 : index
    %c7_100 = arith.constant 7 : index
    %76 = vector.load %arg17[%c0_99, %c7_100] : memref<16x74xf32, #tpu.memory_space<vmem>>, vector<8x64xf32>
    %c56 = arith.constant 56 : index
    %c0_101 = arith.constant 0 : index
    %77 = vector.load %arg18[%c56, %c0_101] : memref<88x64xf32, #tpu.memory_space<vmem>>, vector<8x64xf32>
    tpu.vector_store %arg18[%c56, %c0_101], %76 {strides = array<i32>} : memref<88x64xf32, #tpu.memory_space<vmem>>, vector<8x64xf32>,
    %c0_102 = arith.constant 0 : index
    %c8_103 = arith.constant 8 : index
    %78 = vector.load %arg17[%c0_102, %c8_103] : memref<16x74xf32, #tpu.memory_space<vmem>>, vector<8x64xf32>
    %c64 = arith.constant 64 : index
    %c0_104 = arith.constant 0 : index
    %79 = vector.load %arg18[%c64, %c0_104] : memref<88x64xf32, #tpu.memory_space<vmem>>, vector<8x64xf32>
    tpu.vector_store %arg18[%c64, %c0_104], %78 {strides = array<i32>} : memref<88x64xf32, #tpu.memory_space<vmem>>, vector<8x64xf32>,
    %c0_105 = arith.constant 0 : index
    %c9_106 = arith.constant 9 : index
    %80 = vector.load %arg17[%c0_105, %c9_106] : memref<16x74xf32, #tpu.memory_space<vmem>>, vector<8x64xf32>
    %c72 = arith.constant 72 : index
    %c0_107 = arith.constant 0 : index
    %81 = vector.load %arg18[%c72, %c0_107] : memref<88x64xf32, #tpu.memory_space<vmem>>, vector<8x64xf32>
    tpu.vector_store %arg18[%c72, %c0_107], %80 {strides = array<i32>} : memref<88x64xf32, #tpu.memory_space<vmem>>, vector<8x64xf32>,
    %c0_108 = arith.constant 0 : index
    %c10_109 = arith.constant 10 : index
    %82 = vector.load %arg17[%c0_108, %c10_109] : memref<16x74xf32, #tpu.memory_space<vmem>>, vector<8x64xf32>
    %c80 = arith.constant 80 : index
    %c0_110 = arith.constant 0 : index
    %83 = vector.load %arg18[%c80, %c0_110] : memref<88x64xf32, #tpu.memory_space<vmem>>, vector<8x64xf32>
    tpu.vector_store %arg18[%c80, %c0_110], %82 {strides = array<i32>} : memref<88x64xf32, #tpu.memory_space<vmem>>, vector<8x64xf32>,
    %c0_111 = arith.constant 0 : index
    %c0_112 = arith.constant 0 : index
    %84 = vector.load %arg4[%c0_111, %c0_112] : memref<8x88xf32, #tpu.memory_space<vmem>>, vector<8x88xf32>
    %c0_113 = arith.constant 0 : index
    %c0_114 = arith.constant 0 : index
    %85 = vector.load %arg18[%c0_113, %c0_114] : memref<88x64xf32, #tpu.memory_space<vmem>>, vector<88x64xf32>
    %cst_115 = arith.constant dense<0.000000e+00> : vector<8x64xf32>
    %86 = tpu.matmul %84, %85, %cst_115 {dimension_numbers = #tpu.dot_dimension_numbers<[1], [0], [0], [1], [0, 0, 1, 1], [], []>} : vector<8x88xf32>, vector<88x64xf32>, vector<8x64xf32> -> vector<8x64xf32>
    %c0_116 = arith.constant 0 : index
    %c0_117 = arith.constant 0 : index
    %87 = vector.load %arg5[%c0_116, %c0_117] : memref<8x1xf32, #tpu.memory_space<vmem>>, vector<8x1xf32>
    %88 = vector.broadcast %87 : vector<8x1xf32> to vector<8x64xf32>
    %89 = arith.addf %86, %88 : vector<8x64xf32>
    %cst_118 = arith.constant 0.000000e+00 : f32
    %90 = vector.broadcast %cst_118 : f32 to vector<8x64xf32>
    %91 = arith.cmpf ogt, %89, %90 : vector<8x64xf32>
    %cst_119 = arith.constant 2.000000e-01 : f32
    %92 = vector.broadcast %cst_119 : f32 to vector<8x64xf32>
    %93 = arith.mulf %92, %89 : vector<8x64xf32>
    %94 = arith.select %91, %89, %93 : vector<8x64xi1>, vector<8x64xf32>
    %c0_120 = arith.constant 0 : index
    %c0_121 = arith.constant 0 : index
    %c0_122 = arith.constant 0 : index
    %95 = vector.load %arg13[%c0_120, %c0_121, %c0_122] : memref<1x8x64xf32, #tpu.memory_space<vmem>>, vector<1x8x64xf32>
    %96 = vector.shape_cast %95 : vector<1x8x64xf32> to vector<8x64xf32>
    %97 = vector.shape_cast %94 : vector<8x64xf32> to vector<1x8x64xf32>
    tpu.vector_store %arg13[%c0_120, %c0_121, %c0_122], %97 {strides = array<i32>} : memref<1x8x64xf32, #tpu.memory_space<vmem>>, vector<1x8x64xf32>,
    %cst_123 = arith.constant 0.000000e+00 : f32
    %98 = vector.broadcast %cst_123 : f32 to vector<8x74xf32>
    %c0_124 = arith.constant 0 : index
    %c0_125 = arith.constant 0 : index
    %99 = vector.load %arg17[%c0_124, %c0_125] : memref<16x74xf32, #tpu.memory_space<vmem>>, vector<8x74xf32>
    tpu.vector_store %arg17[%c0_124, %c0_125], %98 {strides = array<i32>} : memref<16x74xf32, #tpu.memory_space<vmem>>, vector<8x74xf32>,
    %c0_126 = arith.constant 0 : index
    %c5_127 = arith.constant 5 : index
    %100 = vector.load %arg17[%c0_126, %c5_127] : memref<16x74xf32, #tpu.memory_space<vmem>>, vector<8x64xf32>
    tpu.vector_store %arg17[%c0_126, %c5_127], %94 {strides = array<i32>} : memref<16x74xf32, #tpu.memory_space<vmem>>, vector<8x64xf32>,
    %c0_128 = arith.constant 0 : index
    %c0_129 = arith.constant 0 : index
    %101 = vector.load %arg17[%c0_128, %c0_129] : memref<16x74xf32, #tpu.memory_space<vmem>>, vector<8x64xf32>
    %c0_130 = arith.constant 0 : index
    %c0_131 = arith.constant 0 : index
    %102 = vector.load %arg18[%c0_130, %c0_131] : memref<88x64xf32, #tpu.memory_space<vmem>>, vector<8x64xf32>
    tpu.vector_store %arg18[%c0_130, %c0_131], %101 {strides = array<i32>} : memref<88x64xf32, #tpu.memory_space<vmem>>, vector<8x64xf32>,
    %c0_132 = arith.constant 0 : index
    %c1_133 = arith.constant 1 : index
    %103 = vector.load %arg17[%c0_132, %c1_133] : memref<16x74xf32, #tpu.memory_space<vmem>>, vector<8x64xf32>
    %c8_134 = arith.constant 8 : index
    %c0_135 = arith.constant 0 : index
    %104 = vector.load %arg18[%c8_134, %c0_135] : memref<88x64xf32, #tpu.memory_space<vmem>>, vector<8x64xf32>
    tpu.vector_store %arg18[%c8_134, %c0_135], %103 {strides = array<i32>} : memref<88x64xf32, #tpu.memory_space<vmem>>, vector<8x64xf32>,
    %c0_136 = arith.constant 0 : index
    %c2_137 = arith.constant 2 : index
    %105 = vector.load %arg17[%c0_136, %c2_137] : memref<16x74xf32, #tpu.memory_space<vmem>>, vector<8x64xf32>
    %c16_138 = arith.constant 16 : index
    %c0_139 = arith.constant 0 : index
    %106 = vector.load %arg18[%c16_138, %c0_139] : memref<88x64xf32, #tpu.memory_space<vmem>>, vector<8x64xf32>
    tpu.vector_store %arg18[%c16_138, %c0_139], %105 {strides = array<i32>} : memref<88x64xf32, #tpu.memory_space<vmem>>, vector<8x64xf32>,
    %c0_140 = arith.constant 0 : index
    %c3_141 = arith.constant 3 : index
    %107 = vector.load %arg17[%c0_140, %c3_141] : memref<16x74xf32, #tpu.memory_space<vmem>>, vector<8x64xf32>
    %c24_142 = arith.constant 24 : index
    %c0_143 = arith.constant 0 : index
    %108 = vector.load %arg18[%c24_142, %c0_143] : memref<88x64xf32, #tpu.memory_space<vmem>>, vector<8x64xf32>
    tpu.vector_store %arg18[%c24_142, %c0_143], %107 {strides = array<i32>} : memref<88x64xf32, #tpu.memory_space<vmem>>, vector<8x64xf32>,
    %c0_144 = arith.constant 0 : index
    %c4_145 = arith.constant 4 : index
    %109 = vector.load %arg17[%c0_144, %c4_145] : memref<16x74xf32, #tpu.memory_space<vmem>>, vector<8x64xf32>
    %c32_146 = arith.constant 32 : index
    %c0_147 = arith.constant 0 : index
    %110 = vector.load %arg18[%c32_146, %c0_147] : memref<88x64xf32, #tpu.memory_space<vmem>>, vector<8x64xf32>
    tpu.vector_store %arg18[%c32_146, %c0_147], %109 {strides = array<i32>} : memref<88x64xf32, #tpu.memory_space<vmem>>, vector<8x64xf32>,
    %c0_148 = arith.constant 0 : index
    %c5_149 = arith.constant 5 : index
    %111 = vector.load %arg17[%c0_148, %c5_149] : memref<16x74xf32, #tpu.memory_space<vmem>>, vector<8x64xf32>
    %c40_150 = arith.constant 40 : index
    %c0_151 = arith.constant 0 : index
    %112 = vector.load %arg18[%c40_150, %c0_151] : memref<88x64xf32, #tpu.memory_space<vmem>>, vector<8x64xf32>
    tpu.vector_store %arg18[%c40_150, %c0_151], %111 {strides = array<i32>} : memref<88x64xf32, #tpu.memory_space<vmem>>, vector<8x64xf32>,
    %c0_152 = arith.constant 0 : index
    %c6_153 = arith.constant 6 : index
    %113 = vector.load %arg17[%c0_152, %c6_153] : memref<16x74xf32, #tpu.memory_space<vmem>>, vector<8x64xf32>
    %c48_154 = arith.constant 48 : index
    %c0_155 = arith.constant 0 : index
    %114 = vector.load %arg18[%c48_154, %c0_155] : memref<88x64xf32, #tpu.memory_space<vmem>>, vector<8x64xf32>
    tpu.vector_store %arg18[%c48_154, %c0_155], %113 {strides = array<i32>} : memref<88x64xf32, #tpu.memory_space<vmem>>, vector<8x64xf32>,
    %c0_156 = arith.constant 0 : index
    %c7_157 = arith.constant 7 : index
    %115 = vector.load %arg17[%c0_156, %c7_157] : memref<16x74xf32, #tpu.memory_space<vmem>>, vector<8x64xf32>
    %c56_158 = arith.constant 56 : index
    %c0_159 = arith.constant 0 : index
    %116 = vector.load %arg18[%c56_158, %c0_159] : memref<88x64xf32, #tpu.memory_space<vmem>>, vector<8x64xf32>
    tpu.vector_store %arg18[%c56_158, %c0_159], %115 {strides = array<i32>} : memref<88x64xf32, #tpu.memory_space<vmem>>, vector<8x64xf32>,
    %c0_160 = arith.constant 0 : index
    %c8_161 = arith.constant 8 : index
    %117 = vector.load %arg17[%c0_160, %c8_161] : memref<16x74xf32, #tpu.memory_space<vmem>>, vector<8x64xf32>
    %c64_162 = arith.constant 64 : index
    %c0_163 = arith.constant 0 : index
    %118 = vector.load %arg18[%c64_162, %c0_163] : memref<88x64xf32, #tpu.memory_space<vmem>>, vector<8x64xf32>
    tpu.vector_store %arg18[%c64_162, %c0_163], %117 {strides = array<i32>} : memref<88x64xf32, #tpu.memory_space<vmem>>, vector<8x64xf32>,
    %c0_164 = arith.constant 0 : index
    %c9_165 = arith.constant 9 : index
    %119 = vector.load %arg17[%c0_164, %c9_165] : memref<16x74xf32, #tpu.memory_space<vmem>>, vector<8x64xf32>
    %c72_166 = arith.constant 72 : index
    %c0_167 = arith.constant 0 : index
    %120 = vector.load %arg18[%c72_166, %c0_167] : memref<88x64xf32, #tpu.memory_space<vmem>>, vector<8x64xf32>
    tpu.vector_store %arg18[%c72_166, %c0_167], %119 {strides = array<i32>} : memref<88x64xf32, #tpu.memory_space<vmem>>, vector<8x64xf32>,
    %c0_168 = arith.constant 0 : index
    %c10_169 = arith.constant 10 : index
    %121 = vector.load %arg17[%c0_168, %c10_169] : memref<16x74xf32, #tpu.memory_space<vmem>>, vector<8x64xf32>
    %c80_170 = arith.constant 80 : index
    %c0_171 = arith.constant 0 : index
    %122 = vector.load %arg18[%c80_170, %c0_171] : memref<88x64xf32, #tpu.memory_space<vmem>>, vector<8x64xf32>
    tpu.vector_store %arg18[%c80_170, %c0_171], %121 {strides = array<i32>} : memref<88x64xf32, #tpu.memory_space<vmem>>, vector<8x64xf32>,
    %c0_172 = arith.constant 0 : index
    %c0_173 = arith.constant 0 : index
    %123 = vector.load %arg6[%c0_172, %c0_173] : memref<8x88xf32, #tpu.memory_space<vmem>>, vector<8x88xf32>
    %c0_174 = arith.constant 0 : index
    %c0_175 = arith.constant 0 : index
    %124 = vector.load %arg18[%c0_174, %c0_175] : memref<88x64xf32, #tpu.memory_space<vmem>>, vector<88x64xf32>
    %cst_176 = arith.constant dense<0.000000e+00> : vector<8x64xf32>
    %125 = tpu.matmul %123, %124, %cst_176 {dimension_numbers = #tpu.dot_dimension_numbers<[1], [0], [0], [1], [0, 0, 1, 1], [], []>} : vector<8x88xf32>, vector<88x64xf32>, vector<8x64xf32> -> vector<8x64xf32>
    %c0_177 = arith.constant 0 : index
    %c0_178 = arith.constant 0 : index
    %126 = vector.load %arg7[%c0_177, %c0_178] : memref<8x1xf32, #tpu.memory_space<vmem>>, vector<8x1xf32>
    %127 = vector.broadcast %126 : vector<8x1xf32> to vector<8x64xf32>
    %128 = arith.addf %125, %127 : vector<8x64xf32>
    %cst_179 = arith.constant 0.000000e+00 : f32
    %129 = vector.broadcast %cst_179 : f32 to vector<8x64xf32>
    %130 = arith.cmpf ogt, %128, %129 : vector<8x64xf32>
    %cst_180 = arith.constant 2.000000e-01 : f32
    %131 = vector.broadcast %cst_180 : f32 to vector<8x64xf32>
    %132 = arith.mulf %131, %128 : vector<8x64xf32>
    %133 = arith.select %130, %128, %132 : vector<8x64xi1>, vector<8x64xf32>
    %c0_181 = arith.constant 0 : index
    %c0_182 = arith.constant 0 : index
    %c0_183 = arith.constant 0 : index
    %134 = vector.load %arg14[%c0_181, %c0_182, %c0_183] : memref<1x8x64xf32, #tpu.memory_space<vmem>>, vector<1x8x64xf32>
    %135 = vector.shape_cast %134 : vector<1x8x64xf32> to vector<8x64xf32>
    %136 = vector.shape_cast %133 : vector<8x64xf32> to vector<1x8x64xf32>
    tpu.vector_store %arg14[%c0_181, %c0_182, %c0_183], %136 {strides = array<i32>} : memref<1x8x64xf32, #tpu.memory_space<vmem>>, vector<1x8x64xf32>,
    %cst_184 = arith.constant 0.000000e+00 : f32
    %137 = vector.broadcast %cst_184 : f32 to vector<8x74xf32>
    %c0_185 = arith.constant 0 : index
    %c0_186 = arith.constant 0 : index
    %138 = vector.load %arg17[%c0_185, %c0_186] : memref<16x74xf32, #tpu.memory_space<vmem>>, vector<8x74xf32>
    tpu.vector_store %arg17[%c0_185, %c0_186], %137 {strides = array<i32>} : memref<16x74xf32, #tpu.memory_space<vmem>>, vector<8x74xf32>,
    %c0_187 = arith.constant 0 : index
    %c2_188 = arith.constant 2 : index
    %139 = vector.load %arg17[%c0_187, %c2_188] : memref<16x74xf32, #tpu.memory_space<vmem>>, vector<8x64xf32>
    tpu.vector_store %arg17[%c0_187, %c2_188], %133 {strides = array<i32>} : memref<16x74xf32, #tpu.memory_space<vmem>>, vector<8x64xf32>,
    %c0_189 = arith.constant 0 : index
    %c0_190 = arith.constant 0 : index
    %140 = vector.load %arg17[%c0_189, %c0_190] : memref<16x74xf32, #tpu.memory_space<vmem>>, vector<8x64xf32>
    %c0_191 = arith.constant 0 : index
    %c0_192 = arith.constant 0 : index
    %141 = vector.load %arg18[%c0_191, %c0_192] : memref<88x64xf32, #tpu.memory_space<vmem>>, vector<8x64xf32>
    tpu.vector_store %arg18[%c0_191, %c0_192], %140 {strides = array<i32>} : memref<88x64xf32, #tpu.memory_space<vmem>>, vector<8x64xf32>,
    %c0_193 = arith.constant 0 : index
    %c1_194 = arith.constant 1 : index
    %142 = vector.load %arg17[%c0_193, %c1_194] : memref<16x74xf32, #tpu.memory_space<vmem>>, vector<8x64xf32>
    %c8_195 = arith.constant 8 : index
    %c0_196 = arith.constant 0 : index
    %143 = vector.load %arg18[%c8_195, %c0_196] : memref<88x64xf32, #tpu.memory_space<vmem>>, vector<8x64xf32>
    tpu.vector_store %arg18[%c8_195, %c0_196], %142 {strides = array<i32>} : memref<88x64xf32, #tpu.memory_space<vmem>>, vector<8x64xf32>,
    %c0_197 = arith.constant 0 : index
    %c2_198 = arith.constant 2 : index
    %144 = vector.load %arg17[%c0_197, %c2_198] : memref<16x74xf32, #tpu.memory_space<vmem>>, vector<8x64xf32>
    %c16_199 = arith.constant 16 : index
    %c0_200 = arith.constant 0 : index
    %145 = vector.load %arg18[%c16_199, %c0_200] : memref<88x64xf32, #tpu.memory_space<vmem>>, vector<8x64xf32>
    tpu.vector_store %arg18[%c16_199, %c0_200], %144 {strides = array<i32>} : memref<88x64xf32, #tpu.memory_space<vmem>>, vector<8x64xf32>,
    %c0_201 = arith.constant 0 : index
    %c3_202 = arith.constant 3 : index
    %146 = vector.load %arg17[%c0_201, %c3_202] : memref<16x74xf32, #tpu.memory_space<vmem>>, vector<8x64xf32>
    %c24_203 = arith.constant 24 : index
    %c0_204 = arith.constant 0 : index
    %147 = vector.load %arg18[%c24_203, %c0_204] : memref<88x64xf32, #tpu.memory_space<vmem>>, vector<8x64xf32>
    tpu.vector_store %arg18[%c24_203, %c0_204], %146 {strides = array<i32>} : memref<88x64xf32, #tpu.memory_space<vmem>>, vector<8x64xf32>,
    %c0_205 = arith.constant 0 : index
    %c4_206 = arith.constant 4 : index
    %148 = vector.load %arg17[%c0_205, %c4_206] : memref<16x74xf32, #tpu.memory_space<vmem>>, vector<8x64xf32>
    %c32_207 = arith.constant 32 : index
    %c0_208 = arith.constant 0 : index
    %149 = vector.load %arg18[%c32_207, %c0_208] : memref<88x64xf32, #tpu.memory_space<vmem>>, vector<8x64xf32>
    tpu.vector_store %arg18[%c32_207, %c0_208], %148 {strides = array<i32>} : memref<88x64xf32, #tpu.memory_space<vmem>>, vector<8x64xf32>,
    %c0_209 = arith.constant 0 : index
    %c0_210 = arith.constant 0 : index
    %150 = vector.load %arg8[%c0_209, %c0_210] : memref<16x40xf32, #tpu.memory_space<vmem>>, vector<16x40xf32>
    %c0_211 = arith.constant 0 : index
    %c0_212 = arith.constant 0 : index
    %151 = vector.load %arg18[%c0_211, %c0_212] : memref<88x64xf32, #tpu.memory_space<vmem>>, vector<40x64xf32>
    %cst_213 = arith.constant dense<0.000000e+00> : vector<16x64xf32>
    %152 = tpu.matmul %150, %151, %cst_213 {dimension_numbers = #tpu.dot_dimension_numbers<[1], [0], [0], [1], [0, 0, 1, 1], [], []>} : vector<16x40xf32>, vector<40x64xf32>, vector<16x64xf32> -> vector<16x64xf32>
    %c0_214 = arith.constant 0 : index
    %c0_215 = arith.constant 0 : index
    %153 = vector.load %arg9[%c0_214, %c0_215] : memref<16x1xf32, #tpu.memory_space<vmem>>, vector<16x1xf32>
    %154 = vector.broadcast %153 : vector<16x1xf32> to vector<16x64xf32>
    %155 = arith.addf %152, %154 : vector<16x64xf32>
    %cst_216 = arith.constant 0.000000e+00 : f32
    %156 = vector.broadcast %cst_216 : f32 to vector<16x64xf32>
    %157 = arith.cmpf ogt, %155, %156 : vector<16x64xf32>
    %cst_217 = arith.constant 2.000000e-01 : f32
    %158 = vector.broadcast %cst_217 : f32 to vector<16x64xf32>
    %159 = arith.mulf %158, %155 : vector<16x64xf32>
    %160 = arith.select %157, %155, %159 : vector<16x64xi1>, vector<16x64xf32>
    %c0_218 = arith.constant 0 : index
    %c0_219 = arith.constant 0 : index
    %c0_220 = arith.constant 0 : index
    %161 = vector.load %arg15[%c0_218, %c0_219, %c0_220] : memref<1x16x64xf32, #tpu.memory_space<vmem>>, vector<1x16x64xf32>
    %162 = vector.shape_cast %161 : vector<1x16x64xf32> to vector<16x64xf32>
    %163 = vector.shape_cast %160 : vector<16x64xf32> to vector<1x16x64xf32>
    tpu.vector_store %arg15[%c0_218, %c0_219, %c0_220], %163 {strides = array<i32>} : memref<1x16x64xf32, #tpu.memory_space<vmem>>, vector<1x16x64xf32>,
    %cst_221 = arith.constant 0.000000e+00 : f32
    %164 = vector.broadcast %cst_221 : f32 to vector<16x74xf32>
    %c0_222 = arith.constant 0 : index
    %c0_223 = arith.constant 0 : index
    %165 = vector.load %arg17[%c0_222, %c0_223] : memref<16x74xf32, #tpu.memory_space<vmem>>, vector<16x74xf32>
    tpu.vector_store %arg17[%c0_222, %c0_223], %164 {strides = array<i32>} : memref<16x74xf32, #tpu.memory_space<vmem>>, vector<16x74xf32>,
    %c0_224 = arith.constant 0 : index
    %c1_225 = arith.constant 1 : index
    %166 = vector.load %arg17[%c0_224, %c1_225] : memref<16x74xf32, #tpu.memory_space<vmem>>, vector<16x64xf32>
    tpu.vector_store %arg17[%c0_224, %c1_225], %160 {strides = array<i32>} : memref<16x74xf32, #tpu.memory_space<vmem>>, vector<16x64xf32>,
    %c0_226 = arith.constant 0 : index
    %c0_227 = arith.constant 0 : index
    %167 = vector.load %arg17[%c0_226, %c0_227] : memref<16x74xf32, #tpu.memory_space<vmem>>, vector<16x64xf32>
    %c0_228 = arith.constant 0 : index
    %c0_229 = arith.constant 0 : index
    %168 = vector.load %arg18[%c0_228, %c0_229] : memref<88x64xf32, #tpu.memory_space<vmem>>, vector<16x64xf32>
    tpu.vector_store %arg18[%c0_228, %c0_229], %167 {strides = array<i32>} : memref<88x64xf32, #tpu.memory_space<vmem>>, vector<16x64xf32>,
    %c0_230 = arith.constant 0 : index
    %c1_231 = arith.constant 1 : index
    %169 = vector.load %arg17[%c0_230, %c1_231] : memref<16x74xf32, #tpu.memory_space<vmem>>, vector<16x64xf32>
    %c16_232 = arith.constant 16 : index
    %c0_233 = arith.constant 0 : index
    %170 = vector.load %arg18[%c16_232, %c0_233] : memref<88x64xf32, #tpu.memory_space<vmem>>, vector<16x64xf32>
    tpu.vector_store %arg18[%c16_232, %c0_233], %169 {strides = array<i32>} : memref<88x64xf32, #tpu.memory_space<vmem>>, vector<16x64xf32>,
    %c0_234 = arith.constant 0 : index
    %c2_235 = arith.constant 2 : index
    %171 = vector.load %arg17[%c0_234, %c2_235] : memref<16x74xf32, #tpu.memory_space<vmem>>, vector<16x64xf32>
    %c32_236 = arith.constant 32 : index
    %c0_237 = arith.constant 0 : index
    %172 = vector.load %arg18[%c32_236, %c0_237] : memref<88x64xf32, #tpu.memory_space<vmem>>, vector<16x64xf32>
    tpu.vector_store %arg18[%c32_236, %c0_237], %171 {strides = array<i32>} : memref<88x64xf32, #tpu.memory_space<vmem>>, vector<16x64xf32>,
    %c0_238 = arith.constant 0 : index
    %c0_239 = arith.constant 0 : index
    %173 = vector.load %arg10[%c0_238, %c0_239] : memref<1x48xf32, #tpu.memory_space<vmem>>, vector<1x48xf32>
    %c0_240 = arith.constant 0 : index
    %c0_241 = arith.constant 0 : index
    %174 = vector.load %arg18[%c0_240, %c0_241] : memref<88x64xf32, #tpu.memory_space<vmem>>, vector<48x64xf32>
    %cst_242 = arith.constant dense<0.000000e+00> : vector<1x64xf32>
    %175 = tpu.matmul %173, %174, %cst_242 {dimension_numbers = #tpu.dot_dimension_numbers<[1], [0], [0], [1], [0, 0, 1, 1], [], []>} : vector<1x48xf32>, vector<48x64xf32>, vector<1x64xf32> -> vector<1x64xf32>
    %c0_243 = arith.constant 0 : index
    %c0_244 = arith.constant 0 : index
    %176 = vector.load %arg11[%c0_243, %c0_244] : memref<1x1xf32, #tpu.memory_space<vmem>>, vector<1x1xf32>
    %177 = vector.broadcast %176 : vector<1x1xf32> to vector<1x64xf32>
    %178 = arith.addf %175, %177 : vector<1x64xf32>
    %c0_245 = arith.constant 0 : index
    %c0_246 = arith.constant 0 : index
    %c0_247 = arith.constant 0 : index
    %179 = vector.load %arg16[%c0_245, %c0_246, %c0_247] : memref<1x1x64xf32, #tpu.memory_space<vmem>>, vector<1x1x64xf32>
    %180 = vector.shape_cast %179 : vector<1x1x64xf32> to vector<1x64xf32>
    %181 = vector.shape_cast %178 : vector<1x64xf32> to vector<1x1x64xf32>
    tpu.vector_store %arg16[%c0_245, %c0_246, %c0_247], %181 {strides = array<i32>} : memref<1x1x64xf32, #tpu.memory_space<vmem>>, vector<1x1x64xf32>,
    return
  }
  func.func @transform_0(%arg0: i32) -> (i32, i32, i32) {
    %c0_i32 = arith.constant 0 : i32
    %c0_i32_0 = arith.constant 0 : i32
    %c0_i32_1 = arith.constant 0 : i32
    return %arg0, %c0_i32, %c0_i32_0 : i32, i32, i32
  }
  func.func @transform_1(%arg0: i32) -> (i32, i32) {
    %c0_i32 = arith.constant 0 : i32
    %c0_i32_0 = arith.constant 0 : i32
    %c0_i32_1 = arith.constant 0 : i32
    return %c0_i32, %c0_i32_0 : i32, i32
  }
  func.func @transform_2(%arg0: i32) -> (i32, i32) {
    %c0_i32 = arith.constant 0 : i32
    %c0_i32_0 = arith.constant 0 : i32
    %c0_i32_1 = arith.constant 0 : i32
    return %c0_i32, %c0_i32_0 : i32, i32
  }
  func.func @transform_3(%arg0: i32) -> (i32, i32) {
    %c0_i32 = arith.constant 0 : i32
    %c0_i32_0 = arith.constant 0 : i32
    %c0_i32_1 = arith.constant 0 : i32
    return %c0_i32, %c0_i32_0 : i32, i32
  }
  func.func @transform_4(%arg0: i32) -> (i32, i32) {
    %c0_i32 = arith.constant 0 : i32
    %c0_i32_0 = arith.constant 0 : i32
    %c0_i32_1 = arith.constant 0 : i32
    return %c0_i32, %c0_i32_0 : i32, i32
  }
  func.func @transform_5(%arg0: i32) -> (i32, i32) {
    %c0_i32 = arith.constant 0 : i32
    %c0_i32_0 = arith.constant 0 : i32
    %c0_i32_1 = arith.constant 0 : i32
    return %c0_i32, %c0_i32_0 : i32, i32
  }
  func.func @transform_6(%arg0: i32) -> (i32, i32) {
    %c0_i32 = arith.constant 0 : i32
    %c0_i32_0 = arith.constant 0 : i32
    %c0_i32_1 = arith.constant 0 : i32
    return %c0_i32, %c0_i32_0 : i32, i32
  }
  func.func @transform_7(%arg0: i32) -> (i32, i32) {
    %c0_i32 = arith.constant 0 : i32
    %c0_i32_0 = arith.constant 0 : i32
    %c0_i32_1 = arith.constant 0 : i32
    return %c0_i32, %c0_i32_0 : i32, i32
  }
  func.func @transform_8(%arg0: i32) -> (i32, i32) {
    %c0_i32 = arith.constant 0 : i32
    %c0_i32_0 = arith.constant 0 : i32
    %c0_i32_1 = arith.constant 0 : i32
    return %c0_i32, %c0_i32_0 : i32, i32
  }
  func.func @transform_9(%arg0: i32) -> (i32, i32) {
    %c0_i32 = arith.constant 0 : i32
    %c0_i32_0 = arith.constant 0 : i32
    %c0_i32_1 = arith.constant 0 : i32
    return %c0_i32, %c0_i32_0 : i32, i32
  }
  func.func @transform_10(%arg0: i32) -> (i32, i32) {
    %c0_i32 = arith.constant 0 : i32
    %c0_i32_0 = arith.constant 0 : i32
    %c0_i32_1 = arith.constant 0 : i32
    return %c0_i32, %c0_i32_0 : i32, i32
  }
  func.func @transform_11(%arg0: i32) -> (i32, i32, i32) {
    %c0_i32 = arith.constant 0 : i32
    %c0_i32_0 = arith.constant 0 : i32
    %c0_i32_1 = arith.constant 0 : i32
    return %arg0, %c0_i32, %c0_i32_0 : i32, i32, i32
  }
  func.func @transform_12(%arg0: i32) -> (i32, i32, i32) {
    %c0_i32 = arith.constant 0 : i32
    %c0_i32_0 = arith.constant 0 : i32
    %c0_i32_1 = arith.constant 0 : i32
    return %arg0, %c0_i32, %c0_i32_0 : i32, i32, i32
  }
  func.func @transform_13(%arg0: i32) -> (i32, i32, i32) {
    %c0_i32 = arith.constant 0 : i32
    %c0_i32_0 = arith.constant 0 : i32
    %c0_i32_1 = arith.constant 0 : i32
    return %arg0, %c0_i32, %c0_i32_0 : i32, i32, i32
  }
  func.func @transform_14(%arg0: i32) -> (i32, i32, i32) {
    %c0_i32 = arith.constant 0 : i32
    %c0_i32_0 = arith.constant 0 : i32
    %c0_i32_1 = arith.constant 0 : i32
    return %arg0, %c0_i32, %c0_i32_0 : i32, i32, i32
  }
  func.func @transform_15(%arg0: i32) -> (i32, i32, i32) {
    %c0_i32 = arith.constant 0 : i32
    %c0_i32_0 = arith.constant 0 : i32
    %c0_i32_1 = arith.constant 0 : i32
    return %arg0, %c0_i32, %c0_i32_0 : i32, i32, i32
  }
}

module attributes {stable_mosaic.version = 11 : i64} {
  func.func @_disc_fused_kernel(%arg0: i32, %arg1: memref<1x1x142xf32, #tpu.memory_space<vmem>>, %arg2: memref<1x1x64xf32, #tpu.memory_space<vmem>>, %arg3: memref<1x1x64xf32, #tpu.memory_space<vmem>>, %arg4: memref<1x64xf32, #tpu.memory_space<vmem>>, %arg5: memref<8x15xf32, #tpu.memory_space<vmem>>, %arg6: memref<8x1xf32, #tpu.memory_space<vmem>>, %arg7: memref<8x88xf32, #tpu.memory_space<vmem>>, %arg8: memref<8x1xf32, #tpu.memory_space<vmem>>, %arg9: memref<8x88xf32, #tpu.memory_space<vmem>>, %arg10: memref<8x1xf32, #tpu.memory_space<vmem>>, %arg11: memref<16x40xf32, #tpu.memory_space<vmem>>, %arg12: memref<16x1xf32, #tpu.memory_space<vmem>>, %arg13: memref<1x48xf32, #tpu.memory_space<vmem>>, %arg14: memref<1x1xf32, #tpu.memory_space<vmem>>, %arg15: memref<1x8x128xf32, #tpu.memory_space<vmem>>, %arg16: memref<1x8x128xf32, #tpu.memory_space<vmem>>, %arg17: memref<1x8x128xf32, #tpu.memory_space<vmem>>, %arg18: memref<1x16x128xf32, #tpu.memory_space<vmem>>, %arg19: memref<1x1x128xf32, #tpu.memory_space<vmem>>, %arg20: memref<1x1x64xf32, #tpu.memory_space<vmem>>, %arg21: memref<16x138xf32, #tpu.memory_space<vmem>>, %arg22: memref<88x128xf32, #tpu.memory_space<vmem>>) attributes {dimension_semantics = [#tpu.dimension_semantics<parallel>], iteration_bounds = array<i64: 2>, scalar_prefetch = 0 : i64, scratch_operands = 2 : i64, tpu.core_type = #tpu.core_type<tc>, window_params = [{transform_indices = @transform_0, window_bounds = array<i64: 1, 1, 142>}, {transform_indices = @transform_1, window_bounds = array<i64: 1, 1, 64>}, {transform_indices = @transform_2, window_bounds = array<i64: 1, 1, 64>}, {pipeline_mode = #tpu.pipeline_mode<synchronous>, transform_indices = @transform_3, window_bounds = array<i64: 1, 64>}, {pipeline_mode = #tpu.pipeline_mode<synchronous>, transform_indices = @transform_4, window_bounds = array<i64: 8, 15>}, {pipeline_mode = #tpu.pipeline_mode<synchronous>, transform_indices = @transform_5, window_bounds = array<i64: 8, 1>}, {pipeline_mode = #tpu.pipeline_mode<synchronous>, transform_indices = @transform_6, window_bounds = array<i64: 8, 88>}, {pipeline_mode = #tpu.pipeline_mode<synchronous>, transform_indices = @transform_7, window_bounds = array<i64: 8, 1>}, {pipeline_mode = #tpu.pipeline_mode<synchronous>, transform_indices = @transform_8, window_bounds = array<i64: 8, 88>}, {pipeline_mode = #tpu.pipeline_mode<synchronous>, transform_indices = @transform_9, window_bounds = array<i64: 8, 1>}, {pipeline_mode = #tpu.pipeline_mode<synchronous>, transform_indices = @transform_10, window_bounds = array<i64: 16, 40>}, {pipeline_mode = #tpu.pipeline_mode<synchronous>, transform_indices = @transform_11, window_bounds = array<i64: 16, 1>}, {pipeline_mode = #tpu.pipeline_mode<synchronous>, transform_indices = @transform_12, window_bounds = array<i64: 1, 48>}, {pipeline_mode = #tpu.pipeline_mode<synchronous>, transform_indices = @transform_13, window_bounds = array<i64: 1, 1>}, {transform_indices = @transform_14, window_bounds = array<i64: 1, 8, 128>}, {transform_indices = @transform_15, window_bounds = array<i64: 1, 8, 128>}, {transform_indices = @transform_16, window_bounds = array<i64: 1, 8, 128>}, {transform_indices = @transform_17, window_bounds = array<i64: 1, 16, 128>}, {transform_indices = @transform_18, window_bounds = array<i64: 1, 1, 128>}, {transform_indices = @transform_19, window_bounds = array<i64: 1, 1, 64>}]} {
    %c0 = arith.constant 0 : index
    %c0_0 = arith.constant 0 : index
    %c0_1 = arith.constant 0 : index
    %0 = vector.load %arg1[%c0, %c0_0, %c0_1] : memref<1x1x142xf32, #tpu.memory_space<vmem>>, vector<1x1x128xf32>
    %1 = vector.shape_cast %0 : vector<1x1x128xf32> to vector<1x128xf32>
    %c0_2 = arith.constant 0 : index
    %c0_3 = arith.constant 0 : index
    %2 = vector.load %arg22[%c0_2, %c0_3] : memref<88x128xf32, #tpu.memory_space<vmem>>, vector<1x128xf32>
    tpu.vector_store %arg22[%c0_2, %c0_3], %1 {strides = array<i32>} : memref<88x128xf32, #tpu.memory_space<vmem>>, vector<1x128xf32>,
    %c0_4 = arith.constant 0 : index
    %c0_5 = arith.constant 0 : index
    %c1 = arith.constant 1 : index
    %3 = vector.load %arg1[%c0_4, %c0_5, %c1] : memref<1x1x142xf32, #tpu.memory_space<vmem>>, vector<1x1x128xf32>
    %4 = vector.shape_cast %3 : vector<1x1x128xf32> to vector<1x128xf32>
    %c1_6 = arith.constant 1 : index
    %c0_7 = arith.constant 0 : index
    %5 = vector.load %arg22[%c1_6, %c0_7] : memref<88x128xf32, #tpu.memory_space<vmem>>, vector<1x128xf32>
    tpu.vector_store %arg22[%c1_6, %c0_7], %4 {strides = array<i32>} : memref<88x128xf32, #tpu.memory_space<vmem>>, vector<1x128xf32>,
    %c0_8 = arith.constant 0 : index
    %c0_9 = arith.constant 0 : index
    %c2 = arith.constant 2 : index
    %6 = vector.load %arg1[%c0_8, %c0_9, %c2] : memref<1x1x142xf32, #tpu.memory_space<vmem>>, vector<1x1x128xf32>
    %7 = vector.shape_cast %6 : vector<1x1x128xf32> to vector<1x128xf32>
    %c2_10 = arith.constant 2 : index
    %c0_11 = arith.constant 0 : index
    %8 = vector.load %arg22[%c2_10, %c0_11] : memref<88x128xf32, #tpu.memory_space<vmem>>, vector<1x128xf32>
    tpu.vector_store %arg22[%c2_10, %c0_11], %7 {strides = array<i32>} : memref<88x128xf32, #tpu.memory_space<vmem>>, vector<1x128xf32>,
    %c0_12 = arith.constant 0 : index
    %c0_13 = arith.constant 0 : index
    %c3 = arith.constant 3 : index
    %9 = vector.load %arg1[%c0_12, %c0_13, %c3] : memref<1x1x142xf32, #tpu.memory_space<vmem>>, vector<1x1x128xf32>
    %10 = vector.shape_cast %9 : vector<1x1x128xf32> to vector<1x128xf32>
    %c3_14 = arith.constant 3 : index
    %c0_15 = arith.constant 0 : index
    %11 = vector.load %arg22[%c3_14, %c0_15] : memref<88x128xf32, #tpu.memory_space<vmem>>, vector<1x128xf32>
    tpu.vector_store %arg22[%c3_14, %c0_15], %10 {strides = array<i32>} : memref<88x128xf32, #tpu.memory_space<vmem>>, vector<1x128xf32>,
    %c0_16 = arith.constant 0 : index
    %c0_17 = arith.constant 0 : index
    %c4 = arith.constant 4 : index
    %12 = vector.load %arg1[%c0_16, %c0_17, %c4] : memref<1x1x142xf32, #tpu.memory_space<vmem>>, vector<1x1x128xf32>
    %13 = vector.shape_cast %12 : vector<1x1x128xf32> to vector<1x128xf32>
    %c4_18 = arith.constant 4 : index
    %c0_19 = arith.constant 0 : index
    %14 = vector.load %arg22[%c4_18, %c0_19] : memref<88x128xf32, #tpu.memory_space<vmem>>, vector<1x128xf32>
    tpu.vector_store %arg22[%c4_18, %c0_19], %13 {strides = array<i32>} : memref<88x128xf32, #tpu.memory_space<vmem>>, vector<1x128xf32>,
    %c0_20 = arith.constant 0 : index
    %c0_21 = arith.constant 0 : index
    %c5 = arith.constant 5 : index
    %15 = vector.load %arg1[%c0_20, %c0_21, %c5] : memref<1x1x142xf32, #tpu.memory_space<vmem>>, vector<1x1x128xf32>
    %16 = vector.shape_cast %15 : vector<1x1x128xf32> to vector<1x128xf32>
    %c5_22 = arith.constant 5 : index
    %c0_23 = arith.constant 0 : index
    %17 = vector.load %arg22[%c5_22, %c0_23] : memref<88x128xf32, #tpu.memory_space<vmem>>, vector<1x128xf32>
    tpu.vector_store %arg22[%c5_22, %c0_23], %16 {strides = array<i32>} : memref<88x128xf32, #tpu.memory_space<vmem>>, vector<1x128xf32>,
    %c0_24 = arith.constant 0 : index
    %c0_25 = arith.constant 0 : index
    %c6 = arith.constant 6 : index
    %18 = vector.load %arg1[%c0_24, %c0_25, %c6] : memref<1x1x142xf32, #tpu.memory_space<vmem>>, vector<1x1x128xf32>
    %19 = vector.shape_cast %18 : vector<1x1x128xf32> to vector<1x128xf32>
    %c6_26 = arith.constant 6 : index
    %c0_27 = arith.constant 0 : index
    %20 = vector.load %arg22[%c6_26, %c0_27] : memref<88x128xf32, #tpu.memory_space<vmem>>, vector<1x128xf32>
    tpu.vector_store %arg22[%c6_26, %c0_27], %19 {strides = array<i32>} : memref<88x128xf32, #tpu.memory_space<vmem>>, vector<1x128xf32>,
    %c0_28 = arith.constant 0 : index
    %c0_29 = arith.constant 0 : index
    %c7 = arith.constant 7 : index
    %21 = vector.load %arg1[%c0_28, %c0_29, %c7] : memref<1x1x142xf32, #tpu.memory_space<vmem>>, vector<1x1x128xf32>
    %22 = vector.shape_cast %21 : vector<1x1x128xf32> to vector<1x128xf32>
    %c7_30 = arith.constant 7 : index
    %c0_31 = arith.constant 0 : index
    %23 = vector.load %arg22[%c7_30, %c0_31] : memref<88x128xf32, #tpu.memory_space<vmem>>, vector<1x128xf32>
    tpu.vector_store %arg22[%c7_30, %c0_31], %22 {strides = array<i32>} : memref<88x128xf32, #tpu.memory_space<vmem>>, vector<1x128xf32>,
    %c0_32 = arith.constant 0 : index
    %c0_33 = arith.constant 0 : index
    %c8 = arith.constant 8 : index
    %24 = vector.load %arg1[%c0_32, %c0_33, %c8] : memref<1x1x142xf32, #tpu.memory_space<vmem>>, vector<1x1x128xf32>
    %25 = vector.shape_cast %24 : vector<1x1x128xf32> to vector<1x128xf32>
    %c8_34 = arith.constant 8 : index
    %c0_35 = arith.constant 0 : index
    %26 = vector.load %arg22[%c8_34, %c0_35] : memref<88x128xf32, #tpu.memory_space<vmem>>, vector<1x128xf32>
    tpu.vector_store %arg22[%c8_34, %c0_35], %25 {strides = array<i32>} : memref<88x128xf32, #tpu.memory_space<vmem>>, vector<1x128xf32>,
    %c0_36 = arith.constant 0 : index
    %c0_37 = arith.constant 0 : index
    %c9 = arith.constant 9 : index
    %27 = vector.load %arg1[%c0_36, %c0_37, %c9] : memref<1x1x142xf32, #tpu.memory_space<vmem>>, vector<1x1x128xf32>
    %28 = vector.shape_cast %27 : vector<1x1x128xf32> to vector<1x128xf32>
    %c9_38 = arith.constant 9 : index
    %c0_39 = arith.constant 0 : index
    %29 = vector.load %arg22[%c9_38, %c0_39] : memref<88x128xf32, #tpu.memory_space<vmem>>, vector<1x128xf32>
    tpu.vector_store %arg22[%c9_38, %c0_39], %28 {strides = array<i32>} : memref<88x128xf32, #tpu.memory_space<vmem>>, vector<1x128xf32>,
    %c0_40 = arith.constant 0 : index
    %c0_41 = arith.constant 0 : index
    %c10 = arith.constant 10 : index
    %30 = vector.load %arg1[%c0_40, %c0_41, %c10] : memref<1x1x142xf32, #tpu.memory_space<vmem>>, vector<1x1x128xf32>
    %31 = vector.shape_cast %30 : vector<1x1x128xf32> to vector<1x128xf32>
    %c10_42 = arith.constant 10 : index
    %c0_43 = arith.constant 0 : index
    %32 = vector.load %arg22[%c10_42, %c0_43] : memref<88x128xf32, #tpu.memory_space<vmem>>, vector<1x128xf32>
    tpu.vector_store %arg22[%c10_42, %c0_43], %31 {strides = array<i32>} : memref<88x128xf32, #tpu.memory_space<vmem>>, vector<1x128xf32>,
    %c0_44 = arith.constant 0 : index
    %c0_45 = arith.constant 0 : index
    %c11 = arith.constant 11 : index
    %33 = vector.load %arg1[%c0_44, %c0_45, %c11] : memref<1x1x142xf32, #tpu.memory_space<vmem>>, vector<1x1x128xf32>
    %34 = vector.shape_cast %33 : vector<1x1x128xf32> to vector<1x128xf32>
    %c11_46 = arith.constant 11 : index
    %c0_47 = arith.constant 0 : index
    %35 = vector.load %arg22[%c11_46, %c0_47] : memref<88x128xf32, #tpu.memory_space<vmem>>, vector<1x128xf32>
    tpu.vector_store %arg22[%c11_46, %c0_47], %34 {strides = array<i32>} : memref<88x128xf32, #tpu.memory_space<vmem>>, vector<1x128xf32>,
    %c0_48 = arith.constant 0 : index
    %c0_49 = arith.constant 0 : index
    %c12 = arith.constant 12 : index
    %36 = vector.load %arg1[%c0_48, %c0_49, %c12] : memref<1x1x142xf32, #tpu.memory_space<vmem>>, vector<1x1x128xf32>
    %37 = vector.shape_cast %36 : vector<1x1x128xf32> to vector<1x128xf32>
    %c12_50 = arith.constant 12 : index
    %c0_51 = arith.constant 0 : index
    %38 = vector.load %arg22[%c12_50, %c0_51] : memref<88x128xf32, #tpu.memory_space<vmem>>, vector<1x128xf32>
    tpu.vector_store %arg22[%c12_50, %c0_51], %37 {strides = array<i32>} : memref<88x128xf32, #tpu.memory_space<vmem>>, vector<1x128xf32>,
    %c0_52 = arith.constant 0 : index
    %c0_53 = arith.constant 0 : index
    %c13 = arith.constant 13 : index
    %39 = vector.load %arg1[%c0_52, %c0_53, %c13] : memref<1x1x142xf32, #tpu.memory_space<vmem>>, vector<1x1x128xf32>
    %40 = vector.shape_cast %39 : vector<1x1x128xf32> to vector<1x128xf32>
    %c13_54 = arith.constant 13 : index
    %c0_55 = arith.constant 0 : index
    %41 = vector.load %arg22[%c13_54, %c0_55] : memref<88x128xf32, #tpu.memory_space<vmem>>, vector<1x128xf32>
    tpu.vector_store %arg22[%c13_54, %c0_55], %40 {strides = array<i32>} : memref<88x128xf32, #tpu.memory_space<vmem>>, vector<1x128xf32>,
    %c0_56 = arith.constant 0 : index
    %c0_57 = arith.constant 0 : index
    %c14 = arith.constant 14 : index
    %42 = vector.load %arg1[%c0_56, %c0_57, %c14] : memref<1x1x142xf32, #tpu.memory_space<vmem>>, vector<1x1x128xf32>
    %43 = vector.shape_cast %42 : vector<1x1x128xf32> to vector<1x128xf32>
    %c14_58 = arith.constant 14 : index
    %c0_59 = arith.constant 0 : index
    %44 = vector.load %arg22[%c14_58, %c0_59] : memref<88x128xf32, #tpu.memory_space<vmem>>, vector<1x128xf32>
    tpu.vector_store %arg22[%c14_58, %c0_59], %43 {strides = array<i32>} : memref<88x128xf32, #tpu.memory_space<vmem>>, vector<1x128xf32>,
    %c0_60 = arith.constant 0 : index
    %c0_61 = arith.constant 0 : index
    %45 = vector.load %arg5[%c0_60, %c0_61] : memref<8x15xf32, #tpu.memory_space<vmem>>, vector<8x15xf32>
    %c0_62 = arith.constant 0 : index
    %c0_63 = arith.constant 0 : index
    %46 = vector.load %arg22[%c0_62, %c0_63] : memref<88x128xf32, #tpu.memory_space<vmem>>, vector<15x128xf32>
    %cst = arith.constant dense<0.000000e+00> : vector<8x128xf32>
    %47 = tpu.matmul %45, %46, %cst {dimension_numbers = #tpu.dot_dimension_numbers<[1], [0], [0], [1], [0, 0, 1, 1], [], []>} : vector<8x15xf32>, vector<15x128xf32>, vector<8x128xf32> -> vector<8x128xf32>
    %c0_64 = arith.constant 0 : index
    %c0_65 = arith.constant 0 : index
    %48 = vector.load %arg6[%c0_64, %c0_65] : memref<8x1xf32, #tpu.memory_space<vmem>>, vector<8x1xf32>
    %49 = vector.broadcast %48 : vector<8x1xf32> to vector<8x128xf32>
    %50 = arith.addf %47, %49 : vector<8x128xf32>
    %cst_66 = arith.constant 0.000000e+00 : f32
    %51 = vector.broadcast %cst_66 : f32 to vector<8x128xf32>
    %52 = arith.cmpf ogt, %50, %51 : vector<8x128xf32>
    %cst_67 = arith.constant 2.000000e-01 : f32
    %53 = vector.broadcast %cst_67 : f32 to vector<8x128xf32>
    %54 = arith.mulf %53, %50 : vector<8x128xf32>
    %55 = arith.select %52, %50, %54 : vector<8x128xi1>, vector<8x128xf32>
    %c0_68 = arith.constant 0 : index
    %c0_69 = arith.constant 0 : index
    %c0_70 = arith.constant 0 : index
    %56 = vector.load %arg15[%c0_68, %c0_69, %c0_70] : memref<1x8x128xf32, #tpu.memory_space<vmem>>, vector<1x8x128xf32>
    %57 = vector.shape_cast %56 : vector<1x8x128xf32> to vector<8x128xf32>
    %58 = vector.shape_cast %55 : vector<8x128xf32> to vector<1x8x128xf32>
    tpu.vector_store %arg15[%c0_68, %c0_69, %c0_70], %58 {strides = array<i32>} : memref<1x8x128xf32, #tpu.memory_space<vmem>>, vector<1x8x128xf32>,
    %cst_71 = arith.constant 0.000000e+00 : f32
    %59 = vector.broadcast %cst_71 : f32 to vector<8x138xf32>
    %c0_72 = arith.constant 0 : index
    %c0_73 = arith.constant 0 : index
    %60 = vector.load %arg21[%c0_72, %c0_73] : memref<16x138xf32, #tpu.memory_space<vmem>>, vector<8x138xf32>
    tpu.vector_store %arg21[%c0_72, %c0_73], %59 {strides = array<i32>} : memref<16x138xf32, #tpu.memory_space<vmem>>, vector<8x138xf32>,
    %c0_74 = arith.constant 0 : index
    %c5_75 = arith.constant 5 : index
    %61 = vector.load %arg21[%c0_74, %c5_75] : memref<16x138xf32, #tpu.memory_space<vmem>>, vector<8x128xf32>
    tpu.vector_store %arg21[%c0_74, %c5_75], %55 {strides = array<i32>} : memref<16x138xf32, #tpu.memory_space<vmem>>, vector<8x128xf32>,
    %c0_76 = arith.constant 0 : index
    %c0_77 = arith.constant 0 : index
    %62 = vector.load %arg21[%c0_76, %c0_77] : memref<16x138xf32, #tpu.memory_space<vmem>>, vector<8x128xf32>
    %c0_78 = arith.constant 0 : index
    %c0_79 = arith.constant 0 : index
    %63 = vector.load %arg22[%c0_78, %c0_79] : memref<88x128xf32, #tpu.memory_space<vmem>>, vector<8x128xf32>
    tpu.vector_store %arg22[%c0_78, %c0_79], %62 {strides = array<i32>} : memref<88x128xf32, #tpu.memory_space<vmem>>, vector<8x128xf32>,
    %c0_80 = arith.constant 0 : index
    %c1_81 = arith.constant 1 : index
    %64 = vector.load %arg21[%c0_80, %c1_81] : memref<16x138xf32, #tpu.memory_space<vmem>>, vector<8x128xf32>
    %c8_82 = arith.constant 8 : index
    %c0_83 = arith.constant 0 : index
    %65 = vector.load %arg22[%c8_82, %c0_83] : memref<88x128xf32, #tpu.memory_space<vmem>>, vector<8x128xf32>
    tpu.vector_store %arg22[%c8_82, %c0_83], %64 {strides = array<i32>} : memref<88x128xf32, #tpu.memory_space<vmem>>, vector<8x128xf32>,
    %c0_84 = arith.constant 0 : index
    %c2_85 = arith.constant 2 : index
    %66 = vector.load %arg21[%c0_84, %c2_85] : memref<16x138xf32, #tpu.memory_space<vmem>>, vector<8x128xf32>
    %c16 = arith.constant 16 : index
    %c0_86 = arith.constant 0 : index
    %67 = vector.load %arg22[%c16, %c0_86] : memref<88x128xf32, #tpu.memory_space<vmem>>, vector<8x128xf32>
    tpu.vector_store %arg22[%c16, %c0_86], %66 {strides = array<i32>} : memref<88x128xf32, #tpu.memory_space<vmem>>, vector<8x128xf32>,
    %c0_87 = arith.constant 0 : index
    %c3_88 = arith.constant 3 : index
    %68 = vector.load %arg21[%c0_87, %c3_88] : memref<16x138xf32, #tpu.memory_space<vmem>>, vector<8x128xf32>
    %c24 = arith.constant 24 : index
    %c0_89 = arith.constant 0 : index
    %69 = vector.load %arg22[%c24, %c0_89] : memref<88x128xf32, #tpu.memory_space<vmem>>, vector<8x128xf32>
    tpu.vector_store %arg22[%c24, %c0_89], %68 {strides = array<i32>} : memref<88x128xf32, #tpu.memory_space<vmem>>, vector<8x128xf32>,
    %c0_90 = arith.constant 0 : index
    %c4_91 = arith.constant 4 : index
    %70 = vector.load %arg21[%c0_90, %c4_91] : memref<16x138xf32, #tpu.memory_space<vmem>>, vector<8x128xf32>
    %c32 = arith.constant 32 : index
    %c0_92 = arith.constant 0 : index
    %71 = vector.load %arg22[%c32, %c0_92] : memref<88x128xf32, #tpu.memory_space<vmem>>, vector<8x128xf32>
    tpu.vector_store %arg22[%c32, %c0_92], %70 {strides = array<i32>} : memref<88x128xf32, #tpu.memory_space<vmem>>, vector<8x128xf32>,
    %c0_93 = arith.constant 0 : index
    %c5_94 = arith.constant 5 : index
    %72 = vector.load %arg21[%c0_93, %c5_94] : memref<16x138xf32, #tpu.memory_space<vmem>>, vector<8x128xf32>
    %c40 = arith.constant 40 : index
    %c0_95 = arith.constant 0 : index
    %73 = vector.load %arg22[%c40, %c0_95] : memref<88x128xf32, #tpu.memory_space<vmem>>, vector<8x128xf32>
    tpu.vector_store %arg22[%c40, %c0_95], %72 {strides = array<i32>} : memref<88x128xf32, #tpu.memory_space<vmem>>, vector<8x128xf32>,
    %c0_96 = arith.constant 0 : index
    %c6_97 = arith.constant 6 : index
    %74 = vector.load %arg21[%c0_96, %c6_97] : memref<16x138xf32, #tpu.memory_space<vmem>>, vector<8x128xf32>
    %c48 = arith.constant 48 : index
    %c0_98 = arith.constant 0 : index
    %75 = vector.load %arg22[%c48, %c0_98] : memref<88x128xf32, #tpu.memory_space<vmem>>, vector<8x128xf32>
    tpu.vector_store %arg22[%c48, %c0_98], %74 {strides = array<i32>} : memref<88x128xf32, #tpu.memory_space<vmem>>, vector<8x128xf32>,
    %c0_99 = arith.constant 0 : index
    %c7_100 = arith.constant 7 : index
    %76 = vector.load %arg21[%c0_99, %c7_100] : memref<16x138xf32, #tpu.memory_space<vmem>>, vector<8x128xf32>
    %c56 = arith.constant 56 : index
    %c0_101 = arith.constant 0 : index
    %77 = vector.load %arg22[%c56, %c0_101] : memref<88x128xf32, #tpu.memory_space<vmem>>, vector<8x128xf32>
    tpu.vector_store %arg22[%c56, %c0_101], %76 {strides = array<i32>} : memref<88x128xf32, #tpu.memory_space<vmem>>, vector<8x128xf32>,
    %c0_102 = arith.constant 0 : index
    %c8_103 = arith.constant 8 : index
    %78 = vector.load %arg21[%c0_102, %c8_103] : memref<16x138xf32, #tpu.memory_space<vmem>>, vector<8x128xf32>
    %c64 = arith.constant 64 : index
    %c0_104 = arith.constant 0 : index
    %79 = vector.load %arg22[%c64, %c0_104] : memref<88x128xf32, #tpu.memory_space<vmem>>, vector<8x128xf32>
    tpu.vector_store %arg22[%c64, %c0_104], %78 {strides = array<i32>} : memref<88x128xf32, #tpu.memory_space<vmem>>, vector<8x128xf32>,
    %c0_105 = arith.constant 0 : index
    %c9_106 = arith.constant 9 : index
    %80 = vector.load %arg21[%c0_105, %c9_106] : memref<16x138xf32, #tpu.memory_space<vmem>>, vector<8x128xf32>
    %c72 = arith.constant 72 : index
    %c0_107 = arith.constant 0 : index
    %81 = vector.load %arg22[%c72, %c0_107] : memref<88x128xf32, #tpu.memory_space<vmem>>, vector<8x128xf32>
    tpu.vector_store %arg22[%c72, %c0_107], %80 {strides = array<i32>} : memref<88x128xf32, #tpu.memory_space<vmem>>, vector<8x128xf32>,
    %c0_108 = arith.constant 0 : index
    %c10_109 = arith.constant 10 : index
    %82 = vector.load %arg21[%c0_108, %c10_109] : memref<16x138xf32, #tpu.memory_space<vmem>>, vector<8x128xf32>
    %c80 = arith.constant 80 : index
    %c0_110 = arith.constant 0 : index
    %83 = vector.load %arg22[%c80, %c0_110] : memref<88x128xf32, #tpu.memory_space<vmem>>, vector<8x128xf32>
    tpu.vector_store %arg22[%c80, %c0_110], %82 {strides = array<i32>} : memref<88x128xf32, #tpu.memory_space<vmem>>, vector<8x128xf32>,
    %c0_111 = arith.constant 0 : index
    %c0_112 = arith.constant 0 : index
    %84 = vector.load %arg7[%c0_111, %c0_112] : memref<8x88xf32, #tpu.memory_space<vmem>>, vector<8x88xf32>
    %c0_113 = arith.constant 0 : index
    %c0_114 = arith.constant 0 : index
    %85 = vector.load %arg22[%c0_113, %c0_114] : memref<88x128xf32, #tpu.memory_space<vmem>>, vector<88x128xf32>
    %cst_115 = arith.constant dense<0.000000e+00> : vector<8x128xf32>
    %86 = tpu.matmul %84, %85, %cst_115 {dimension_numbers = #tpu.dot_dimension_numbers<[1], [0], [0], [1], [0, 0, 1, 1], [], []>} : vector<8x88xf32>, vector<88x128xf32>, vector<8x128xf32> -> vector<8x128xf32>
    %c0_116 = arith.constant 0 : index
    %c0_117 = arith.constant 0 : index
    %87 = vector.load %arg8[%c0_116, %c0_117] : memref<8x1xf32, #tpu.memory_space<vmem>>, vector<8x1xf32>
    %88 = vector.broadcast %87 : vector<8x1xf32> to vector<8x128xf32>
    %89 = arith.addf %86, %88 : vector<8x128xf32>
    %cst_118 = arith.constant 0.000000e+00 : f32
    %90 = vector.broadcast %cst_118 : f32 to vector<8x128xf32>
    %91 = arith.cmpf ogt, %89, %90 : vector<8x128xf32>
    %cst_119 = arith.constant 2.000000e-01 : f32
    %92 = vector.broadcast %cst_119 : f32 to vector<8x128xf32>
    %93 = arith.mulf %92, %89 : vector<8x128xf32>
    %94 = arith.select %91, %89, %93 : vector<8x128xi1>, vector<8x128xf32>
    %c0_120 = arith.constant 0 : index
    %c0_121 = arith.constant 0 : index
    %c0_122 = arith.constant 0 : index
    %95 = vector.load %arg16[%c0_120, %c0_121, %c0_122] : memref<1x8x128xf32, #tpu.memory_space<vmem>>, vector<1x8x128xf32>
    %96 = vector.shape_cast %95 : vector<1x8x128xf32> to vector<8x128xf32>
    %97 = vector.shape_cast %94 : vector<8x128xf32> to vector<1x8x128xf32>
    tpu.vector_store %arg16[%c0_120, %c0_121, %c0_122], %97 {strides = array<i32>} : memref<1x8x128xf32, #tpu.memory_space<vmem>>, vector<1x8x128xf32>,
    %cst_123 = arith.constant 0.000000e+00 : f32
    %98 = vector.broadcast %cst_123 : f32 to vector<8x138xf32>
    %c0_124 = arith.constant 0 : index
    %c0_125 = arith.constant 0 : index
    %99 = vector.load %arg21[%c0_124, %c0_125] : memref<16x138xf32, #tpu.memory_space<vmem>>, vector<8x138xf32>
    tpu.vector_store %arg21[%c0_124, %c0_125], %98 {strides = array<i32>} : memref<16x138xf32, #tpu.memory_space<vmem>>, vector<8x138xf32>,
    %c0_126 = arith.constant 0 : index
    %c5_127 = arith.constant 5 : index
    %100 = vector.load %arg21[%c0_126, %c5_127] : memref<16x138xf32, #tpu.memory_space<vmem>>, vector<8x128xf32>
    tpu.vector_store %arg21[%c0_126, %c5_127], %94 {strides = array<i32>} : memref<16x138xf32, #tpu.memory_space<vmem>>, vector<8x128xf32>,
    %c0_128 = arith.constant 0 : index
    %c0_129 = arith.constant 0 : index
    %101 = vector.load %arg21[%c0_128, %c0_129] : memref<16x138xf32, #tpu.memory_space<vmem>>, vector<8x128xf32>
    %c0_130 = arith.constant 0 : index
    %c0_131 = arith.constant 0 : index
    %102 = vector.load %arg22[%c0_130, %c0_131] : memref<88x128xf32, #tpu.memory_space<vmem>>, vector<8x128xf32>
    tpu.vector_store %arg22[%c0_130, %c0_131], %101 {strides = array<i32>} : memref<88x128xf32, #tpu.memory_space<vmem>>, vector<8x128xf32>,
    %c0_132 = arith.constant 0 : index
    %c1_133 = arith.constant 1 : index
    %103 = vector.load %arg21[%c0_132, %c1_133] : memref<16x138xf32, #tpu.memory_space<vmem>>, vector<8x128xf32>
    %c8_134 = arith.constant 8 : index
    %c0_135 = arith.constant 0 : index
    %104 = vector.load %arg22[%c8_134, %c0_135] : memref<88x128xf32, #tpu.memory_space<vmem>>, vector<8x128xf32>
    tpu.vector_store %arg22[%c8_134, %c0_135], %103 {strides = array<i32>} : memref<88x128xf32, #tpu.memory_space<vmem>>, vector<8x128xf32>,
    %c0_136 = arith.constant 0 : index
    %c2_137 = arith.constant 2 : index
    %105 = vector.load %arg21[%c0_136, %c2_137] : memref<16x138xf32, #tpu.memory_space<vmem>>, vector<8x128xf32>
    %c16_138 = arith.constant 16 : index
    %c0_139 = arith.constant 0 : index
    %106 = vector.load %arg22[%c16_138, %c0_139] : memref<88x128xf32, #tpu.memory_space<vmem>>, vector<8x128xf32>
    tpu.vector_store %arg22[%c16_138, %c0_139], %105 {strides = array<i32>} : memref<88x128xf32, #tpu.memory_space<vmem>>, vector<8x128xf32>,
    %c0_140 = arith.constant 0 : index
    %c3_141 = arith.constant 3 : index
    %107 = vector.load %arg21[%c0_140, %c3_141] : memref<16x138xf32, #tpu.memory_space<vmem>>, vector<8x128xf32>
    %c24_142 = arith.constant 24 : index
    %c0_143 = arith.constant 0 : index
    %108 = vector.load %arg22[%c24_142, %c0_143] : memref<88x128xf32, #tpu.memory_space<vmem>>, vector<8x128xf32>
    tpu.vector_store %arg22[%c24_142, %c0_143], %107 {strides = array<i32>} : memref<88x128xf32, #tpu.memory_space<vmem>>, vector<8x128xf32>,
    %c0_144 = arith.constant 0 : index
    %c4_145 = arith.constant 4 : index
    %109 = vector.load %arg21[%c0_144, %c4_145] : memref<16x138xf32, #tpu.memory_space<vmem>>, vector<8x128xf32>
    %c32_146 = arith.constant 32 : index
    %c0_147 = arith.constant 0 : index
    %110 = vector.load %arg22[%c32_146, %c0_147] : memref<88x128xf32, #tpu.memory_space<vmem>>, vector<8x128xf32>
    tpu.vector_store %arg22[%c32_146, %c0_147], %109 {strides = array<i32>} : memref<88x128xf32, #tpu.memory_space<vmem>>, vector<8x128xf32>,
    %c0_148 = arith.constant 0 : index
    %c5_149 = arith.constant 5 : index
    %111 = vector.load %arg21[%c0_148, %c5_149] : memref<16x138xf32, #tpu.memory_space<vmem>>, vector<8x128xf32>
    %c40_150 = arith.constant 40 : index
    %c0_151 = arith.constant 0 : index
    %112 = vector.load %arg22[%c40_150, %c0_151] : memref<88x128xf32, #tpu.memory_space<vmem>>, vector<8x128xf32>
    tpu.vector_store %arg22[%c40_150, %c0_151], %111 {strides = array<i32>} : memref<88x128xf32, #tpu.memory_space<vmem>>, vector<8x128xf32>,
    %c0_152 = arith.constant 0 : index
    %c6_153 = arith.constant 6 : index
    %113 = vector.load %arg21[%c0_152, %c6_153] : memref<16x138xf32, #tpu.memory_space<vmem>>, vector<8x128xf32>
    %c48_154 = arith.constant 48 : index
    %c0_155 = arith.constant 0 : index
    %114 = vector.load %arg22[%c48_154, %c0_155] : memref<88x128xf32, #tpu.memory_space<vmem>>, vector<8x128xf32>
    tpu.vector_store %arg22[%c48_154, %c0_155], %113 {strides = array<i32>} : memref<88x128xf32, #tpu.memory_space<vmem>>, vector<8x128xf32>,
    %c0_156 = arith.constant 0 : index
    %c7_157 = arith.constant 7 : index
    %115 = vector.load %arg21[%c0_156, %c7_157] : memref<16x138xf32, #tpu.memory_space<vmem>>, vector<8x128xf32>
    %c56_158 = arith.constant 56 : index
    %c0_159 = arith.constant 0 : index
    %116 = vector.load %arg22[%c56_158, %c0_159] : memref<88x128xf32, #tpu.memory_space<vmem>>, vector<8x128xf32>
    tpu.vector_store %arg22[%c56_158, %c0_159], %115 {strides = array<i32>} : memref<88x128xf32, #tpu.memory_space<vmem>>, vector<8x128xf32>,
    %c0_160 = arith.constant 0 : index
    %c8_161 = arith.constant 8 : index
    %117 = vector.load %arg21[%c0_160, %c8_161] : memref<16x138xf32, #tpu.memory_space<vmem>>, vector<8x128xf32>
    %c64_162 = arith.constant 64 : index
    %c0_163 = arith.constant 0 : index
    %118 = vector.load %arg22[%c64_162, %c0_163] : memref<88x128xf32, #tpu.memory_space<vmem>>, vector<8x128xf32>
    tpu.vector_store %arg22[%c64_162, %c0_163], %117 {strides = array<i32>} : memref<88x128xf32, #tpu.memory_space<vmem>>, vector<8x128xf32>,
    %c0_164 = arith.constant 0 : index
    %c9_165 = arith.constant 9 : index
    %119 = vector.load %arg21[%c0_164, %c9_165] : memref<16x138xf32, #tpu.memory_space<vmem>>, vector<8x128xf32>
    %c72_166 = arith.constant 72 : index
    %c0_167 = arith.constant 0 : index
    %120 = vector.load %arg22[%c72_166, %c0_167] : memref<88x128xf32, #tpu.memory_space<vmem>>, vector<8x128xf32>
    tpu.vector_store %arg22[%c72_166, %c0_167], %119 {strides = array<i32>} : memref<88x128xf32, #tpu.memory_space<vmem>>, vector<8x128xf32>,
    %c0_168 = arith.constant 0 : index
    %c10_169 = arith.constant 10 : index
    %121 = vector.load %arg21[%c0_168, %c10_169] : memref<16x138xf32, #tpu.memory_space<vmem>>, vector<8x128xf32>
    %c80_170 = arith.constant 80 : index
    %c0_171 = arith.constant 0 : index
    %122 = vector.load %arg22[%c80_170, %c0_171] : memref<88x128xf32, #tpu.memory_space<vmem>>, vector<8x128xf32>
    tpu.vector_store %arg22[%c80_170, %c0_171], %121 {strides = array<i32>} : memref<88x128xf32, #tpu.memory_space<vmem>>, vector<8x128xf32>,
    %c0_172 = arith.constant 0 : index
    %c0_173 = arith.constant 0 : index
    %123 = vector.load %arg9[%c0_172, %c0_173] : memref<8x88xf32, #tpu.memory_space<vmem>>, vector<8x88xf32>
    %c0_174 = arith.constant 0 : index
    %c0_175 = arith.constant 0 : index
    %124 = vector.load %arg22[%c0_174, %c0_175] : memref<88x128xf32, #tpu.memory_space<vmem>>, vector<88x128xf32>
    %cst_176 = arith.constant dense<0.000000e+00> : vector<8x128xf32>
    %125 = tpu.matmul %123, %124, %cst_176 {dimension_numbers = #tpu.dot_dimension_numbers<[1], [0], [0], [1], [0, 0, 1, 1], [], []>} : vector<8x88xf32>, vector<88x128xf32>, vector<8x128xf32> -> vector<8x128xf32>
    %c0_177 = arith.constant 0 : index
    %c0_178 = arith.constant 0 : index
    %126 = vector.load %arg10[%c0_177, %c0_178] : memref<8x1xf32, #tpu.memory_space<vmem>>, vector<8x1xf32>
    %127 = vector.broadcast %126 : vector<8x1xf32> to vector<8x128xf32>
    %128 = arith.addf %125, %127 : vector<8x128xf32>
    %cst_179 = arith.constant 0.000000e+00 : f32
    %129 = vector.broadcast %cst_179 : f32 to vector<8x128xf32>
    %130 = arith.cmpf ogt, %128, %129 : vector<8x128xf32>
    %cst_180 = arith.constant 2.000000e-01 : f32
    %131 = vector.broadcast %cst_180 : f32 to vector<8x128xf32>
    %132 = arith.mulf %131, %128 : vector<8x128xf32>
    %133 = arith.select %130, %128, %132 : vector<8x128xi1>, vector<8x128xf32>
    %c0_181 = arith.constant 0 : index
    %c0_182 = arith.constant 0 : index
    %c0_183 = arith.constant 0 : index
    %134 = vector.load %arg17[%c0_181, %c0_182, %c0_183] : memref<1x8x128xf32, #tpu.memory_space<vmem>>, vector<1x8x128xf32>
    %135 = vector.shape_cast %134 : vector<1x8x128xf32> to vector<8x128xf32>
    %136 = vector.shape_cast %133 : vector<8x128xf32> to vector<1x8x128xf32>
    tpu.vector_store %arg17[%c0_181, %c0_182, %c0_183], %136 {strides = array<i32>} : memref<1x8x128xf32, #tpu.memory_space<vmem>>, vector<1x8x128xf32>,
    %cst_184 = arith.constant 0.000000e+00 : f32
    %137 = vector.broadcast %cst_184 : f32 to vector<8x138xf32>
    %c0_185 = arith.constant 0 : index
    %c0_186 = arith.constant 0 : index
    %138 = vector.load %arg21[%c0_185, %c0_186] : memref<16x138xf32, #tpu.memory_space<vmem>>, vector<8x138xf32>
    tpu.vector_store %arg21[%c0_185, %c0_186], %137 {strides = array<i32>} : memref<16x138xf32, #tpu.memory_space<vmem>>, vector<8x138xf32>,
    %c0_187 = arith.constant 0 : index
    %c2_188 = arith.constant 2 : index
    %139 = vector.load %arg21[%c0_187, %c2_188] : memref<16x138xf32, #tpu.memory_space<vmem>>, vector<8x128xf32>
    tpu.vector_store %arg21[%c0_187, %c2_188], %133 {strides = array<i32>} : memref<16x138xf32, #tpu.memory_space<vmem>>, vector<8x128xf32>,
    %c0_189 = arith.constant 0 : index
    %c0_190 = arith.constant 0 : index
    %140 = vector.load %arg21[%c0_189, %c0_190] : memref<16x138xf32, #tpu.memory_space<vmem>>, vector<8x128xf32>
    %c0_191 = arith.constant 0 : index
    %c0_192 = arith.constant 0 : index
    %141 = vector.load %arg22[%c0_191, %c0_192] : memref<88x128xf32, #tpu.memory_space<vmem>>, vector<8x128xf32>
    tpu.vector_store %arg22[%c0_191, %c0_192], %140 {strides = array<i32>} : memref<88x128xf32, #tpu.memory_space<vmem>>, vector<8x128xf32>,
    %c0_193 = arith.constant 0 : index
    %c1_194 = arith.constant 1 : index
    %142 = vector.load %arg21[%c0_193, %c1_194] : memref<16x138xf32, #tpu.memory_space<vmem>>, vector<8x128xf32>
    %c8_195 = arith.constant 8 : index
    %c0_196 = arith.constant 0 : index
    %143 = vector.load %arg22[%c8_195, %c0_196] : memref<88x128xf32, #tpu.memory_space<vmem>>, vector<8x128xf32>
    tpu.vector_store %arg22[%c8_195, %c0_196], %142 {strides = array<i32>} : memref<88x128xf32, #tpu.memory_space<vmem>>, vector<8x128xf32>,
    %c0_197 = arith.constant 0 : index
    %c2_198 = arith.constant 2 : index
    %144 = vector.load %arg21[%c0_197, %c2_198] : memref<16x138xf32, #tpu.memory_space<vmem>>, vector<8x128xf32>
    %c16_199 = arith.constant 16 : index
    %c0_200 = arith.constant 0 : index
    %145 = vector.load %arg22[%c16_199, %c0_200] : memref<88x128xf32, #tpu.memory_space<vmem>>, vector<8x128xf32>
    tpu.vector_store %arg22[%c16_199, %c0_200], %144 {strides = array<i32>} : memref<88x128xf32, #tpu.memory_space<vmem>>, vector<8x128xf32>,
    %c0_201 = arith.constant 0 : index
    %c3_202 = arith.constant 3 : index
    %146 = vector.load %arg21[%c0_201, %c3_202] : memref<16x138xf32, #tpu.memory_space<vmem>>, vector<8x128xf32>
    %c24_203 = arith.constant 24 : index
    %c0_204 = arith.constant 0 : index
    %147 = vector.load %arg22[%c24_203, %c0_204] : memref<88x128xf32, #tpu.memory_space<vmem>>, vector<8x128xf32>
    tpu.vector_store %arg22[%c24_203, %c0_204], %146 {strides = array<i32>} : memref<88x128xf32, #tpu.memory_space<vmem>>, vector<8x128xf32>,
    %c0_205 = arith.constant 0 : index
    %c4_206 = arith.constant 4 : index
    %148 = vector.load %arg21[%c0_205, %c4_206] : memref<16x138xf32, #tpu.memory_space<vmem>>, vector<8x128xf32>
    %c32_207 = arith.constant 32 : index
    %c0_208 = arith.constant 0 : index
    %149 = vector.load %arg22[%c32_207, %c0_208] : memref<88x128xf32, #tpu.memory_space<vmem>>, vector<8x128xf32>
    tpu.vector_store %arg22[%c32_207, %c0_208], %148 {strides = array<i32>} : memref<88x128xf32, #tpu.memory_space<vmem>>, vector<8x128xf32>,
    %c0_209 = arith.constant 0 : index
    %c0_210 = arith.constant 0 : index
    %150 = vector.load %arg11[%c0_209, %c0_210] : memref<16x40xf32, #tpu.memory_space<vmem>>, vector<16x40xf32>
    %c0_211 = arith.constant 0 : index
    %c0_212 = arith.constant 0 : index
    %151 = vector.load %arg22[%c0_211, %c0_212] : memref<88x128xf32, #tpu.memory_space<vmem>>, vector<40x128xf32>
    %cst_213 = arith.constant dense<0.000000e+00> : vector<16x128xf32>
    %152 = tpu.matmul %150, %151, %cst_213 {dimension_numbers = #tpu.dot_dimension_numbers<[1], [0], [0], [1], [0, 0, 1, 1], [], []>} : vector<16x40xf32>, vector<40x128xf32>, vector<16x128xf32> -> vector<16x128xf32>
    %c0_214 = arith.constant 0 : index
    %c0_215 = arith.constant 0 : index
    %153 = vector.load %arg12[%c0_214, %c0_215] : memref<16x1xf32, #tpu.memory_space<vmem>>, vector<16x1xf32>
    %154 = vector.broadcast %153 : vector<16x1xf32> to vector<16x128xf32>
    %155 = arith.addf %152, %154 : vector<16x128xf32>
    %cst_216 = arith.constant 0.000000e+00 : f32
    %156 = vector.broadcast %cst_216 : f32 to vector<16x128xf32>
    %157 = arith.cmpf ogt, %155, %156 : vector<16x128xf32>
    %cst_217 = arith.constant 2.000000e-01 : f32
    %158 = vector.broadcast %cst_217 : f32 to vector<16x128xf32>
    %159 = arith.mulf %158, %155 : vector<16x128xf32>
    %160 = arith.select %157, %155, %159 : vector<16x128xi1>, vector<16x128xf32>
    %c0_218 = arith.constant 0 : index
    %c0_219 = arith.constant 0 : index
    %c0_220 = arith.constant 0 : index
    %161 = vector.load %arg18[%c0_218, %c0_219, %c0_220] : memref<1x16x128xf32, #tpu.memory_space<vmem>>, vector<1x16x128xf32>
    %162 = vector.shape_cast %161 : vector<1x16x128xf32> to vector<16x128xf32>
    %163 = vector.shape_cast %160 : vector<16x128xf32> to vector<1x16x128xf32>
    tpu.vector_store %arg18[%c0_218, %c0_219, %c0_220], %163 {strides = array<i32>} : memref<1x16x128xf32, #tpu.memory_space<vmem>>, vector<1x16x128xf32>,
    %cst_221 = arith.constant 0.000000e+00 : f32
    %164 = vector.broadcast %cst_221 : f32 to vector<16x138xf32>
    %c0_222 = arith.constant 0 : index
    %c0_223 = arith.constant 0 : index
    %165 = vector.load %arg21[%c0_222, %c0_223] : memref<16x138xf32, #tpu.memory_space<vmem>>, vector<16x138xf32>
    tpu.vector_store %arg21[%c0_222, %c0_223], %164 {strides = array<i32>} : memref<16x138xf32, #tpu.memory_space<vmem>>, vector<16x138xf32>,
    %c0_224 = arith.constant 0 : index
    %c1_225 = arith.constant 1 : index
    %166 = vector.load %arg21[%c0_224, %c1_225] : memref<16x138xf32, #tpu.memory_space<vmem>>, vector<16x128xf32>
    tpu.vector_store %arg21[%c0_224, %c1_225], %160 {strides = array<i32>} : memref<16x138xf32, #tpu.memory_space<vmem>>, vector<16x128xf32>,
    %c0_226 = arith.constant 0 : index
    %c0_227 = arith.constant 0 : index
    %167 = vector.load %arg21[%c0_226, %c0_227] : memref<16x138xf32, #tpu.memory_space<vmem>>, vector<16x128xf32>
    %c0_228 = arith.constant 0 : index
    %c0_229 = arith.constant 0 : index
    %168 = vector.load %arg22[%c0_228, %c0_229] : memref<88x128xf32, #tpu.memory_space<vmem>>, vector<16x128xf32>
    tpu.vector_store %arg22[%c0_228, %c0_229], %167 {strides = array<i32>} : memref<88x128xf32, #tpu.memory_space<vmem>>, vector<16x128xf32>,
    %c0_230 = arith.constant 0 : index
    %c1_231 = arith.constant 1 : index
    %169 = vector.load %arg21[%c0_230, %c1_231] : memref<16x138xf32, #tpu.memory_space<vmem>>, vector<16x128xf32>
    %c16_232 = arith.constant 16 : index
    %c0_233 = arith.constant 0 : index
    %170 = vector.load %arg22[%c16_232, %c0_233] : memref<88x128xf32, #tpu.memory_space<vmem>>, vector<16x128xf32>
    tpu.vector_store %arg22[%c16_232, %c0_233], %169 {strides = array<i32>} : memref<88x128xf32, #tpu.memory_space<vmem>>, vector<16x128xf32>,
    %c0_234 = arith.constant 0 : index
    %c2_235 = arith.constant 2 : index
    %171 = vector.load %arg21[%c0_234, %c2_235] : memref<16x138xf32, #tpu.memory_space<vmem>>, vector<16x128xf32>
    %c32_236 = arith.constant 32 : index
    %c0_237 = arith.constant 0 : index
    %172 = vector.load %arg22[%c32_236, %c0_237] : memref<88x128xf32, #tpu.memory_space<vmem>>, vector<16x128xf32>
    tpu.vector_store %arg22[%c32_236, %c0_237], %171 {strides = array<i32>} : memref<88x128xf32, #tpu.memory_space<vmem>>, vector<16x128xf32>,
    %c0_238 = arith.constant 0 : index
    %c0_239 = arith.constant 0 : index
    %173 = vector.load %arg13[%c0_238, %c0_239] : memref<1x48xf32, #tpu.memory_space<vmem>>, vector<1x48xf32>
    %c0_240 = arith.constant 0 : index
    %c0_241 = arith.constant 0 : index
    %174 = vector.load %arg22[%c0_240, %c0_241] : memref<88x128xf32, #tpu.memory_space<vmem>>, vector<48x128xf32>
    %cst_242 = arith.constant dense<0.000000e+00> : vector<1x128xf32>
    %175 = tpu.matmul %173, %174, %cst_242 {dimension_numbers = #tpu.dot_dimension_numbers<[1], [0], [0], [1], [0, 0, 1, 1], [], []>} : vector<1x48xf32>, vector<48x128xf32>, vector<1x128xf32> -> vector<1x128xf32>
    %c0_243 = arith.constant 0 : index
    %c0_244 = arith.constant 0 : index
    %176 = vector.load %arg14[%c0_243, %c0_244] : memref<1x1xf32, #tpu.memory_space<vmem>>, vector<1x1xf32>
    %177 = vector.broadcast %176 : vector<1x1xf32> to vector<1x128xf32>
    %178 = arith.addf %175, %177 : vector<1x128xf32>
    %c0_245 = arith.constant 0 : index
    %c0_246 = arith.constant 0 : index
    %c0_247 = arith.constant 0 : index
    %179 = vector.load %arg19[%c0_245, %c0_246, %c0_247] : memref<1x1x128xf32, #tpu.memory_space<vmem>>, vector<1x1x128xf32>
    %180 = vector.shape_cast %179 : vector<1x1x128xf32> to vector<1x128xf32>
    %181 = vector.shape_cast %178 : vector<1x128xf32> to vector<1x1x128xf32>
    tpu.vector_store %arg19[%c0_245, %c0_246, %c0_247], %181 {strides = array<i32>} : memref<1x1x128xf32, #tpu.memory_space<vmem>>, vector<1x1x128xf32>,
    %c0_248 = arith.constant 0 : index
    %c0_249 = arith.constant 0 : index
    %c0_250 = arith.constant 0 : index
    %182 = vector.load %arg2[%c0_248, %c0_249, %c0_250] : memref<1x1x64xf32, #tpu.memory_space<vmem>>, vector<1x1x64xf32>
    %183 = vector.shape_cast %182 : vector<1x1x64xf32> to vector<1x64xf32>
    %c0_251 = arith.constant 0 : index
    %c0_252 = arith.constant 0 : index
    %c0_253 = arith.constant 0 : index
    %184 = vector.load %arg3[%c0_251, %c0_252, %c0_253] : memref<1x1x64xf32, #tpu.memory_space<vmem>>, vector<1x1x64xf32>
    %185 = vector.shape_cast %184 : vector<1x1x64xf32> to vector<1x64xf32>
    %cst_254 = arith.constant 0.000000e+00 : f32
    %186 = vector.broadcast %cst_254 : f32 to vector<2x138xf32>
    %c0_255 = arith.constant 0 : index
    %c0_256 = arith.constant 0 : index
    %187 = vector.load %arg21[%c0_255, %c0_256] : memref<16x138xf32, #tpu.memory_space<vmem>>, vector<2x138xf32>
    tpu.vector_store %arg21[%c0_255, %c0_256], %186 {strides = array<i32>} : memref<16x138xf32, #tpu.memory_space<vmem>>, vector<2x138xf32>,
    %c0_257 = arith.constant 0 : index
    %c1_258 = arith.constant 1 : index
    %188 = vector.load %arg21[%c0_257, %c1_258] : memref<16x138xf32, #tpu.memory_space<vmem>>, vector<1x64xf32>
    tpu.vector_store %arg21[%c0_257, %c1_258], %185 {strides = array<i32>} : memref<16x138xf32, #tpu.memory_space<vmem>>, vector<1x64xf32>,
    %c1_259 = arith.constant 1 : index
    %c0_260 = arith.constant 0 : index
    %189 = vector.load %arg21[%c1_259, %c0_260] : memref<16x138xf32, #tpu.memory_space<vmem>>, vector<1x64xf32>
    tpu.vector_store %arg21[%c1_259, %c0_260], %183 {strides = array<i32>} : memref<16x138xf32, #tpu.memory_space<vmem>>, vector<1x64xf32>,
    %c0_261 = arith.constant 0 : index
    %c0_262 = arith.constant 0 : index
    %190 = vector.load %arg21[%c0_261, %c0_262] : memref<16x138xf32, #tpu.memory_space<vmem>>, vector<1x64xf32>
    %c1_263 = arith.constant 1 : index
    %c1_264 = arith.constant 1 : index
    %191 = vector.load %arg21[%c1_263, %c1_264] : memref<16x138xf32, #tpu.memory_space<vmem>>, vector<1x64xf32>
    %192 = arith.addf %190, %183 : vector<1x64xf32>
    %193 = arith.addf %192, %185 : vector<1x64xf32>
    %194 = arith.addf %193, %191 : vector<1x64xf32>
    %c0_265 = arith.constant 0 : index
    %c0_266 = arith.constant 0 : index
    %195 = vector.load %arg4[%c0_265, %c0_266] : memref<1x64xf32, #tpu.memory_space<vmem>>, vector<1x64xf32>
    %196 = arith.mulf %194, %195 : vector<1x64xf32>
    %c0_267 = arith.constant 0 : index
    %c0_268 = arith.constant 0 : index
    %c0_269 = arith.constant 0 : index
    %197 = vector.load %arg20[%c0_267, %c0_268, %c0_269] : memref<1x1x64xf32, #tpu.memory_space<vmem>>, vector<1x1x64xf32>
    %198 = vector.shape_cast %197 : vector<1x1x64xf32> to vector<1x64xf32>
    %199 = vector.shape_cast %196 : vector<1x64xf32> to vector<1x1x64xf32>
    tpu.vector_store %arg20[%c0_267, %c0_268, %c0_269], %199 {strides = array<i32>} : memref<1x1x64xf32, #tpu.memory_space<vmem>>, vector<1x1x64xf32>,
    return
  }
  func.func @transform_0(%arg0: i32) -> (i32, i32, i32) {
    %c0_i32 = arith.constant 0 : i32
    %c0_i32_0 = arith.constant 0 : i32
    %c0_i32_1 = arith.constant 0 : i32
    return %arg0, %c0_i32, %c0_i32_0 : i32, i32, i32
  }
  func.func @transform_1(%arg0: i32) -> (i32, i32, i32) {
    %c0_i32 = arith.constant 0 : i32
    %c0_i32_0 = arith.constant 0 : i32
    %c0_i32_1 = arith.constant 0 : i32
    return %arg0, %c0_i32, %c0_i32_0 : i32, i32, i32
  }
  func.func @transform_2(%arg0: i32) -> (i32, i32, i32) {
    %c0_i32 = arith.constant 0 : i32
    %c0_i32_0 = arith.constant 0 : i32
    %c0_i32_1 = arith.constant 0 : i32
    return %arg0, %c0_i32, %c0_i32_0 : i32, i32, i32
  }
  func.func @transform_3(%arg0: i32) -> (i32, i32) {
    %c0_i32 = arith.constant 0 : i32
    %c0_i32_0 = arith.constant 0 : i32
    %c0_i32_1 = arith.constant 0 : i32
    return %c0_i32, %c0_i32_0 : i32, i32
  }
  func.func @transform_4(%arg0: i32) -> (i32, i32) {
    %c0_i32 = arith.constant 0 : i32
    %c0_i32_0 = arith.constant 0 : i32
    %c0_i32_1 = arith.constant 0 : i32
    return %c0_i32, %c0_i32_0 : i32, i32
  }
  func.func @transform_5(%arg0: i32) -> (i32, i32) {
    %c0_i32 = arith.constant 0 : i32
    %c0_i32_0 = arith.constant 0 : i32
    %c0_i32_1 = arith.constant 0 : i32
    return %c0_i32, %c0_i32_0 : i32, i32
  }
  func.func @transform_6(%arg0: i32) -> (i32, i32) {
    %c0_i32 = arith.constant 0 : i32
    %c0_i32_0 = arith.constant 0 : i32
    %c0_i32_1 = arith.constant 0 : i32
    return %c0_i32, %c0_i32_0 : i32, i32
  }
  func.func @transform_7(%arg0: i32) -> (i32, i32) {
    %c0_i32 = arith.constant 0 : i32
    %c0_i32_0 = arith.constant 0 : i32
    %c0_i32_1 = arith.constant 0 : i32
    return %c0_i32, %c0_i32_0 : i32, i32
  }
  func.func @transform_8(%arg0: i32) -> (i32, i32) {
    %c0_i32 = arith.constant 0 : i32
    %c0_i32_0 = arith.constant 0 : i32
    %c0_i32_1 = arith.constant 0 : i32
    return %c0_i32, %c0_i32_0 : i32, i32
  }
  func.func @transform_9(%arg0: i32) -> (i32, i32) {
    %c0_i32 = arith.constant 0 : i32
    %c0_i32_0 = arith.constant 0 : i32
    %c0_i32_1 = arith.constant 0 : i32
    return %c0_i32, %c0_i32_0 : i32, i32
  }
  func.func @transform_10(%arg0: i32) -> (i32, i32) {
    %c0_i32 = arith.constant 0 : i32
    %c0_i32_0 = arith.constant 0 : i32
    %c0_i32_1 = arith.constant 0 : i32
    return %c0_i32, %c0_i32_0 : i32, i32
  }
  func.func @transform_11(%arg0: i32) -> (i32, i32) {
    %c0_i32 = arith.constant 0 : i32
    %c0_i32_0 = arith.constant 0 : i32
    %c0_i32_1 = arith.constant 0 : i32
    return %c0_i32, %c0_i32_0 : i32, i32
  }
  func.func @transform_12(%arg0: i32) -> (i32, i32) {
    %c0_i32 = arith.constant 0 : i32
    %c0_i32_0 = arith.constant 0 : i32
    %c0_i32_1 = arith.constant 0 : i32
    return %c0_i32, %c0_i32_0 : i32, i32
  }
  func.func @transform_13(%arg0: i32) -> (i32, i32) {
    %c0_i32 = arith.constant 0 : i32
    %c0_i32_0 = arith.constant 0 : i32
    %c0_i32_1 = arith.constant 0 : i32
    return %c0_i32, %c0_i32_0 : i32, i32
  }
  func.func @transform_14(%arg0: i32) -> (i32, i32, i32) {
    %c0_i32 = arith.constant 0 : i32
    %c0_i32_0 = arith.constant 0 : i32
    %c0_i32_1 = arith.constant 0 : i32
    return %arg0, %c0_i32, %c0_i32_0 : i32, i32, i32
  }
  func.func @transform_15(%arg0: i32) -> (i32, i32, i32) {
    %c0_i32 = arith.constant 0 : i32
    %c0_i32_0 = arith.constant 0 : i32
    %c0_i32_1 = arith.constant 0 : i32
    return %arg0, %c0_i32, %c0_i32_0 : i32, i32, i32
  }
  func.func @transform_16(%arg0: i32) -> (i32, i32, i32) {
    %c0_i32 = arith.constant 0 : i32
    %c0_i32_0 = arith.constant 0 : i32
    %c0_i32_1 = arith.constant 0 : i32
    return %arg0, %c0_i32, %c0_i32_0 : i32, i32, i32
  }
  func.func @transform_17(%arg0: i32) -> (i32, i32, i32) {
    %c0_i32 = arith.constant 0 : i32
    %c0_i32_0 = arith.constant 0 : i32
    %c0_i32_1 = arith.constant 0 : i32
    return %arg0, %c0_i32, %c0_i32_0 : i32, i32, i32
  }
  func.func @transform_18(%arg0: i32) -> (i32, i32, i32) {
    %c0_i32 = arith.constant 0 : i32
    %c0_i32_0 = arith.constant 0 : i32
    %c0_i32_1 = arith.constant 0 : i32
    return %arg0, %c0_i32, %c0_i32_0 : i32, i32, i32
  }
  func.func @transform_19(%arg0: i32) -> (i32, i32, i32) {
    %c0_i32 = arith.constant 0 : i32
    %c0_i32_0 = arith.constant 0 : i32
    %c0_i32_1 = arith.constant 0 : i32
    return %arg0, %c0_i32, %c0_i32_0 : i32, i32, i32
  }
}

</mosaic_0001>

<bundles_post_ra>
// kernel: _discriminator_forward.2
= control target key start
LH: loop header
LB: loop body
LE: loop exit
PB: predicated region body
PF: predicated region fallthrough
CT: control target
= control target key end

     0   :  { %s3248_s0 = inlined_call_operand.vmem [shape: f32[2,1,142], index: 0, kind: input, shape index: {}]   ;;  %s3249_s1 = inlined_call_operand.vmem [shape: f32[2,1,64], index: 1, kind: input, shape index: {}]   ;;  %s3250_s2 = inlined_call_operand.vmem [shape: f32[2,1,64], index: 2, kind: input, shape index: {}]   ;;  %s3251_s3 = inlined_call_operand.vmem [shape: f32[1,64], index: 3, kind: input, shape index: {}]   ;;  %s3252_s4 = inlined_call_operand.vmem [shape: f32[8,15], index: 4, kind: input, shape index: {}]   ;;  %s3253_s5 = inlined_call_operand.vmem [shape: f32[8,1], index: 5, kind: input, shape index: {}]   ;;  %s3254_s6 = inlined_call_operand.vmem [shape: f32[8,88], index: 6, kind: input, shape index: {}]   ;;  %s3255_s7 = inlined_call_operand.vmem [shape: f32[8,1], index: 7, kind: input, shape index: {}]   ;;  %s3256_s8 = inlined_call_operand.vmem [shape: f32[8,88], index: 8, kind: input, shape index: {}]   ;;  %s3257_s9 = inlined_call_operand.vmem [shape: f32[8,1], index: 9, kind: input, shape index: {}]   ;;  %s3258_s10 = inlined_call_operand.vmem [shape: f32[16,40], index: 10, kind: input, shape index: {}]   ;;  %s3259_s11 = inlined_call_operand.vmem [shape: f32[16,1], index: 11, kind: input, shape index: {}]   ;;  %s3260_s12 = inlined_call_operand.vmem [shape: f32[1,48], index: 12, kind: input, shape index: {}]   ;;  %s3261_s13 = inlined_call_operand.<no memory space> [shape: f32[1,1], index: 13, kind: input, shape index: {}]   ;;  %s3262_s14 = inlined_call_operand.hbm [shape: f32[2,8,128], index: 14, kind: output, shape index: {0}]   ;;  %s3263_s15 = inlined_call_operand.hbm [shape: f32[2,8,128], index: 15, kind: output, shape index: {1}]   ;;  %s3264_s16 = inlined_call_operand.hbm [shape: f32[2,8,128], index: 16, kind: output, shape index: {2}]   ;;  %s3265_s17 = inlined_call_operand.hbm [shape: f32[2,16,128], index: 17, kind: output, shape index: {3}]   ;;  %s3266_s18 = inlined_call_operand.hbm [shape: f32[2,1,128], index: 18, kind: output, shape index: {4}]   ;;  %s3267_s19 = inlined_call_operand.vmem [shape: f32[2,1,64], index: 19, kind: output, shape index: {5}]  }
   0x1   :  { %3299 = sst [smem:[#allocation21_spill]] %s3248_s0  ;;  %v25_v0 = vstv %s3261_s13 }
   0x2   :  { %3300 = sst [smem:[#allocation22_spill]] %s3249_s1  ;;  %26 = vst [vmem:[#allocation4] sm:$0x1] %v25_v0 }
   0x3   :  { %3301 = sst [smem:[#allocation23_spill]] %s3250_s2 }
   0x4   :  { %3302 = sst [smem:[#allocation24_spill]] %s3251_s3 }
   0x5   :  { %3303 = sst [smem:[#allocation25_spill]] %s3252_s4 }
   0x6   :  { %3304 = sst [smem:[#allocation26_spill]] %s3253_s5 }
   0x7   :  { %3305 = sst [smem:[#allocation27_spill]] %s3254_s6 }
   0x8   :  { %3306 = sst [smem:[#allocation28_spill]] %s3255_s7 }
   0x9   :  { %3307 = sst [smem:[#allocation29_spill]] %s3256_s8 }
   0xa   :  { %3308 = sst [smem:[#allocation30_spill]] %s3257_s9 }
   0xb   :  { %3309 = sst [smem:[#allocation31_spill]] %s3258_s10 }
   0xc   :  { %3310 = sst [smem:[#allocation32_spill]] %s3259_s11 }
   0xd   :  { %27 = vsyncpa [#allocation6], 0 }
   0xe   :  { %29 = vsyncpa [#allocation6 + $0x1], 0 }
   0xf   :  { %30 = vsyncpa [#allocation8], 0 }
  0x10   :  { %32 = vsyncpa [#allocation8 + $0x1], 0 }
  0x11   :  { %33 = vsyncpa [#allocation11], 0 }
  0x12   :  { %35 = vsyncpa [#allocation11 + $0x1], 0  ;;  %s2716_s20 = smov 0   ;;  %s2718_s21 = smov 0  }
  0x13   :  { %s2720_s1 = smov 0   ;;  %s2722_s22 = smov 0  }
  0x14 LB: > { %3311 = sst [smem:[#allocation16_spill]] %s2574_s21  ;;  %s2737_s13 = sadd.s32 4294967295, %s2582_s22   ;;  %s2582_s22 = sphi %s2722_s22, %s3349_s22   ;;  %s2578_s1 = sphi %s2720_s1, %s3352_s1   ;;  %s2574_s21 = sphi %s2718_s21, %s3351_s21   ;;  %s2570_s20 = sphi %s2716_s20, %s3350_s20  }
  0x15   : > { %3312 = sst [smem:[#allocation17_spill]] %s2578_s1  ;;  %s3268_s2 = sadd.s32 4294967294, %s2582_s22  }
  0x16   : > { %s2741_s23 = sadd.s32 1, %s2582_s22   ;;  %s357_s24 = sadd.s32 1, %s2578_s1 }
  0x17   : > { %3313 = sst [smem:[#allocation18_spill]] %s2741_s23  ;;  %s354_s25 = ssub.s32 %s2582_s22, %s2741_s23 }
  0x18   : > { %p367_p0 = scmp.ne.s32.totalorder %s2578_s1, %s2574_s21  ;;  %p355_p1 = scmp.eq.s32.totalorder %s354_s25, 0 }
  0x19   : > { %p368_p2 = scmp.eq.s32.totalorder %s2737_s13, 1  ;;  %p373_p3 = scmp.ne.s32.totalorder %s2574_s21, %s2570_s20 }
  0x1a   : > { %p374_p4 = scmp.eq.s32.totalorder %s3268_s2, 1  ;;  %p2112_p7 = scmp.ge.s32.totalorder %s2582_s22, 1 }
  0x1b   : > { %s2754_s3 = scalar_select %p355_p1, %s2578_s1, %s357_s24  }
  0x1c   : > { %p2756_p5 = por %p368_p2, %p367_p0  ;;  %p2760_p6 = por %p374_p4, %p373_p3 }
  0x1d   : > { %3314 = sst [smem:[#allocation19_spill]] %s2754_s3  ;;  %p574_p8 = scmp.lt.s32.totalorder %s2582_s22, 3 }
  0x1e   : > { %s3316_s27 = scalar_select %p2760_p6, 1, 0 }
  0x1f   : > { %p575_p9 = pnand %p2112_p7, %p574_p8 }
  0x20   : > { %3317 = sst [smem:[#allocation20_spill]] %s3316_s27  ;;  %p657_p10 = scmp.lt.s32.totalorder (!%p575_p9), %s2737_s13, 1  ;;  %v674_v1 = vlaneseq (!%p575_p9)  ;;  %v2595_v43 = vmov (!%p575_p9), 0.0|0.0   ;;  %vm2598_vm0 = vmmov (!%p575_p9), 0   ;;  %v2599_v49 = vmov (!%p575_p9), 0.0  }
  0x21   : > { %578 = sbr.rel (%p575_p9) target bundleno = 2396 (0x95c), region = 76  ;;  %s3318_s24 = sld [smem:[#allocation21_spill]] (!%p575_p9)  ;;  %2264 = vmatprep.subr.bf16.mxu1 (!%p575_p9), %v2595_v43  ;;  %2283 = vmatprep.subr.bf16.mxu0 (!%p575_p9), %v2595_v43  ;;  %1015 = vst [vmem:[#allocation2] sm:$0xff] (!%p575_p9), %v2599_v49  ;;  %1616 = vst [vmem:[#allocation2 + $0x10] sm:$0xff] (!%p575_p9), %v2599_v49  ;;  %v2601_v51 = vmov (!%p575_p9), 0   ;;  %vm704_vm1 = vcmask (!%p575_p9), 1031168  }
  0x22   : > { %v675_v2 = vshrl.u32 (!%p575_p9), %v674_v1, 7  ;;  %s3290_s2 = smov (!%p575_p9), 126   ;;  %s3269_s0 = smov (!%p575_p9), 125   ;;  %2183 = vmatprep.mubr.msk.f32.mxu1 (!%p575_p9), %vm2598_vm0, %v2599_v49  ;;  %2233 = vmatprep.mubr.msk.f32.mxu0 (!%p575_p9), %vm2598_vm0, %v2599_v49  ;;  %vm686_vm2 = vcmask (!%p575_p9), 1039360   ;;  %vm722_vm3 = vcmask (!%p575_p9), 1022976   ;;  %vm740_vm4 = vcmask (!%p575_p9), 1014784  }
  0x23   : > { %s3271_s30 = smov (!%p575_p9), 124   ;;  %s3319_s5 = sld [smem:[#allocation26_spill]] (!%p575_p9)  ;;  %2398 = vset.pattern.permute.xlu0 (!%p575_p9), %v2601_v51  ;;  %2399 = vset.pattern.permute.xlu1 (!%p575_p9), %v2601_v51  ;;  %vm758_vm5 = vcmask (!%p575_p9), 1006592   ;;  %vm776_vm6 = vcmask (!%p575_p9), 998400   ;;  %vm794_vm7 = vcmask (!%p575_p9), 990208   ;;  %vm812_vm8 = vcmask (!%p575_p9), 982016  }
  0x24   : > { %v2771_v3 = vsub.s32 (!%p575_p9), 0, %v675_v2  ;;  %v2778_v4 = vsub.s32 (!%p575_p9), 1, %v675_v2  ;;  %vm830_vm9 = vcmask (!%p575_p9), 973824   ;;  %vm3285_vm10 = vcmask (!%p575_p9), 965632   ;;  %s3320_s4 = sld [smem:[#allocation25_spill]] (!%p575_p9)  ;;  %s3327_s3 = smov (!%p575_p9), 119  }
  0x25   : > { %vm866_vm11 = vcmask (!%p575_p9), 957440   ;;  %vm884_vm12 = vcmask (!%p575_p9), 949248   ;;  %vm902_vm13 = vcmask (!%p575_p9), 941056   ;;  %vm920_vm14 = vcmask (!%p575_p9), 932864   ;;  %s3328_s1 = smov (!%p575_p9), 118   ;;  %s3329_s7 = sld [smem:[#allocation28_spill]] (!%p575_p9) }
  0x26   : > { %vm937_vm15 = vcmask (!%p575_p9), 1046528   ;;  %s3330_s6 = sld [smem:[#allocation27_spill]] (!%p575_p9)  ;;  %s3335_s9 = sld [smem:[#allocation30_spill]] (!%p575_p9) }
  0x27   : > { %s3337_s8 = sld [smem:[#allocation29_spill]] (!%p575_p9)  ;;  %s3338_s10 = sld [smem:[#allocation31_spill]] (!%p575_p9) }
  0x28   : > { %s2768_s28 = scalar_select %p657_p10, %s2737_s13, 1 }
  0x29   : > { %v927_v50 = vld [vmem:[%s3319_s5] sm:$0xff]  ;;  %s3325_s5 = smov 121   ;;  %s3339_s11 = sld [smem:[#allocation32_spill]] }
  0x2a   : > { %s2117_s29 = sshll.u32 %s2768_s28, 1 }
  0x2b   : > { %s2776_s25 = scalar_lea.vmem %s3318_s24, %s2117_s29  ;;  %s3288_s29 = smov 127  }
  0x2c   : > { %v690_v5 = vld [vmem:[%s2776_s25] sm:$0x3]  ;;  %s3273_s24 = smov 123  }
  0x2d   : > { %v672_v6 = vld [vmem:[%s2776_s25] sm:$0x3]  ;;  %v695_v7 = vrot.slane %v690_v5, %v2771_v3  ;;  %v699_v9 = vrot.slane %v690_v5, %v2778_v4 }
  0x2e   : > { %v677_v8 = vrot.slane %v672_v6, %v2771_v3  ;;  %v681_v10 = vrot.slane %v672_v6, %v2778_v4  ;;  %v708_v11 = vld [vmem:[%s2776_s25] sm:$0x3] }
  0x2f   : > { %700 = vrot.lane.b32.xlu1 %v695_v7, %s3290_s2  ;;  %v717_v12 = vrot.slane %v708_v11, %v2778_v4  ;;  %v713_v13 = vrot.slane %v708_v11, %v2771_v3  ;;  %v726_v14 = vld [vmem:[%s2776_s25] sm:$0x3] }
  0x30   : > { %682 = vrot.lane.b32.xlu0 %v677_v8, %s3288_s29  ;;  %v735_v15 = vrot.slane %v726_v14, %v2778_v4  ;;  %v731_v16 = vrot.slane %v726_v14, %v2771_v3  ;;  %v744_v17 = vld [vmem:[%s2776_s25] sm:$0x3] }
  0x31   : > { %v670_v18 = vld [vmem:[%s2776_s25] sm:$0x1]  ;;  %v753_v19 = vrot.slane %v744_v17, %v2778_v4  ;;  %v749_v20 = vrot.slane %v744_v17, %v2771_v3 }
  0x32   : > { %671 = vst [vmem:[#allocation3] sm:$0x1] %v670_v18  ;;  %v762_v21 = vld [vmem:[%s2776_s25] sm:$0x3] }
  0x33   : > { %702 = vrot.lane.b32.xlu1 %v699_v9, %s3290_s2  ;;  %v771_v22 = vrot.slane %v762_v21, %v2778_v4  ;;  %v767_v23 = vrot.slane %v762_v21, %v2771_v3  ;;  %v780_v24 = vld [vmem:[%s2776_s25] sm:$0x3] }
  0x34   : > { %684 = vrot.lane.b32.xlu0 %v681_v10, %s3288_s29  ;;  %v789_v25 = vrot.slane %v780_v24, %v2778_v4  ;;  %v785_v26 = vrot.slane %v780_v24, %v2771_v3  ;;  %v798_v27 = vld [vmem:[%s2776_s25] sm:$0x3] }
  0x35   : > { %v807_v28 = vrot.slane %v798_v27, %v2778_v4  ;;  %v803_v29 = vrot.slane %v798_v27, %v2771_v3  ;;  %v816_v30 = vld [vmem:[%s2776_s25] sm:$0x3] }
  0x36   : > { %v825_v31 = vrot.slane %v816_v30, %v2778_v4  ;;  %v821_v32 = vrot.slane %v816_v30, %v2771_v3  ;;  %v834_v33 = vld [vmem:[%s2776_s25] sm:$0x3] }
  0x37   : > { %720 = vrot.lane.b32.xlu1 %v717_v12, %s3269_s0  ;;  %v843_v34 = vrot.slane %v834_v33, %v2778_v4  ;;  %v839_v35 = vrot.slane %v834_v33, %v2771_v3  ;;  %v852_v36 = vld [vmem:[%s2776_s25] sm:$0x3] }
  0x38   : > { %718 = vrot.lane.b32.xlu0 %v713_v13, %s3269_s0  ;;  %s3275_s0 = smov 122   ;;  %v861_v37 = vrot.slane %v852_v36, %v2778_v4  ;;  %v857_v38 = vrot.slane %v852_v36, %v2771_v3  ;;  %v870_v39 = vld [vmem:[%s2776_s25] sm:$0x3] }
  0x39   : > { %v879_v40 = vrot.slane %v870_v39, %v2778_v4  ;;  %v875_v41 = vrot.slane %v870_v39, %v2771_v3  ;;  %v888_v42 = vld [vmem:[%s2776_s25] sm:$0x3] }
  0x3a   : > { %v897_v44 = vrot.slane %v888_v42, %v2778_v4  ;;  %v893_v45 = vrot.slane %v888_v42, %v2771_v3  ;;  %v906_v46 = vld [vmem:[%s2776_s25] sm:$0x3]  ;;  %s2600_s25 = smov 114  }
  0x3b   : > { %738 = vrot.lane.b32.xlu1 %v735_v15, %s3271_s30  ;;  %v915_v47 = vrot.slane %v906_v46, %v2778_v4  ;;  %v911_v48 = vrot.slane %v906_v46, %v2771_v3 }
  0x3c   : > { %736 = vrot.lane.b32.xlu0 %v731_v16, %s3271_s30  ;;  %s3277_s30 = smov 121  }
  0x3f   : > { %756 = vrot.lane.b32.xlu1 %v753_v19, %s3273_s24 }
  0x40   : > { %754 = vrot.lane.b32.xlu0 %v749_v20, %s3273_s24  ;;  %s3279_s24 = smov 120  }
  0x43   : > { %774 = vrot.lane.b32.xlu1 %v771_v22, %s3275_s0 }
  0x44   : > { %772 = vrot.lane.b32.xlu0 %v767_v23, %s3275_s0  ;;  %s3283_s0 = smov 119  }
  0x47   : > { %792 = vrot.lane.b32.xlu1 %v789_v25, %s3277_s30 }
  0x48   : > { %790 = vrot.lane.b32.xlu0 %v785_v26, %s3277_s30  ;;  %s3281_s30 = smov 118  }
  0x4b   : > { %810 = vrot.lane.b32.xlu1 %v807_v28, %s3279_s24 }
  0x4c   : > { %808 = vrot.lane.b32.xlu0 %v803_v29, %s3279_s24  ;;  %s2594_s24 = smov 117  }
  0x4f   : > { %828 = vrot.lane.b32.xlu1 %v825_v31, %s3283_s0 }
  0x50   : > { %826 = vrot.lane.b32.xlu0 %v821_v32, %s3283_s0  ;;  %s2597_s0 = smov 115  }
  0x53   : > { %846 = vrot.lane.b32.xlu1 %v843_v34, %s3281_s30  ;;  %v924_v34 = vld [vmem:[%s3320_s4] sm:$0xff]  ;;  %s3323_s4 = smov 123  }
  0x54   : > { %844 = vrot.lane.b32.xlu0 %v839_v35, %s3281_s30  ;;  %s2596_s30 = smov 116  }
  0x57   : > { %864 = vrot.lane.b32.xlu1 %v861_v37, %s2594_s24 }
  0x58   : > { %862 = vrot.lane.b32.xlu0 %v857_v38, %s2594_s24  ;;  %s3287_s24 = smov 5  }
  0x5b   : > { %882 = vrot.lane.b32.xlu1 %v879_v40, %s2596_s30 }
  0x5c   : > { %880 = vrot.lane.b32.xlu0 %v875_v41, %s2596_s30 }
  0x5f   : > { %900 = vrot.lane.b32.xlu1 %v897_v44, %s2597_s0 }
  0x60   : > { %898 = vrot.lane.b32.xlu0 %v893_v45, %s2597_s0  ;;  %s2875_s0 = sand.u32 1, %s2574_s21   ;;  %v1150_v45 = vld [vmem:[%s3329_s7] sm:$0xff]  ;;  %s3332_s7 = smov 5  }
  0x61   : > { %s2878_s30 = sshll.u32 %s2875_s0, 3  ;;  %s3333_s21 = smov 127  }
  0x62   : > { %s3297_s27 = scalar_lea.vmem [#allocation7], %s2878_s30 }
  0x63   : > { %918 = vrot.lane.b32.xlu1 %v915_v47, %s2600_s25 }
  0x64   : > { %916 = vrot.lane.b32.xlu0 %v911_v48, %s2600_s25  ;;  %s3286_s25 = scalar_lea.vmem [#allocation5], %s2878_s30 }
  0x68   : > { %930 = vperm.xlu0 %2398, %v927_v50  }
  0xa1   : > { %v701_v52 = vpop.permute.xlu1 %700 }
  0xa2   : > { %v683_v53 = vpop.permute.xlu0 %682 }
  0xa5   : > { %v703_v54 = vpop.permute.xlu1 %702 }
  0xa6   : > { %v685_v55 = vpop.permute.xlu0 %684  ;;  %v705_v56 = vsel %vm704_vm1, %v701_v52, %v703_v54 }
  0xa7   : > { %v687_v57 = vsel %vm686_vm2, %v683_v53, %v685_v55  ;;  %707 = vst [vmem:[#allocation3 + $0x2] sm:$0x1] %v705_v56 }
  0xa8   : > { %689 = vst [vmem:[#allocation3 + $0x1] sm:$0x1] %v687_v57 }
  0xa9   : > { %v721_v58 = vpop.permute.xlu1 %720 }
  0xaa   : > { %v719_v59 = vpop.permute.xlu0 %718 }
  0xab   : > { %v723_v60 = vsel %vm722_vm3, %v719_v59, %v721_v58 }
  0xac   : > { %725 = vst [vmem:[#allocation3 + $0x3] sm:$0x1] %v723_v60 }
  0xad   : > { %v739_v61 = vpop.permute.xlu1 %738 }
  0xae   : > { %v737_v62 = vpop.permute.xlu0 %736 }
  0xaf   : > { %v741_v63 = vsel %vm740_vm4, %v737_v62, %v739_v61 }
  0xb0   : > { %743 = vst [vmem:[#allocation3 + $0x4] sm:$0x1] %v741_v63 }
  0xb1   : > { %v757_v0 = vpop.permute.xlu1 %756 }
  0xb2   : > { %v755_v1 = vpop.permute.xlu0 %754 }
  0xb3   : > { %v759_v2 = vsel %vm758_vm5, %v755_v1, %v757_v0 }
  0xb4   : > { %761 = vst [vmem:[#allocation3 + $0x5] sm:$0x1] %v759_v2 }
  0xb5   : > { %v775_v4 = vpop.permute.xlu1 %774 }
  0xb6   : > { %v773_v5 = vpop.permute.xlu0 %772 }
  0xb7   : > { %v777_v6 = vsel %vm776_vm6, %v773_v5, %v775_v4 }
  0xb8   : > { %779 = vst [vmem:[#allocation3 + $0x6] sm:$0x1] %v777_v6 }
  0xb9   : > { %v793_v7 = vpop.permute.xlu1 %792 }
  0xba   : > { %v791_v8 = vpop.permute.xlu0 %790 }
  0xbb   : > { %v795_v9 = vsel %vm794_vm7, %v791_v8, %v793_v7 }
  0xbc   : > { %797 = vst [vmem:[#allocation3 + $0x7] sm:$0x1] %v795_v9 }
  0xbd   : > { %v811_v10 = vpop.permute.xlu1 %810 }
  0xbe   : > { %v809_v11 = vpop.permute.xlu0 %808 }
  0xbf   : > { %v813_v12 = vsel %vm812_vm8, %v809_v11, %v811_v10 }
  0xc0   : > { %815 = vst [vmem:[#allocation3 + $0x8] sm:$0x1] %v813_v12 }
  0xc1   : > { %v829_v13 = vpop.permute.xlu1 %828 }
  0xc2   : > { %v827_v14 = vpop.permute.xlu0 %826 }
  0xc3   : > { %v831_v15 = vsel %vm830_vm9, %v827_v14, %v829_v13  ;;  %v925_v31 = vld [vmem:[#allocation3] sm:$0xff] }
  0xc4   : > { %833 = vst [vmem:[#allocation3 + $0x9] sm:$0x1] %v831_v15 }
  0xc5   : > { %v847_v16 = vpop.permute.xlu1 %846 }
  0xc6   : > { %v845_v17 = vpop.permute.xlu0 %844 }
  0xc7   : > { %v849_v18 = vsel %vm3285_vm10, %v845_v17, %v847_v16 }
  0xc8   : > { %851 = vst [vmem:[#allocation3 + $0xa] sm:$0x1] %v849_v18  ;;  %v1138_v18 = vld [vmem:[%s3330_s6] sm:$0xff] }
  0xc9   : > { %v865_v19 = vpop.permute.xlu1 %864 }
  0xca   : > { %v863_v20 = vpop.permute.xlu0 %862 }
  0xcb   : > { %v867_v21 = vsel %vm866_vm11, %v863_v20, %v865_v19  ;;  %vm2602_vm11 = vmmov 1  }
  0xcc   : > { %869 = vst [vmem:[#allocation3 + $0xb] sm:$0x1] %v867_v21  ;;  %vm2266_vm10 = vmpackc.low %vm937_vm15, %vm2602_vm11  ;;  %vm1024_vm15 = vcmask 39936   ;;  %vm1156_vm11 = vcmask 719872  }
  0xcd   : > { %v883_v22 = vpop.permute.xlu1 %882 }
  0xce   : > { %v881_v23 = vpop.permute.xlu0 %880 }
  0xcf   : > { %v885_v24 = vsel %vm884_vm12, %v881_v23, %v883_v22  ;;  %vm933_vm12 = vcmask 121856  }
  0xd0   : > { %887 = vst [vmem:[#allocation3 + $0xc] sm:$0x1] %v885_v24 }
  0xd1   : > { %v901_v25 = vpop.permute.xlu1 %900 }
  0xd2   : > { %v899_v26 = vpop.permute.xlu0 %898 }
  0xd3   : > { %v903_v27 = vsel %vm902_vm13, %v899_v26, %v901_v25  ;;  %vm1016_vm13 = vcmask 80896  }
  0xd4   : > { %905 = vst [vmem:[#allocation3 + $0xd] sm:$0x1] %v903_v27  ;;  %1017 = vst.msk [vmem:[#allocation2 + $0x8] sm:$0xff] %vm1016_vm13, %v2599_v49 }
  0xd5   : > { %v919_v28 = vpop.permute.xlu1 %918  ;;  %1617 = vst.msk [vmem:[#allocation2 + $0x18] sm:$0xff] %vm1016_vm13, %v2599_v49 }
  0xd6   : > { %v917_v29 = vpop.permute.xlu0 %916 }
  0xd7   : > { %v921_v30 = vsel %vm920_vm14, %v917_v29, %v919_v28  ;;  %vm1022_vm14 = vcmask 1047592   ;;  %v1366_v29 = vld [vmem:[%s3335_s9] sm:$0xff] }
  0xd8   : > { %923 = vst [vmem:[#allocation3 + $0xe] sm:$0x1] %v921_v30 }
  0xdf   : > { %v926_v32 = vld [vmem:[#allocation3 + $0x8] sm:$0x7f] }
  0xe0   : > { %v2265_v33 = vpack.c.bf16 %v926_v32, %v925_v31 }
  0xe2   : > { %2267 = vmatpush3.bf16.msk.msra.mxu1 %vm2266_vm10, %v2265_v33 }
  0xe3   : > { %2268 = vmatprep.subr.bf16.mxu1 %v2595_v43 }
  0xe5   : > { %2184 = vmatmul.mubr.msk.f32.vlgmr.msra.gmra.mrb[0].mxu1 %vm933_vm12, %v924_v34  ;;  %vm3331_vm12 = vcmask 965632  }
  0xe6   : > { %2208 = vmatprep.mubr.msk.f32.mxu1 %vm2598_vm0, %v2599_v49 }
  0xe7   : > { %v931_v35 = vpop.permute.xlu0 %930 }
 0x1b8   : > { %v1007_v36 = vpop.f32.mrb[0].mxu1 }
 0x1b9   : > { %v1008_v37 = vadd.f32 %v1007_v36, %v931_v35  ;;  %v2185_v38 = vpop.f32.mrb[1].mxu1 }
 0x1bb   : > { %v1012_v39 = vmul.f32 0.2, %v1008_v37  ;;  %vm1011_vm10 = vcmp.gt.f32.partialorder %v1008_v37, 0.0 }
 0x1bd   : > { %v1013_v40 = vsel %vm1011_vm10, %v1008_v37, %v1012_v39 }
 0x1be   : > { %1019 = vrot.lane.b32.xlu1 %v1013_v40, %s3287_s24  ;;  %1014 = vst [vmem:[%s3286_s25] sm:$0xff] %v1013_v40  ;;  %s3321_s25 = smov 125   ;;  %s3322_s24 = smov 124  }
 0x230   : > { %v1020_v41 = vpop.permute.xlu1 %1019 }
 0x231   : > { %1023 = vst.msk [vmem:[#allocation2] sm:$0xff] %vm1022_vm14, %v1020_v41 }
 0x232   : > { %1025 = vst.msk [vmem:[#allocation2 + $0x8] sm:$0xff] %vm1024_vm15, %v1020_v41 }
 0x238   : > { %v1026_v42 = vld [vmem:[#allocation2] sm:$0xff] }
 0x239   : > { %v1029_v44 = vld [vmem:[#allocation2 + $0x8] sm:$0xff]  ;;  %1032 = vrot.lane.b32.xlu1 %v1026_v42, %s3288_s29  ;;  %1234 = vst [vmem:[#allocation2] sm:$0xff] %v2599_v49 }
 0x23a   : > { %1034 = vrot.lane.b32.xlu0 %v1029_v44, %s3288_s29  ;;  %1235 = vst.msk [vmem:[#allocation2 + $0x8] sm:$0xff] %vm1016_vm13, %v2599_v49  ;;  %s3324_s29 = smov 122  }
 0x23d   : > { %1043 = vrot.lane.b32.xlu1 %v1026_v42, %s3290_s2 }
 0x23e   : > { %1045 = vrot.lane.b32.xlu0 %v1029_v44, %s3290_s2  ;;  %s3326_s2 = smov 120  }
 0x241   : > { %1054 = vrot.lane.b32.xlu1 %v1026_v42, %s3321_s25 }
 0x242   : > { %1056 = vrot.lane.b32.xlu0 %v1029_v44, %s3321_s25 }
 0x245   : > { %1065 = vrot.lane.b32.xlu1 %v1026_v42, %s3322_s24 }
 0x246   : > { %1067 = vrot.lane.b32.xlu0 %v1029_v44, %s3322_s24 }
 0x249   : > { %1076 = vrot.lane.b32.xlu1 %v1026_v42, %s3323_s4 }
 0x24a   : > { %1078 = vrot.lane.b32.xlu0 %v1029_v44, %s3323_s4 }
 0x24d   : > { %1087 = vrot.lane.b32.xlu1 %v1026_v42, %s3324_s29 }
 0x24e   : > { %1089 = vrot.lane.b32.xlu0 %v1029_v44, %s3324_s29 }
 0x251   : > { %1098 = vrot.lane.b32.xlu1 %v1026_v42, %s3325_s5 }
 0x252   : > { %1100 = vrot.lane.b32.xlu0 %v1029_v44, %s3325_s5 }
 0x255   : > { %1109 = vrot.lane.b32.xlu1 %v1026_v42, %s3326_s2 }
 0x256   : > { %1111 = vrot.lane.b32.xlu0 %v1029_v44, %s3326_s2 }
 0x259   : > { %1120 = vrot.lane.b32.xlu1 %v1026_v42, %s3327_s3 }
 0x25a   : > { %1122 = vrot.lane.b32.xlu0 %v1029_v44, %s3327_s3 }
 0x25d   : > { %1131 = vrot.lane.b32.xlu1 %v1026_v42, %s3328_s1 }
 0x25e   : > { %1133 = vrot.lane.b32.xlu0 %v1029_v44, %s3328_s1 }
 0x261   : > { %1153 = vperm.xlu1 %2399, %v1150_v45  }
 0x2ab   : > { %v1033_v47 = vpop.permute.xlu1 %1032 }
 0x2ac   : > { %v1035_v46 = vpop.permute.xlu0 %1034 }
 0x2ad   : > { %v1036_v48 = vsel %vm686_vm2, %v1033_v47, %v1035_v46 }
 0x2ae   : > { %v2269_v50 = vpack.c.bf16 %v1036_v48, %v1026_v42 }
 0x2af   : > { %v1044_v52 = vpop.permute.xlu1 %1043 }
 0x2b0   : > { %v1046_v51 = vpop.permute.xlu0 %1045  ;;  %2270 = vmatpush3.bf16.msra.mxu1 %v2269_v50 }
 0x2b1   : > { %2271 = vmatprep.subr.bf16.mxu1 %v2595_v43  ;;  %v1047_v55 = vsel %vm704_vm1, %v1044_v52, %v1046_v51 }
 0x2b3   : > { %v1055_v54 = vpop.permute.xlu1 %1054 }
 0x2b4   : > { %v1057_v53 = vpop.permute.xlu0 %1056 }
 0x2b5   : > { %v1058_v56 = vsel %vm722_vm3, %v1055_v54, %v1057_v53 }
 0x2b6   : > { %v2272_v57 = vpack.c.bf16 %v1058_v56, %v1047_v55 }
 0x2b7   : > { %v1066_v59 = vpop.permute.xlu1 %1065 }
 0x2b8   : > { %v1068_v58 = vpop.permute.xlu0 %1067  ;;  %2273 = vmatpush3.bf16.msra.mxu1 %v2272_v57 }
 0x2b9   : > { %2274 = vmatprep.subr.bf16.mxu1 %v2595_v43  ;;  %v1069_v62 = vsel %vm740_vm4, %v1066_v59, %v1068_v58 }
 0x2bb   : > { %v1077_v61 = vpop.permute.xlu1 %1076 }
 0x2bc   : > { %v1079_v60 = vpop.permute.xlu0 %1078 }
 0x2bd   : > { %v1080_v63 = vsel %vm758_vm5, %v1077_v61, %v1079_v60 }
 0x2be   : > { %v2275_v0 = vpack.c.bf16 %v1080_v63, %v1069_v62 }
 0x2bf   : > { %v1088_v2 = vpop.permute.xlu1 %1087 }
 0x2c0   : > { %v1090_v1 = vpop.permute.xlu0 %1089  ;;  %2276 = vmatpush3.bf16.msra.mxu1 %v2275_v0 }
 0x2c1   : > { %2277 = vmatprep.subr.bf16.mxu1 %v2595_v43  ;;  %v1091_v6 = vsel %vm776_vm6, %v1088_v2, %v1090_v1 }
 0x2c3   : > { %v1099_v5 = vpop.permute.xlu1 %1098 }
 0x2c4   : > { %v1101_v4 = vpop.permute.xlu0 %1100 }
 0x2c5   : > { %v1102_v7 = vsel %vm794_vm7, %v1099_v5, %v1101_v4  ;;  %v1354_v4 = vld [vmem:[%s3337_s8] sm:$0xff] }
 0x2c6   : > { %v2278_v8 = vpack.c.bf16 %v1102_v7, %v1091_v6 }
 0x2c7   : > { %v1110_v10 = vpop.permute.xlu1 %1109 }
 0x2c8   : > { %v1112_v9 = vpop.permute.xlu0 %1111  ;;  %2279 = vmatpush3.bf16.msra.mxu1 %v2278_v8 }
 0x2c9   : > { %2280 = vmatprep.subr.bf16.mxu1 %v2595_v43  ;;  %v1113_v13 = vsel %vm812_vm8, %v1110_v10, %v1112_v9 }
 0x2cb   : > { %v1121_v12 = vpop.permute.xlu1 %1120 }
 0x2cc   : > { %v1123_v11 = vpop.permute.xlu0 %1122 }
 0x2cd   : > { %v1124_v14 = vsel %vm830_vm9, %v1121_v12, %v1123_v11 }
 0x2ce   : > { %v2281_v15 = vpack.c.bf16 %v1124_v14, %v1113_v13  ;;  %v1505_v14 = vld [vmem:[%s3338_s10] sm:$0xff] }
 0x2cf   : > { %v1132_v17 = vpop.permute.xlu1 %1131 }
 0x2d0   : > { %v1134_v16 = vpop.permute.xlu0 %1133  ;;  %2282 = vmatpush3.bf16.msra.mxu1 %v2281_v15  ;;  %v1513_v15 = vld [vmem:[%s3339_s11 + $0x8] sm:$0xff] }
 0x2d1   : > { %2206 = vmatprep.subr.mxu1 %v2599_v49  ;;  %v1135_v19 = vsel %vm3331_vm12, %v1132_v17, %v1134_v16  ;;  %v1512_v16 = vld [vmem:[%s3339_s11] sm:$0xff] }
 0x2d4   : > { %2207 = vmatpush3.msra.mxu1 %v1135_v19 }
 0x2d5   : > { %2209 = vmatmul.mubr.msk.f32.vlgmr.msra.gmra.mrb[2].mxu1 %vm1156_vm11, %v1138_v18 }
 0x2e0   : > { %v1154_v20 = vpop.permute.xlu1 %1153 }
 0x3a8   : > { %v1226_v21 = vpop.f32.mrb[2].mxu1 }
 0x3a9   : > { %v1227_v22 = vadd.f32 %v1226_v21, %v1154_v20  ;;  %v2210_v23 = vpop.f32.mrb[3].mxu1 }
 0x3ab   : > { %v1231_v24 = vmul.f32 0.2, %v1227_v22  ;;  %vm1230_vm10 = vcmp.gt.f32.partialorder %v1227_v22, 0.0 }
 0x3ad   : > { %v1232_v25 = vsel %vm1230_vm10, %v1227_v22, %v1231_v24 }
 0x3ae   : > { %1237 = vrot.lane.b32.xlu0 %v1232_v25, %s3332_s7  ;;  %1233 = vst [vmem:[%s3297_s27] sm:$0xff] %v1232_v25  ;;  %s3334_s7 = smov 126   ;;  %s3068_s27 = sshll.u32 %s2737_s13, 7 }
 0x420   : > { %v1238_v26 = vpop.permute.xlu0 %1237 }
 0x421   : > { %1240 = vst.msk [vmem:[#allocation2] sm:$0xff] %vm1022_vm14, %v1238_v26  ;;  %vm1775_vm14 = vcmask 74752  }
 0x422   : > { %1241 = vst.msk [vmem:[#allocation2 + $0x8] sm:$0xff] %vm1024_vm15, %v1238_v26  ;;  %vm1787_vm15 = vcmask 516096  }
 0x428   : > { %v1242_v27 = vld [vmem:[#allocation2] sm:$0xff] }
 0x429   : > { %v1245_v28 = vld [vmem:[#allocation2 + $0x8] sm:$0xff]  ;;  %1248 = vrot.lane.b32.xlu1 %v1242_v27, %s3333_s21  ;;  %1449 = vst [vmem:[#allocation2] sm:$0xff] %v2599_v49 }
 0x42a   : > { %1250 = vrot.lane.b32.xlu0 %v1245_v28, %s3333_s21  ;;  %1450 = vst.msk [vmem:[#allocation2 + $0x8] sm:$0xff] %vm1016_vm13, %v2599_v49 }
 0x42d   : > { %1259 = vrot.lane.b32.xlu1 %v1242_v27, %s3334_s7 }
 0x42e   : > { %1261 = vrot.lane.b32.xlu0 %v1245_v28, %s3334_s7 }
 0x431   : > { %1270 = vrot.lane.b32.xlu1 %v1242_v27, %s3321_s25 }
 0x432   : > { %1272 = vrot.lane.b32.xlu0 %v1245_v28, %s3321_s25 }
 0x435   : > { %1281 = vrot.lane.b32.xlu1 %v1242_v27, %s3322_s24 }
 0x436   : > { %1283 = vrot.lane.b32.xlu0 %v1245_v28, %s3322_s24 }
 0x439   : > { %1292 = vrot.lane.b32.xlu1 %v1242_v27, %s3323_s4 }
 0x43a   : > { %1294 = vrot.lane.b32.xlu0 %v1245_v28, %s3323_s4  ;;  %s2605_s4 = smov 1  }
 0x43d   : > { %1303 = vrot.lane.b32.xlu1 %v1242_v27, %s3324_s29 }
 0x43e   : > { %1305 = vrot.lane.b32.xlu0 %v1245_v28, %s3324_s29  ;;  %s2116_s29 = sshll.u32 %s2875_s0, 4 }
 0x43f   : > { %s3019_s23 = scalar_lea.vmem [#allocation10], %s2116_s29 }
 0x441   : > { %1314 = vrot.lane.b32.xlu1 %v1242_v27, %s3325_s5 }
 0x442   : > { %1316 = vrot.lane.b32.xlu0 %v1245_v28, %s3325_s5  ;;  %s3341_s5 = sld [smem:[#allocation23_spill]] }
 0x445   : > { %1325 = vrot.lane.b32.xlu1 %v1242_v27, %s3326_s2 }
 0x446   : > { %1327 = vrot.lane.b32.xlu0 %v1245_v28, %s3326_s2  ;;  %s2604_s2 = smov 2  }
 0x449   : > { %1336 = vrot.lane.b32.xlu1 %v1242_v27, %s3327_s3 }
 0x44a   : > { %1338 = vrot.lane.b32.xlu0 %v1245_v28, %s3327_s3  ;;  %s638_s3 = scalar_lea.vmem [#allocation9], %s2878_s30 }
 0x44d   : > { %1347 = vrot.lane.b32.xlu1 %v1242_v27, %s3328_s1 }
 0x44e   : > { %1349 = vrot.lane.b32.xlu0 %v1245_v28, %s3328_s1  ;;  %s666_s1 = scalar_lea.vmem %s3341_s5, %s2768_s28  ;;  %s669_s5 = scalar_lea.vmem %s3267_s19, %s2768_s28 }
 0x451   : > { %1369 = vperm.xlu1 %2399, %v1366_v29  }
 0x49b   : > { %v1249_v31 = vpop.permute.xlu1 %1248 }
 0x49c   : > { %v1251_v30 = vpop.permute.xlu0 %1250 }
 0x49d   : > { %v1252_v32 = vsel %vm686_vm2, %v1249_v31, %v1251_v30  ;;  %v1506_v31 = vld [vmem:[%s3338_s10 + $0x8] sm:$0xff] }
 0x49e   : > { %v2284_v33 = vpack.c.bf16 %v1252_v32, %v1242_v27 }
 0x49f   : > { %v1260_v35 = vpop.permute.xlu1 %1259 }
 0x4a0   : > { %v1262_v34 = vpop.permute.xlu0 %1261  ;;  %2285 = vmatpush3.bf16.msra.mxu0 %v2284_v33 }
 0x4a1   : > { %2286 = vmatprep.subr.bf16.mxu0 %v2595_v43  ;;  %v1263_v38 = vsel %vm704_vm1, %v1260_v35, %v1262_v34 }
 0x4a3   : > { %v1271_v37 = vpop.permute.xlu1 %1270 }
 0x4a4   : > { %v1273_v36 = vpop.permute.xlu0 %1272 }
 0x4a5   : > { %v1274_v39 = vsel %vm722_vm3, %v1271_v37, %v1273_v36 }
 0x4a6   : > { %v2287_v40 = vpack.c.bf16 %v1274_v39, %v1263_v38 }
 0x4a7   : > { %v1282_v42 = vpop.permute.xlu1 %1281 }
 0x4a8   : > { %v1284_v41 = vpop.permute.xlu0 %1283  ;;  %2288 = vmatpush3.bf16.msra.mxu0 %v2287_v40 }
 0x4a9   : > { %2289 = vmatprep.subr.bf16.mxu0 %v2595_v43  ;;  %v1285_v46 = vsel %vm740_vm4, %v1282_v42, %v1284_v41 }
 0x4ab   : > { %v1293_v45 = vpop.permute.xlu1 %1292 }
 0x4ac   : > { %v1295_v44 = vpop.permute.xlu0 %1294 }
 0x4ad   : > { %v1296_v47 = vsel %vm758_vm5, %v1293_v45, %v1295_v44  ;;  %vm3336_vm5 = vmmov %vm3331_vm12 }
 0x4ae   : > { %v2290_v48 = vpack.c.bf16 %v1296_v47, %v1285_v46 }
 0x4af   : > { %v1304_v51 = vpop.permute.xlu1 %1303 }
 0x4b0   : > { %v1306_v50 = vpop.permute.xlu0 %1305  ;;  %2291 = vmatpush3.bf16.msra.mxu0 %v2290_v48 }
 0x4b1   : > { %v1307_v52 = vsel %vm776_vm6, %v1304_v51, %v1306_v50  ;;  %2292 = vmatprep.subr.bf16.mxu0 %v2595_v43 }
 0x4b3   : > { %v1315_v54 = vpop.permute.xlu1 %1314 }
 0x4b4   : > { %v1317_v53 = vpop.permute.xlu0 %1316 }
 0x4b5   : > { %v1318_v55 = vsel %vm794_vm7, %v1315_v54, %v1317_v53  ;;  %vm1455_vm7 = vcmask 1047568  }
 0x4b6   : > { %v2293_v56 = vpack.c.bf16 %v1318_v55, %v1307_v52  ;;  %v1687_v52 = vld [vmem:[#allocation4] sm:$0x1] }
 0x4b7   : > { %v1326_v58 = vpop.permute.xlu1 %1325 }
 0x4b8   : > { %v1328_v57 = vpop.permute.xlu0 %1327  ;;  %2294 = vmatpush3.bf16.msra.mxu0 %v2293_v56 }
 0x4b9   : > { %v1329_v59 = vsel %vm812_vm8, %v1326_v58, %v1328_v57  ;;  %2295 = vmatprep.subr.bf16.mxu0 %v2595_v43  ;;  %vm1457_vm8 = vcmask 15360  }
 0x4bb   : > { %v1337_v61 = vpop.permute.xlu1 %1336 }
 0x4bc   : > { %v1339_v60 = vpop.permute.xlu0 %1338 }
 0x4bd   : > { %v1340_v62 = vsel %vm830_vm9, %v1337_v61, %v1339_v60  ;;  %vm1626_vm9 = vcmask 1047560  }
 0x4be   : > { %v2296_v63 = vpack.c.bf16 %v1340_v62, %v1329_v59 }
 0x4bf   : > { %v1348_v1 = vpop.permute.xlu1 %1347 }
 0x4c0   : > { %v1350_v0 = vpop.permute.xlu0 %1349  ;;  %2297 = vmatpush3.bf16.msra.mxu0 %v2296_v63 }
 0x4c1   : > { %v1351_v2 = vsel %vm3336_vm5, %v1348_v1, %v1350_v0  ;;  %2231 = vmatprep.subr.mxu0 %v2599_v49 }
 0x4c4   : > { %2232 = vmatpush3.msra.mxu0 %v1351_v2 }
 0x4c5   : > { %2234 = vmatmul.mubr.msk.f32.vlgmr.msra.gmra.mrb[0].mxu0 %vm1156_vm11, %v1354_v4  ;;  %2306 = vmatprep.subr.bf16.mxu0 %v2595_v43  ;;  %vm1785_vm11 = vcmask 524296  }
 0x4c6   : > { %2261 = vmatprep.mubr.msk.f32.mxu0 %vm2598_vm0, %v2599_v49  ;;  %vm1524_vm0 = vcmask 326656  }
 0x4c7   : > { %2246 = vmatprep.mubr.msk.f32.mxu1 %vm1524_vm0, %v1505_v14 }
 0x4d0   : > { %v1370_v5 = vpop.permute.xlu1 %1369 }
 0x598   : > { %v1441_v6 = vpop.f32.mrb[0].mxu0 }
 0x599   : > { %v1442_v7 = vadd.f32 %v1441_v6, %v1370_v5  ;;  %v2235_v8 = vpop.f32.mrb[1].mxu0  ;;  %v1680_v6 = vld [vmem:[%s3260_s12] sm:$0x1] }
 0x59b   : > { %v1446_v9 = vmul.f32 0.2, %v1442_v7  ;;  %vm1445_vm6 = vcmp.gt.f32.partialorder %v1442_v7, 0.0 }
 0x59d   : > { %v1447_v10 = vsel %vm1445_vm6, %v1442_v7, %v1446_v9 }
 0x59e   : > { %1452 = vrot.lane.b32.xlu0 %v1447_v10, %s2604_s2  ;;  %1448 = vst [vmem:[%s638_s3] sm:$0xff] %v1447_v10  ;;  %s3340_s2 = sld [smem:[#allocation22_spill]] }
 0x610   : > { %v1453_v11 = vpop.permute.xlu0 %1452 }
 0x611   : > { %1456 = vst.msk [vmem:[#allocation2] sm:$0xff] %vm1455_vm7, %v1453_v11 }
 0x612   : > { %1458 = vst.msk [vmem:[#allocation2 + $0x8] sm:$0xff] %vm1457_vm8, %v1453_v11 }
 0x618   : > { %v1459_v12 = vld [vmem:[#allocation2] sm:$0xff] }
 0x619   : > { %v1462_v13 = vld [vmem:[#allocation2 + $0x8] sm:$0xff]  ;;  %1465 = vrot.lane.b32.xlu1 %v1459_v12, %s3333_s21  ;;  %1614 = vst [vmem:[#allocation2] sm:$0xff] %v2599_v49 }
 0x61a   : > { %1467 = vrot.lane.b32.xlu0 %v1462_v13, %s3333_s21  ;;  %1615 = vst.msk [vmem:[#allocation2 + $0x8] sm:$0xff] %vm1016_vm13, %v2599_v49  ;;  %vm1628_vm13 = vcmask 7168  }
 0x61d   : > { %1476 = vrot.lane.b32.xlu1 %v1459_v12, %s3334_s7 }
 0x61e   : > { %1478 = vrot.lane.b32.xlu0 %v1462_v13, %s3334_s7 }
 0x621   : > { %1487 = vrot.lane.b32.xlu1 %v1459_v12, %s3321_s25 }
 0x622   : > { %1489 = vrot.lane.b32.xlu0 %v1462_v13, %s3321_s25 }
 0x625   : > { %1498 = vrot.lane.b32.xlu1 %v1459_v12, %s3322_s24 }
 0x626   : > { %1500 = vrot.lane.b32.xlu0 %v1462_v13, %s3322_s24  ;;  %s663_s24 = scalar_lea.vmem %s3340_s2, %s2768_s28  ;;  %s3343_s28 = scalar_lea.vmem [#allocation7], %s2878_s30 }
 0x627   : > { %v1772_v47 = vld [vmem:[%s663_s24] sm:$0x1]  ;;  %s3342_s24 = sld [smem:[#allocation24_spill]]  ;;  %s1850_s25 = sshll.u32 %s3343_s28, 4  ;;  %s3082_s25 = int_to_ptr.vmem [resolvable:$true] %s1850_s25 }
 0x628   : > { %s2400_s29 = scalar_lea.vmem %s3082_s25, 128 }
 0x629   : > { %1516 = vperm.xlu1 %2399, %v1512_v16   ;;  %p2401_p11 = scmp.ne.s32.totalorder %s3082_s25, %s2400_s29 }
 0x62a   : > { %1521 = vperm.xlu0 %2398, %v1513_v15  }
 0x62b   : > { %p2402_p12 = pnand %p2401_p11, %p2756_p5 }
 0x62d   : > { %v1798_v11 = vld [vmem:[%s3342_s24] sm:$0x1]  ;;  %s3078_s24 = scalar_lea.hbm %s3263_s15, %s3068_s27  ;;  %p2403_p13 = pneg %p2402_p12 }
 0x68b   : > { %v1466_v18 = vpop.permute.xlu1 %1465 }
 0x68c   : > { %v1468_v17 = vpop.permute.xlu0 %1467 }
 0x68d   : > { %v1469_v19 = vsel %vm686_vm2, %v1466_v18, %v1468_v17 }
 0x68e   : > { %v2298_v20 = vpack.c.bf16 %v1469_v19, %v1459_v12 }
 0x68f   : > { %v1477_v22 = vpop.permute.xlu1 %1476 }
 0x690   : > { %v1479_v21 = vpop.permute.xlu0 %1478  ;;  %2299 = vmatprep.subr.bf16.mxu1 %v2298_v20 }
 0x691   : > { %2301 = vmatpush3.bf16.msra.mxu1 %v2298_v20  ;;  %v1480_v25 = vsel %vm704_vm1, %v1477_v22, %v1479_v21 }
 0x693   : > { %v1488_v24 = vpop.permute.xlu1 %1487 }
 0x694   : > { %v1490_v23 = vpop.permute.xlu0 %1489 }
 0x695   : > { %v1491_v26 = vsel %vm722_vm3, %v1488_v24, %v1490_v23 }
 0x696   : > { %v2302_v27 = vpack.c.bf16 %v1491_v26, %v1480_v25 }
 0x697   : > { %v1499_v29 = vpop.permute.xlu1 %1498 }
 0x698   : > { %v1501_v28 = vpop.permute.xlu0 %1500  ;;  %2303 = vmatprep.subr.bf16.mxu1 %v2302_v27 }
 0x699   : > { %v1502_v30 = vsel %vm740_vm4, %v1499_v29, %v1501_v28  ;;  %2305 = vmatpush3.bf16.msra.mxu1 %v2302_v27 }
 0x69a   : > { %2244 = vmatprep.subr.mxu1 %v1502_v30 }
 0x69d   : > { %2245 = vmatpush3.msra.mxu1 %v1502_v30 }
 0x69e   : > { %2247 = vmatmul.mubr.msk.f32.vlgmr.msra.gmra.mrb[4].mxu1 %vm1524_vm0, %v1506_v31 }
 0x6a8   : > { %v1517_v34 = vpop.permute.xlu1 %1516 }
 0x6a9   : > { %v1522_v32 = vpop.permute.xlu0 %1521 }
 0x771   : > { %v2248_v33 = vpop.f32.mrb[4].mxu1 }
 0x772   : > { %v1603_v35 = vadd.f32 %v2248_v33, %v1522_v32  ;;  %v1597_v36 = vpop.f32.mrb[5].mxu1 }
 0x773   : > { %v1598_v37 = vadd.f32 %v1597_v36, %v1517_v34 }
 0x774   : > { %v1609_v38 = vmul.f32 0.2, %v1603_v35  ;;  %vm1607_vm3 = vcmp.gt.f32.partialorder %v1603_v35, 0.0 }
 0x775   : > { %v1608_v39 = vmul.f32 0.2, %v1598_v37  ;;  %vm1606_vm4 = vcmp.gt.f32.partialorder %v1598_v37, 0.0 }
 0x776   : > { %v1611_v40 = vsel %vm1607_vm3, %v1603_v35, %v1609_v38 }
 0x777   : > { %1622 = vrot.lane.b32.xlu0 %v1611_v40, %s2605_s4  ;;  %1613 = vst [vmem:[%s3019_s23 + $0x8] sm:$0xff] %v1611_v40  ;;  %v1610_v41 = vsel %vm1606_vm4, %v1598_v37, %v1608_v39 }
 0x778   : > { %1620 = vrot.lane.b32.xlu1 %v1610_v41, %s2605_s4  ;;  %1612 = vst [vmem:[%s3019_s23] sm:$0xff] %v1610_v41 }
 0x7e9   : > { %v1623_v42 = vpop.permute.xlu0 %1622 }
 0x7ea   : > { %1630 = vst.msk [vmem:[#allocation2 + $0x10] sm:$0xff] %vm1626_vm9, %v1623_v42  ;;  %v1621_v44 = vpop.permute.xlu1 %1620 }
 0x7eb   : > { %1631 = vst.msk [vmem:[#allocation2 + $0x18] sm:$0xff] %vm1628_vm13, %v1623_v42  ;;  %1629 = vst.msk [vmem:[#allocation2 + $0x8] sm:$0xff] %vm1628_vm13, %v1621_v44 }
 0x7ec   : > { %1627 = vst.msk [vmem:[#allocation2] sm:$0xff] %vm1626_vm9, %v1621_v44 }
 0x7f1   : > { %v1633_v45 = vld [vmem:[#allocation2 + $0x10] sm:$0xff] }
 0x7f2   : > { %v1639_v46 = vld [vmem:[#allocation2 + $0x18] sm:$0xff]  ;;  %1635 = vst [vmem:[#allocation3 + $0x8] sm:$0xff] %v1633_v45  ;;  %1648 = vrot.lane.b32.xlu1 %v1633_v45, %s3333_s21  ;;  %v1637_v48 = vld [vmem:[#allocation2 + $0x8] sm:$0xff] }
 0x7f3   : > { %1650 = vrot.lane.b32.xlu0 %v1639_v46, %s3333_s21  ;;  %v1636_v50 = vld [vmem:[#allocation2] sm:$0xff]  ;;  %1776 = vst.msk [vmem:[#allocation2 + $0x8] sm:$0x3] %vm1775_vm14, %v2599_v49 }
 0x7f4   : > { %1634 = vst [vmem:[#allocation3] sm:$0xff] %v1636_v50  ;;  %1774 = vst [vmem:[#allocation2] sm:$0x3] %v2599_v49  ;;  %v2307_v51 = vpack.c.bf16 %v1633_v45, %v1636_v50  ;;  %v1773_v49 = vld [vmem:[%s666_s1] sm:$0x1]  ;;  %s1863_s1 = sshll.u32 %s638_s3, 4  ;;  %s3070_s1 = int_to_ptr.vmem [resolvable:$true] %s1863_s1 }
 0x7f5   : > { %1788 = vst.msk [vmem:[#allocation2 + $0x1] sm:$0x1] %vm1787_vm15, %v1772_v47  ;;  %v1781_v53 = vrot.slane %v1773_v49, %v2771_v3 }
 0x7f6   : > { %2308 = vmatpush3.bf16.msra.mxu0 %v2307_v51  ;;  %1644 = vrot.lane.b32.xlu1 %v1636_v50, %s3333_s21 }
 0x7f7   : > { %1646 = vrot.lane.b32.xlu0 %v1637_v48, %s3333_s21  ;;  %2309 = vmatprep.subr.bf16.mxu0 %v2595_v43 }
 0x7fa   : > { %1666 = vrot.lane.b32.xlu1 %v1636_v50, %s3334_s7 }
 0x7fb   : > { %1668 = vrot.lane.b32.xlu0 %v1637_v48, %s3334_s7 }
 0x7fc   : > { %v1790_v54 = vld [vmem:[#allocation2 + $0x1] ss:$0 sm:$0xff] }
 0x7fe   : > { %1670 = vrot.lane.b32.xlu1 %v1633_v45, %s3334_s7 }
 0x7ff   : > { %1672 = vrot.lane.b32.xlu0 %v1639_v46, %s3334_s7  ;;  %s3298_s7 = sand.u32 1, %s2737_s13  }
 0x802   : > { %1782 = vrot.lane.b32.xlu1 %v1781_v53, %s2605_s4 }
 0x803   : > { %1690 = vperm.xlu0 %2398, %v1687_v52  }
 0x806   : > { %1794 = vrot.lane.b32.xlu1 %v1790_v54, %s3333_s21  ;;  %s1876_s21 = sshll.u32 %s3019_s23, 4  ;;  %s3087_s23 = scalar_lea.sflag [#allocation8], %s3298_s7  ;;  %s3072_s21 = int_to_ptr.vmem [resolvable:$true] %s1876_s21 }
 0x864   : > { %v1649_v56 = vpop.permute.xlu1 %1648 }
 0x865   : > { %v1651_v55 = vpop.permute.xlu0 %1650 }
 0x866   : > { %v1653_v57 = vsel %vm686_vm2, %v1649_v56, %v1651_v55 }
 0x868   : > { %v1645_v59 = vpop.permute.xlu1 %1644 }
 0x869   : > { %v1647_v58 = vpop.permute.xlu0 %1646 }
 0x86a   : > { %v1652_v60 = vsel %vm686_vm2, %v1645_v59, %v1647_v58  ;;  %vm1697_vm2 = vcmask 392192  }
 0x86b   : > { %v2310_v61 = vpack.c.bf16 %v1653_v57, %v1652_v60 }
 0x86c   : > { %v1667_v63 = vpop.permute.xlu1 %1666 }
 0x86d   : > { %v1669_v62 = vpop.permute.xlu0 %1668  ;;  %2311 = vmatpush3.bf16.msra.mxu0 %v2310_v61 }
 0x86e   : > { %v1674_v0 = vsel %vm704_vm1, %v1667_v63, %v1669_v62  ;;  %2312 = vmatprep.subr.bf16.mxu0 %v2595_v43 }
 0x870   : > { %v1671_v2 = vpop.permute.xlu1 %1670 }
 0x871   : > { %v1673_v1 = vpop.permute.xlu0 %1672 }
 0x872   : > { %v1675_v4 = vsel %vm704_vm1, %v1671_v2, %v1673_v1 }
 0x873   : > { %v2313_v5 = vpack.c.bf16 %v1675_v4, %v1674_v0 }
 0x874   : > { %v1783_v7 = vpop.permute.xlu1 %1782 }
 0x875   : > { %2314 = vmatpush3.bf16.msra.mxu0 %v2313_v5  ;;  %1786 = vst.msk [vmem:[#allocation2] sm:$0x1] %vm1785_vm11, %v1783_v7 }
 0x878   : > { %2262 = vmatmul.mubr.msk.f32.vlgmr.msra.gmra.mrb[2].mxu0 %vm1697_vm2, %v1680_v6  ;;  %v1795_v9 = vpop.permute.xlu1 %1794 }
 0x87c   : > { %v1789_v43 = vld [vmem:[#allocation2] ss:$0 sm:$0xff] }
 0x87d   : > { %v1791_v8 = vadd.f32 %v1789_v43, %v1772_v47 }
 0x87f   : > { %v1792_v10 = vadd.f32 %v1791_v8, %v1773_v49 }
 0x881   : > { %v1797_v12 = vadd.f32 %v1795_v9, %v1792_v10 }
 0x883   : > { %v1799_v13 = vmul.f32 %v1798_v11, %v1797_v12 }
 0x885   : > { %1800 = vst.msk [vmem:[%s669_s5] sm:$0x1] %vm1787_vm15, %v1799_v13  ;;  %s2606_s5 = smov [#allocation7]  }
 0x886   : > { %s2404_s4 = sshll.u32 %s2606_s5, 4  ;;  %s2405_s4 = int_to_ptr.vmem [resolvable:$false] %s2404_s4 }
 0x887   : > { %s2406_s2 = scalar_lea.vmem %s2405_s4, 256  ;;  %p2407_p0 = scmp.lt.s32.totalorder %s3082_s25, %s2405_s4 }
 0x888   : > { %p2408_p1 = scmp.lt.s32.totalorder %s2406_s2, %s2400_s29 }
 0x88a   : > { %p2409_p2 = por %p2408_p1, %p2407_p0 }
 0x88c   : > { %p2410_p3 = pnand %p2409_p2, %p2403_p13 }
 0x88e   : > { %2413 = shalt.err (!%p2410_p3)
}
 0x88f   : > { %s2414_s28 = scalar_lea.hbm %s3078_s24, 128  ;;  %s2418_s5 = scalar_lea.hbm %s3263_s15, 256 }
 0x890   : > { %p2415_p4 = scmp.ne.s32.totalorder %s3078_s24, %s2414_s28  ;;  %p2419_p9 = scmp.lt.u32.totalorder %s3078_s24, %s3263_s15 }
 0x891   : > { %p2420_p10 = scmp.lt.u32.totalorder %s2418_s5, %s2414_s28  ;;  %p2422_p12 = scmp.lt.u32.totalorder %s2414_s28, %s3078_s24 }
 0x892   : > { %p2416_p7 = pnand %p2415_p4, %p2756_p5 }
 0x893   : > { %p2421_p11 = por %p2420_p10, %p2419_p9 }
 0x894   : > { %p2417_p8 = pneg %p2416_p7 }
 0x895   : > { %p2423_p13 = por %p2422_p12, %p2421_p11 }
 0x897   : > { %p2424_p0 = pnand %p2423_p13, %p2417_p8 }
 0x899   : > { %2427 = shalt.err (!%p2424_p0)
}
 0x89a   : > { %2316 = dma.vmem_to_hbm [thread:$0]  (%p2756_p5), %s3082_s25, 128, %s3078_s24, %s3087_s23  }
 0x89b   : > { %s3344_s6 = sshll.u32 %s2737_s13, 8  ;;  %s3345_s2 = sand.u32 1, %s2737_s13  }
 0x89c   : > { %s3116_s29 = scalar_lea.hbm %s3265_s17, %s3344_s6  ;;  %s3120_s28 = scalar_lea.sflag [#allocation11], %s3345_s2 }
 0x89d   : > { %s2428_s5 = scalar_lea.vmem %s3072_s21, 256  ;;  %s2607_s4 = smov [#allocation10]  }
 0x89e   : > { %p2429_p1 = scmp.ne.s32.totalorder %s3072_s21, %s2428_s5  ;;  %s2432_s8 = sshll.u32 %s2607_s4, 4  ;;  %s2433_s8 = int_to_ptr.vmem [resolvable:$false] %s2432_s8 }
 0x89f   : > { %s2434_s9 = scalar_lea.vmem %s2433_s8, 512  ;;  %p2435_p4 = scmp.lt.s32.totalorder %s3072_s21, %s2433_s8 }
 0x8a0   : > { %p2430_p2 = pnand %p2429_p1, %p2756_p5  ;;  %p2436_p7 = scmp.lt.s32.totalorder %s2434_s9, %s2428_s5 }
 0x8a2   : > { %p2431_p3 = pneg %p2430_p2  ;;  %p2437_p8 = por %p2436_p7, %p2435_p4 }
 0x8a4   : > { %p2438_p9 = pnand %p2437_p8, %p2431_p3 }
 0x8a6   : > { %2441 = shalt.err (!%p2438_p9)
}
 0x8a7   : > { %s2442_s24 = scalar_lea.hbm %s3116_s29, 256  ;;  %s2446_s7 = scalar_lea.hbm %s3265_s17, 512 }
 0x8a8   : > { %p2443_p10 = scmp.ne.s32.totalorder %s3116_s29, %s2442_s24  ;;  %p2447_p13 = scmp.lt.u32.totalorder %s3116_s29, %s3265_s17 }
 0x8a9   : > { %p2448_p0 = scmp.lt.u32.totalorder %s2446_s7, %s2442_s24  ;;  %p2450_p2 = scmp.lt.u32.totalorder %s2442_s24, %s3116_s29 }
 0x8aa   : > { %p2444_p11 = pnand %p2443_p10, %p2756_p5 }
 0x8ab   : > { %p2449_p1 = por %p2448_p0, %p2447_p13 }
 0x8ac   : > { %p2445_p12 = pneg %p2444_p11 }
 0x8ad   : > { %p2451_p3 = por %p2450_p2, %p2449_p1 }
 0x8af   : > { %p2452_p4 = pnand %p2451_p3, %p2445_p12 }
 0x8b1   : > { %2455 = shalt.err (!%p2452_p4)
}
 0x8b2   : > { %s2608_s9 = smov 128   ;;  %s2609_s2 = smov 8  }
 0x8b3   : > { %2318 = dma.vmem_to_hbm [thread:$0]  (%p2756_p5), %s3072_s21, 256, %s3116_s29, %s3120_s28, %s2608_s9, %s2608_s9, %s2609_s2  }
 0x8b4   : > { %s3148_s24 = scalar_lea.hbm %s3262_s14, %s3068_s27  ;;  %s3346_s25 = scalar_lea.vmem [#allocation5], %s2878_s30 }
 0x8b5   : > { %s1837_s6 = sshll.u32 %s3346_s25, 4  ;;  %s3158_s8 = scalar_lea.hbm %s3264_s16, %s3068_s27  ;;  %s3152_s6 = int_to_ptr.vmem [resolvable:$true] %s1837_s6 }
 0x8b6   : > { %s1802_s10 = scalar_lea.sflag [#allocation6], %s2875_s0  ;;  %s2456_s11 = scalar_lea.vmem %s3152_s6, 128 }
 0x8b7   : > { %p2457_p7 = scmp.ne.s32.totalorder %s3152_s6, %s2456_s11  ;;  %s2610_s21 = smov [#allocation5]  }
 0x8b8   : > { %s2460_s29 = sshll.u32 %s2610_s21, 4  ;;  %s2461_s29 = int_to_ptr.vmem [resolvable:$false] %s2460_s29 }
 0x8b9   : > { %p2458_p8 = pnand %p2457_p7, %p2756_p5  ;;  %s2462_s30 = scalar_lea.vmem %s2461_s29, 256 }
 0x8ba   : > { %p2463_p10 = scmp.lt.s32.totalorder %s3152_s6, %s2461_s29  ;;  %p2464_p11 = scmp.lt.s32.totalorder %s2462_s30, %s2456_s11 }
 0x8bb   : > { %p2459_p9 = pneg %p2458_p8 }
 0x8bc   : > { %p2465_p12 = por %p2464_p11, %p2463_p10 }
 0x8be   : > { %p2466_p13 = pnand %p2465_p12, %p2459_p9 }
 0x8c0   : > { %2469 = shalt.err (!%p2466_p13)
}
 0x8c1   : > { %s2470_s27 = scalar_lea.hbm %s3148_s24, 128  ;;  %s2474_s5 = scalar_lea.hbm %s3262_s14, 256 }
 0x8c2   : > { %p2471_p0 = scmp.ne.s32.totalorder %s3148_s24, %s2470_s27  ;;  %p2475_p3 = scmp.lt.u32.totalorder %s3148_s24, %s3262_s14 }
 0x8c3   : > { %p2476_p4 = scmp.lt.u32.totalorder %s2474_s5, %s2470_s27  ;;  %p2478_p8 = scmp.lt.u32.totalorder %s2470_s27, %s3148_s24 }
 0x8c4   : > { %p2472_p1 = pnand %p2471_p0, %p2756_p5 }
 0x8c5   : > { %p2477_p7 = por %p2476_p4, %p2475_p3 }
 0x8c6   : > { %p2473_p2 = pneg %p2472_p1 }
 0x8c7   : > { %p2479_p9 = por %p2478_p8, %p2477_p7 }
 0x8c9   : > { %p2480_p10 = pnand %p2479_p9, %p2473_p2 }
 0x8cb   : > { %2483 = shalt.err (!%p2480_p10)
}
 0x8cc   : > { %2315 = dma.vmem_to_hbm [thread:$0]  (%p2756_p5), %s3152_s6, 128, %s3148_s24, %s1802_s10  }
 0x8cd   : > { %s2484_s11 = scalar_lea.vmem %s3070_s1, 128  ;;  %s2611_s7 = smov [#allocation9]  }
 0x8ce   : > { %p2485_p11 = scmp.ne.s32.totalorder %s3070_s1, %s2484_s11  ;;  %s2488_s3 = sshll.u32 %s2611_s7, 4  ;;  %s2489_s3 = int_to_ptr.vmem [resolvable:$false] %s2488_s3 }
 0x8cf   : > { %s2490_s21 = scalar_lea.vmem %s2489_s3, 256  ;;  %p2491_p0 = scmp.lt.s32.totalorder %s3070_s1, %s2489_s3 }
 0x8d0   : > { %p2486_p12 = pnand %p2485_p11, %p2756_p5  ;;  %p2492_p1 = scmp.lt.s32.totalorder %s2490_s21, %s2484_s11 }
 0x8d2   : > { %p2487_p13 = pneg %p2486_p12  ;;  %p2493_p2 = por %p2492_p1, %p2491_p0 }
 0x8d4   : > { %p2494_p3 = pnand %p2493_p2, %p2487_p13 }
 0x8d6   : > { %2497 = shalt.err (!%p2494_p3)
}
 0x8d7   : > { %s2498_s10 = scalar_lea.hbm %s3158_s8, 128  ;;  %s2502_s29 = scalar_lea.hbm %s3264_s16, 256 }
 0x8d8   : > { %p2499_p4 = scmp.ne.s32.totalorder %s3158_s8, %s2498_s10  ;;  %p2503_p9 = scmp.lt.u32.totalorder %s3158_s8, %s3264_s16 }
 0x8d9   : > { %p2504_p10 = scmp.lt.u32.totalorder %s2502_s29, %s2498_s10  ;;  %p2506_p12 = scmp.lt.u32.totalorder %s2498_s10, %s3158_s8 }
 0x8da   : > { %p2500_p7 = pnand %p2499_p4, %p2756_p5 }
 0x8db   : > { %p2505_p11 = por %p2504_p10, %p2503_p9 }
 0x8dc   : > { %p2501_p8 = pneg %p2500_p7 }
 0x8dd   : > { %p2507_p13 = por %p2506_p12, %p2505_p11 }
 0x8df   : > { %p2508_p0 = pnand %p2507_p13, %p2501_p8 }
 0x8e1   : > { %2511 = shalt.err (!%p2508_p0)
}
 0x8e2   : > { %2317 = dma.vmem_to_hbm [thread:$0]  (%p2756_p5), %s3070_s1, 128, %s3158_s8, %s3087_s23   ;;  %v1691_v14 = vpop.permute.xlu0 %1690 }
 0x8e3   : > { %s651_s9 = scalar_lea.vmem [#allocation12], %s2875_s0  ;;  %s2134_s5 = sshll.u32 %s2737_s13, 4  ;;  %v1696_v15 = vrot.slane %v1691_v14, %v2771_v3 }
 0x8e4   : > { %s1892_s2 = sshll.u32 %s651_s9, 4  ;;  %s1890_s11 = scalar_lea.hbm %s3266_s18, %s2134_s5  ;;  %s3207_s2 = int_to_ptr.vmem [resolvable:$true] %s1892_s2 }
 0x8e5   : > { %s2512_s1 = scalar_lea.vmem %s3207_s2, 16  ;;  %s2612_s13 = smov [#allocation12]  }
 0x8e6   : > { %p2513_p1 = scmp.ne.s32.totalorder %s3207_s2, %s2512_s1  ;;  %s2516_s0 = sshll.u32 %s2612_s13, 4  ;;  %s2517_s0 = int_to_ptr.vmem [resolvable:$false] %s2516_s0 }
 0x8e7   : > { %s2518_s23 = scalar_lea.vmem %s2517_s0, 32  ;;  %p2519_p4 = scmp.lt.s32.totalorder %s3207_s2, %s2517_s0 }
 0x8e8   : > { %p2514_p2 = pnand %p2513_p1, %p2756_p5  ;;  %p2520_p7 = scmp.lt.s32.totalorder %s2518_s23, %s2512_s1 }
 0x8ea   : > { %p2515_p3 = pneg %p2514_p2  ;;  %p2521_p8 = por %p2520_p7, %p2519_p4 }
 0x8ec   : > { %p2522_p9 = pnand %p2521_p8, %p2515_p3 }
 0x94b   : > { %v1767_v16 = vpop.f32.mrb[2].mxu0 }
 0x94c   : > { %v1768_v17 = vadd.f32 %v1767_v16, %v1696_v15  ;;  %v2263_v18 = vpop.f32.mrb[3].mxu0 }
 0x94e   : > { %1771 = vst [vmem:[%s651_s9] sm:$0x1] %v1768_v17 }
 0x94f   : > { %2525 = shalt.err (!%p2522_p9)
}
 0x950   : > { %s2526_s8 = scalar_lea.hbm %s1890_s11, 16  ;;  %s2530_s21 = scalar_lea.hbm %s3266_s18, 32 }
 0x951   : > { %p2527_p10 = scmp.ne.s32.totalorder %s1890_s11, %s2526_s8  ;;  %p2531_p13 = scmp.lt.u32.totalorder %s1890_s11, %s3266_s18 }
 0x952   : > { %p2532_p0 = scmp.lt.u32.totalorder %s2530_s21, %s2526_s8  ;;  %p2534_p2 = scmp.lt.u32.totalorder %s2526_s8, %s1890_s11 }
 0x953   : > { %p2528_p11 = pnand %p2527_p10, %p2756_p5 }
 0x954   : > { %p2533_p1 = por %p2532_p0, %p2531_p13 }
 0x955   : > { %p2529_p12 = pneg %p2528_p11 }
 0x956   : > { %p2535_p4 = por %p2534_p2, %p2533_p1 }
 0x958   : > { %p2536_p3 = pnand %p2535_p4, %p2529_p12 }
 0x95a   : > { %2539 = shalt.err (!%p2536_p3)
}
 0x95b   : > { %2319 = dma.vmem_to_hbm [thread:$0]  (%p2756_p5), %s3207_s2, 16, %s1890_s11, %s3120_s28  }
 0x95c PF: > { %p2341_p7 = scmp.ge.s32.totalorder %s2582_s22, 2  ;;  %s1907_s29 = sand.u32 1, %s2570_s20  }
 0x95d   : > { %s1908_s30 = scalar_lea.sflag [#allocation6], %s1907_s29 }
 0x95e   : > { %p2326_p8 = pnand %p2341_p7, %p2760_p6 }
 0x960   : > { %2557 = dma.done.wait (!%p2326_p8), %s1908_s30, 128  }
 0x961   : > { %2559 = vsyncadd (!%p2326_p8), %s1908_s30, 4294967168  ;;  %s3348_s27 = sadd.s32 4294967294, %s2582_s22  }
 0x962   : > { %s1916_s9 = sand.u32 1, %s3348_s27  }
 0x963   : > { %s1917_s5 = scalar_lea.sflag [#allocation8], %s1916_s9 }
 0x964   : > { %2561 = dma.done.wait (!%p2326_p8), %s1917_s5, 256  }
 0x965   : > { %2563 = vsyncadd (!%p2326_p8), %s1917_s5, 4294967040  ;;  %s1935_s26 = scalar_lea.sflag [#allocation11], %s1916_s9 }
 0x966   : > { %2565 = dma.done.wait (!%p2326_p8), %s1935_s26, 272  }
 0x967   : > { %2567 = vsyncadd (!%p2326_p8), %s1935_s26, 4294967024  ;;  %s3349_s22 = sld [smem:[#allocation18_spill]]  ;;  %s3350_s20 = sld [smem:[#allocation16_spill]] }
 0x968   : > { %s3351_s21 = sld [smem:[#allocation17_spill]]  ;;  %s3352_s1 = sld [smem:[#allocation19_spill]] }
 0x96d   : > { %p38_p5 = scmp.ge.s32.totalorder %s3349_s22, 4  }
 0x96f   :  { %40 = sbr.rel (!%p38_p5) target bundleno = 20 (0x14), region = 193 }
 0x976   :  { %1954 = vsyncpa [#allocation6], 1 }
 0x977   :  { %1956 = vsyncpa [#allocation6 + $0x1], 1 }
 0x978   :  { %1957 = vsyncpa [#allocation8], 1 }
 0x979   :  { %1959 = vsyncpa [#allocation8 + $0x1], 1 }
 0x97a   :  { %1960 = vsyncpa [#allocation11], 1 }
 0x97b   :  { %1962 = vsyncpa [#allocation11 + $0x1], 1 }

// kernel: _discriminator_forward.3
= control target key start
LH: loop header
LB: loop body
LE: loop exit
PB: predicated region body
PF: predicated region fallthrough
CT: control target
= control target key end

     0   :  { %s2645_s0 = inlined_call_operand.vmem [shape: f32[2,1,78], index: 0, kind: input, shape index: {}]   ;;  %s2646_s1 = inlined_call_operand.vmem [shape: f32[8,15], index: 1, kind: input, shape index: {}]   ;;  %s2647_s2 = inlined_call_operand.vmem [shape: f32[8,1], index: 2, kind: input, shape index: {}]   ;;  %s2648_s3 = inlined_call_operand.vmem [shape: f32[8,88], index: 3, kind: input, shape index: {}]   ;;  %s2649_s4 = inlined_call_operand.vmem [shape: f32[8,1], index: 4, kind: input, shape index: {}]   ;;  %s2650_s5 = inlined_call_operand.vmem [shape: f32[8,88], index: 5, kind: input, shape index: {}]   ;;  %s2651_s6 = inlined_call_operand.vmem [shape: f32[8,1], index: 6, kind: input, shape index: {}]   ;;  %s2652_s7 = inlined_call_operand.vmem [shape: f32[16,40], index: 7, kind: input, shape index: {}]   ;;  %s2653_s8 = inlined_call_operand.vmem [shape: f32[16,1], index: 8, kind: input, shape index: {}]   ;;  %s2654_s9 = inlined_call_operand.vmem [shape: f32[1,48], index: 9, kind: input, shape index: {}]   ;;  %s2655_s10 = inlined_call_operand.<no memory space> [shape: f32[1,1], index: 10, kind: input, shape index: {}]   ;;  %s2656_s11 = inlined_call_operand.hbm [shape: f32[2,8,64], index: 11, kind: output, shape index: {0}]   ;;  %s2657_s12 = inlined_call_operand.hbm [shape: f32[2,8,64], index: 12, kind: output, shape index: {1}]   ;;  %s2658_s13 = inlined_call_operand.hbm [shape: f32[2,8,64], index: 13, kind: output, shape index: {2}]   ;;  %s2659_s14 = inlined_call_operand.hbm [shape: f32[2,16,64], index: 14, kind: output, shape index: {3}]   ;;  %s2660_s15 = inlined_call_operand.hbm [shape: f32[2,1,64], index: 15, kind: output, shape index: {4}]  }
   0x1   :  { %2688 = sst [smem:[#allocation18_spill]] %s2645_s0  ;;  %v21_v0 = vstv %s2655_s10 }
   0x2   :  { %2689 = sst [smem:[#allocation19_spill]] %s2646_s1  ;;  %22 = vst [vmem:[#allocation4] sm:$0x1] %v21_v0 }
   0x3   :  { %2690 = sst [smem:[#allocation20_spill]] %s2647_s2 }
   0x4   :  { %2691 = sst [smem:[#allocation21_spill]] %s2648_s3 }
   0x5   :  { %2692 = sst [smem:[#allocation22_spill]] %s2649_s4 }
   0x6   :  { %2693 = sst [smem:[#allocation23_spill]] %s2650_s5 }
   0x7   :  { %2694 = sst [smem:[#allocation24_spill]] %s2651_s6 }
   0x8   :  { %2695 = sst [smem:[#allocation25_spill]] %s2652_s7 }
   0x9   :  { %2696 = sst [smem:[#allocation26_spill]] %s2653_s8 }
   0xa   :  { %2697 = sst [smem:[#allocation27_spill]] %s2654_s9 }
   0xb   :  { %23 = vsyncpa [#allocation6], 0 }
   0xc   :  { %25 = vsyncpa [#allocation6 + $0x1], 0 }
   0xd   :  { %26 = vsyncpa [#allocation8], 0 }
   0xe   :  { %28 = vsyncpa [#allocation8 + $0x1], 0 }
   0xf   :  { %29 = vsyncpa [#allocation11], 0 }
  0x10   :  { %31 = vsyncpa [#allocation11 + $0x1], 0  ;;  %s2224_s20 = smov 0   ;;  %s2226_s21 = smov 0  }
  0x11   :  { %s2228_s22 = smov 0   ;;  %s2230_s23 = smov 0  }
  0x12 LB: > { %2698 = sst [smem:[#allocation16_spill]] %s2106_s22  ;;  %s2245_s10 = sadd.s32 4294967295, %s2110_s23   ;;  %s2110_s23 = sphi %s2230_s23, %s2733_s23   ;;  %s2106_s22 = sphi %s2228_s22, %s2730_s22   ;;  %s2102_s21 = sphi %s2226_s21, %s2732_s21   ;;  %s2098_s20 = sphi %s2224_s20, %s2731_s20  }
  0x13   : > { %s2661_s24 = sadd.s32 4294967294, %s2110_s23   ;;  %s2249_s25 = sadd.s32 1, %s2110_s23  }
  0x14   : > { %s280_s26 = sadd.s32 1, %s2106_s22  ;;  %s277_s27 = ssub.s32 %s2110_s23, %s2249_s25 }
  0x15   : > { %p290_p0 = scmp.ne.s32.totalorder %s2106_s22, %s2102_s21  ;;  %p278_p1 = scmp.eq.s32.totalorder %s277_s27, 0 }
  0x16   : > { %p291_p2 = scmp.eq.s32.totalorder %s2245_s10, 1  ;;  %p296_p3 = scmp.ne.s32.totalorder %s2102_s21, %s2098_s20 }
  0x17   : > { %p297_p4 = scmp.eq.s32.totalorder %s2661_s24, 1  ;;  %p1627_p7 = scmp.ge.s32.totalorder %s2110_s23, 1 }
  0x18   : > { %s2262_s28 = scalar_select %p278_p1, %s2106_s22, %s280_s26  }
  0x19   : > { %p2264_p5 = por %p291_p2, %p290_p0  ;;  %p2268_p6 = por %p297_p4, %p296_p3 }
  0x1a   : > { %2699 = sst [smem:[#allocation17_spill]] %s2262_s28  ;;  %p455_p8 = scmp.lt.s32.totalorder %s2110_s23, 3 }
  0x1c   : > { %p456_p9 = pnand %p1627_p7, %p455_p8 }
  0x1d   : > { %p520_p10 = scmp.lt.s32.totalorder (!%p456_p9), %s2245_s10, 1  ;;  %s2702_s0 = sld [smem:[#allocation18_spill]] (!%p456_p9)  ;;  %vm524_vm0 = vcmask (!%p456_p9), 516096   ;;  %v2120_v3 = vmov (!%p456_p9), 0.0|0.0   ;;  %vm2125_vm1 = vmmov (!%p456_p9), 0   ;;  %v2126_v4 = vmov (!%p456_p9), 0.0  }
  0x1e   : > { %459 = sbr.rel (%p456_p9) target bundleno = 2341 (0x925), region = 64  ;;  %s2663_s26 = smov (!%p456_p9), 125   ;;  %1792 = vmatprep.subr.bf16.mxu1 (!%p456_p9), %v2120_v3  ;;  %1811 = vmatprep.subr.bf16.mxu0 (!%p456_p9), %v2120_v3  ;;  %v2129_v5 = vmov (!%p456_p9), 0   ;;  %vm679_vm2 = vcmask (!%p456_p9), 1046528   ;;  %vm2130_vm3 = vmmov (!%p456_p9), 1   ;;  %vm675_vm5 = vcmask (!%p456_p9), 121856  }
  0x1f   : > { %s2681_s27 = smov (!%p456_p9), 127   ;;  %s2683_s24 = smov (!%p456_p9), 124   ;;  %1711 = vmatprep.mubr.msk.f32.mxu1 (!%p456_p9), %vm2125_vm1, %v2126_v4  ;;  %1761 = vmatprep.mubr.msk.f32.mxu0 (!%p456_p9), %vm2125_vm1, %v2126_v4  ;;  %vm1794_vm4 = vmpackc.low (!%p456_p9), %vm679_vm2, %vm2130_vm3  ;;  %vm758_vm6 = vcmask (!%p456_p9), 605184   ;;  %vm756_vm8 = vcmask (!%p456_p9), 523264   ;;  %vm764_vm9 = vcmask (!%p456_p9), 564264   ;;  %vm846_vm10 = vcmask (!%p456_p9), 719872  }
  0x20   : > { %s2679_s28 = smov (!%p456_p9), 126   ;;  %s2665_s22 = smov (!%p456_p9), 122   ;;  %1926 = vset.pattern.permute.xlu0 (!%p456_p9), %v2129_v5  ;;  %1927 = vset.pattern.permute.xlu1 (!%p456_p9), %v2129_v5  ;;  %759 = vst.msk [vmem:[#allocation2] sm:$0xff] (!%p456_p9), %vm758_vm6, %v2126_v4  ;;  %1230 = vst.msk [vmem:[#allocation2 + $0x8] sm:$0xff] (!%p456_p9), %vm758_vm6, %v2126_v4  ;;  %vm1092_vm13 = vcmask (!%p456_p9), 539664   ;;  %vm1139_vm14 = vcmask (!%p456_p9), 326656  }
  0x21   : > { %s2671_s17 = smov (!%p456_p9), 120   ;;  %s2669_s18 = smov (!%p456_p9), 121   ;;  %vm1239_vm2 = vcmask (!%p456_p9), 531464   ;;  %vm1287_vm3 = vcmask (!%p456_p9), 392192  }
  0x22   : > { %s2703_s2 = sld [smem:[#allocation20_spill]] (!%p456_p9)  ;;  %s2704_s1 = sld [smem:[#allocation19_spill]] (!%p456_p9) }
  0x23   : > { %s2712_s4 = sld [smem:[#allocation22_spill]] (!%p456_p9)  ;;  %s2713_s3 = sld [smem:[#allocation21_spill]] (!%p456_p9) }
  0x24   : > { %s2718_s6 = sld [smem:[#allocation24_spill]] (!%p456_p9)  ;;  %s2719_s5 = sld [smem:[#allocation23_spill]] (!%p456_p9) }
  0x25   : > { %s521_s16 = scalar_select %p520_p10, %s2245_s10, 1 }
  0x26   : > { %s2720_s8 = sld [smem:[#allocation26_spill]]  ;;  %s2721_s7 = sld [smem:[#allocation25_spill]] }
  0x27   : > { %s522_s19 = scalar_lea.vmem %s2702_s0, %s521_s16  ;;  %s2667_s16 = smov 123  }
  0x28   : > { %v1634_v1 = vld [vmem:[%s522_s19] ss:$0 sm:$0xff]  ;;  %s2709_s0 = smov 121   ;;  %s2722_s9 = sld [smem:[#allocation27_spill]] }
  0x29   : > { %v523_v2 = vld [vmem:[%s522_s19] sm:$0x1]  ;;  %552 = vrot.lane.b32.xlu1 %v1634_v1, %s2663_s26  ;;  %532 = vrot.lane.b32.xlu0 %v1634_v1, %s2681_s27  ;;  %s2673_s19 = smov 118   ;;  %s2675_s26 = smov 119  }
  0x2a   : > { %525 = vst.msk [vmem:[#allocation3] sm:$0x1] %vm524_vm0, %v523_v2  ;;  %v669_v6 = vld [vmem:[%s2703_s2] sm:$0xff]  ;;  %s2716_s2 = smov 127  }
  0x2b   : > { %v666_v24 = vld [vmem:[%s2704_s1] sm:$0xff]  ;;  %s2715_s1 = smov 126  }
  0x2c   : > { %v840_v33 = vld [vmem:[%s2712_s4] sm:$0xff] }
  0x2d   : > { %562 = vrot.lane.b32.xlu1 %v1634_v1, %s2683_s24  ;;  %542 = vrot.lane.b32.xlu0 %v1634_v1, %s2679_s28  ;;  %v828_v59 = vld [vmem:[%s2713_s3] sm:$0xff]  ;;  %s2717_s3 = smov 124  }
  0x31   : > { %582 = vrot.lane.b32.xlu1 %v1634_v1, %s2665_s22  ;;  %572 = vrot.lane.b32.xlu0 %v1634_v1, %s2667_s16  ;;  %s2123_s22 = smov 116   ;;  %s2124_s16 = smov 117  }
  0x35   : > { %602 = vrot.lane.b32.xlu1 %v1634_v1, %s2671_s17  ;;  %592 = vrot.lane.b32.xlu0 %v1634_v1, %s2669_s18  ;;  %s2127_s18 = smov 114   ;;  %s2128_s17 = smov 115  }
  0x39   : > { %622 = vrot.lane.b32.xlu1 %v1634_v1, %s2673_s19  ;;  %612 = vrot.lane.b32.xlu0 %v1634_v1, %s2675_s26  ;;  %s2706_s26 = smov 122  }
  0x3d   : > { %642 = vrot.lane.b32.xlu1 %v1634_v1, %s2123_s22  ;;  %632 = vrot.lane.b32.xlu0 %v1634_v1, %s2124_s16  ;;  %s2324_s16 = sand.u32 1, %s2102_s21   ;;  %s2705_s22 = smov 125  }
  0x41   : > { %662 = vrot.lane.b32.xlu1 %v1634_v1, %s2127_s18  ;;  %652 = vrot.lane.b32.xlu0 %v1634_v1, %s2128_s17  ;;  %s2327_s17 = sshll.u32 %s2324_s16, 3  ;;  %s2678_s18 = smov 5  }
  0x42   : > { %s2677_s19 = scalar_lea.vmem [#allocation5], %s2327_s17  ;;  %s2685_s4 = scalar_lea.vmem [#allocation7], %s2327_s17 }
  0x45   : > { %672 = vperm.xlu0 %1926, %v669_v6  }
  0x9b   : > { %v553_v7 = vpop.permute.xlu1 %552  ;;  %v533_v8 = vpop.permute.xlu0 %532 }
  0x9c   : > { %555 = vst.msk [vmem:[#allocation3 + $0x3] sm:$0x1] %vm524_vm0, %v553_v7  ;;  %535 = vst.msk [vmem:[#allocation3 + $0x1] sm:$0x1] %vm524_vm0, %v533_v8  ;;  %v1004_v7 = vld [vmem:[%s2718_s6] sm:$0xff] }
  0x9f   : > { %v563_v9 = vpop.permute.xlu1 %562  ;;  %v543_v10 = vpop.permute.xlu0 %542 }
  0xa0   : > { %565 = vst.msk [vmem:[#allocation3 + $0x4] sm:$0x1] %vm524_vm0, %v563_v9  ;;  %545 = vst.msk [vmem:[#allocation3 + $0x2] sm:$0x1] %vm524_vm0, %v543_v10 }
  0xa3   : > { %v583_v11 = vpop.permute.xlu1 %582  ;;  %v573_v12 = vpop.permute.xlu0 %572 }
  0xa4   : > { %585 = vst.msk [vmem:[#allocation3 + $0x6] sm:$0x1] %vm524_vm0, %v583_v11  ;;  %575 = vst.msk [vmem:[#allocation3 + $0x5] sm:$0x1] %vm524_vm0, %v573_v12 }
  0xa7   : > { %v603_v13 = vpop.permute.xlu1 %602  ;;  %v593_v14 = vpop.permute.xlu0 %592 }
  0xa8   : > { %605 = vst.msk [vmem:[#allocation3 + $0x8] sm:$0x1] %vm524_vm0, %v603_v13  ;;  %595 = vst.msk [vmem:[#allocation3 + $0x7] sm:$0x1] %vm524_vm0, %v593_v14 }
  0xab   : > { %v623_v15 = vpop.permute.xlu1 %622  ;;  %v613_v16 = vpop.permute.xlu0 %612 }
  0xac   : > { %625 = vst.msk [vmem:[#allocation3 + $0xa] sm:$0x1] %vm524_vm0, %v623_v15  ;;  %615 = vst.msk [vmem:[#allocation3 + $0x9] sm:$0x1] %vm524_vm0, %v613_v16 }
  0xaf   : > { %v643_v17 = vpop.permute.xlu1 %642  ;;  %v633_v18 = vpop.permute.xlu0 %632  ;;  %v667_v21 = vld [vmem:[#allocation3] sm:$0xff] }
  0xb0   : > { %645 = vst.msk [vmem:[#allocation3 + $0xc] sm:$0x1] %vm524_vm0, %v643_v17  ;;  %635 = vst.msk [vmem:[#allocation3 + $0xb] sm:$0x1] %vm524_vm0, %v633_v18 }
  0xb3   : > { %v663_v19 = vpop.permute.xlu1 %662  ;;  %v653_v20 = vpop.permute.xlu0 %652 }
  0xb4   : > { %665 = vst.msk [vmem:[#allocation3 + $0xe] sm:$0x1] %vm524_vm0, %v663_v19  ;;  %655 = vst.msk [vmem:[#allocation3 + $0xd] sm:$0x1] %vm524_vm0, %v653_v20 }
  0xbb   : > { %v668_v22 = vld [vmem:[#allocation3 + $0x8] sm:$0x7f] }
  0xbc   : > { %v1793_v23 = vpack.c.bf16 %v668_v22, %v667_v21 }
  0xbe   : > { %1795 = vmatpush3.bf16.msk.msra.mxu1 %vm1794_vm4, %v1793_v23 }
  0xbf   : > { %1796 = vmatprep.subr.bf16.mxu1 %v2120_v3 }
  0xc1   : > { %1712 = vmatmul.mubr.msk.f32.vlgmr.msra.gmra.mrb[0].mxu1 %vm675_vm5, %v666_v24 }
  0xc2   : > { %1736 = vmatprep.mubr.msk.f32.mxu1 %vm2125_vm1, %v2126_v4 }
  0xc4   : > { %v673_v25 = vpop.permute.xlu0 %672 }
 0x194   : > { %v749_v26 = vpop.f32.mrb[0].mxu1 }
 0x195   : > { %v750_v27 = vadd.f32 %v749_v26, %v673_v25  ;;  %v1713_v28 = vpop.f32.mrb[1].mxu1 }
 0x197   : > { %v754_v29 = vmul.f32 0.2, %v750_v27  ;;  %vm753_vm7 = vcmp.gt.f32.partialorder %v750_v27, 0.0 }
 0x199   : > { %v755_v30 = vsel %vm753_vm7, %v750_v27, %v754_v29 }
 0x19a   : > { %761 = vrot.lane.b32.xlu1 %v755_v30, %s2678_s18  ;;  %757 = vst.msk [vmem:[%s2677_s19] sm:$0xff] %vm756_vm8, %v755_v30  ;;  %s2707_s19 = smov 123   ;;  %s2708_s18 = smov 120  }
 0x20c   : > { %v762_v31 = vpop.permute.xlu1 %761 }
 0x20d   : > { %765 = vst.msk [vmem:[#allocation2] sm:$0xff] %vm764_vm9, %v762_v31 }
 0x214   : > { %v766_v32 = vld [vmem:[#allocation2] sm:$0xff] }
 0x215   : > { %776 = vrot.lane.b32.xlu0 %v766_v32, %s2679_s28  ;;  %770 = vrot.lane.b32.xlu1 %v766_v32, %s2681_s27  ;;  %924 = vst.msk [vmem:[#allocation2] sm:$0xff] %vm758_vm6, %v2126_v4  ;;  %s2710_s28 = smov 118   ;;  %s2711_s27 = smov 119  }
 0x216   : > { %767 = vst.msk [vmem:[#allocation3] sm:$0xff] %vm756_vm8, %v766_v32 }
 0x219   : > { %788 = vrot.lane.b32.xlu0 %v766_v32, %s2683_s24  ;;  %782 = vrot.lane.b32.xlu1 %v766_v32, %s2705_s22  ;;  %s2714_s24 = smov 5  }
 0x21d   : > { %800 = vrot.lane.b32.xlu0 %v766_v32, %s2706_s26  ;;  %794 = vrot.lane.b32.xlu1 %v766_v32, %s2707_s19  ;;  %v829_v40 = vld [vmem:[#allocation3] sm:$0xff] }
 0x221   : > { %812 = vrot.lane.b32.xlu0 %v766_v32, %s2708_s18  ;;  %806 = vrot.lane.b32.xlu1 %v766_v32, %s2709_s0 }
 0x225   : > { %824 = vrot.lane.b32.xlu0 %v766_v32, %s2710_s28  ;;  %818 = vrot.lane.b32.xlu1 %v766_v32, %s2711_s27 }
 0x229   : > { %843 = vperm.xlu1 %1927, %v840_v33   ;;  %v992_v33 = vld [vmem:[%s2719_s5] sm:$0xff] }
 0x287   : > { %v777_v34 = vpop.permute.xlu0 %776  ;;  %v771_v35 = vpop.permute.xlu1 %770 }
 0x288   : > { %779 = vst.msk [vmem:[#allocation3 + $0x10] sm:$0xff] %vm756_vm8, %v777_v34  ;;  %773 = vst.msk [vmem:[#allocation3 + $0x8] sm:$0xff] %vm756_vm8, %v771_v35 }
 0x28b   : > { %v789_v36 = vpop.permute.xlu0 %788  ;;  %v783_v37 = vpop.permute.xlu1 %782 }
 0x28c   : > { %791 = vst.msk [vmem:[#allocation3 + $0x20] sm:$0xff] %vm756_vm8, %v789_v36  ;;  %785 = vst.msk [vmem:[#allocation3 + $0x18] sm:$0xff] %vm756_vm8, %v783_v37 }
 0x28f   : > { %v801_v38 = vpop.permute.xlu0 %800  ;;  %v795_v39 = vpop.permute.xlu1 %794  ;;  %v830_v41 = vld [vmem:[#allocation3 + $0x8] sm:$0xff]  ;;  %v831_v45 = vld [vmem:[#allocation3 + $0x10] sm:$0xff] }
 0x290   : > { %803 = vst.msk [vmem:[#allocation3 + $0x30] sm:$0xff] %vm756_vm8, %v801_v38  ;;  %797 = vst.msk [vmem:[#allocation3 + $0x28] sm:$0xff] %vm756_vm8, %v795_v39  ;;  %v1797_v42 = vpack.c.bf16 %v830_v41, %v829_v40 }
 0x292   : > { %1798 = vmatpush3.bf16.msra.mxu1 %v1797_v42 }
 0x293   : > { %v813_v43 = vpop.permute.xlu0 %812  ;;  %v807_v44 = vpop.permute.xlu1 %806  ;;  %1799 = vmatprep.subr.bf16.mxu1 %v2120_v3  ;;  %v832_v46 = vld [vmem:[#allocation3 + $0x18] sm:$0xff]  ;;  %v833_v50 = vld [vmem:[#allocation3 + $0x20] sm:$0xff] }
 0x294   : > { %815 = vst.msk [vmem:[#allocation3 + $0x40] sm:$0xff] %vm756_vm8, %v813_v43  ;;  %809 = vst.msk [vmem:[#allocation3 + $0x38] sm:$0xff] %vm756_vm8, %v807_v44  ;;  %v1800_v47 = vpack.c.bf16 %v832_v46, %v831_v45  ;;  %v1128_v43 = vld [vmem:[%s2720_s8 + $0x8] sm:$0xff]  ;;  %v1127_v44 = vld [vmem:[%s2720_s8] sm:$0xff] }
 0x295   : > { %v1120_v45 = vld [vmem:[%s2721_s7] sm:$0xff] }
 0x296   : > { %1801 = vmatpush3.bf16.msra.mxu1 %v1800_v47 }
 0x297   : > { %v825_v48 = vpop.permute.xlu0 %824  ;;  %v819_v49 = vpop.permute.xlu1 %818  ;;  %1802 = vmatprep.subr.bf16.mxu1 %v2120_v3  ;;  %v834_v51 = vld [vmem:[#allocation3 + $0x28] sm:$0xff]  ;;  %v835_v53 = vld [vmem:[#allocation3 + $0x30] sm:$0xff] }
 0x298   : > { %827 = vst.msk [vmem:[#allocation3 + $0x50] sm:$0xff] %vm756_vm8, %v825_v48  ;;  %821 = vst.msk [vmem:[#allocation3 + $0x48] sm:$0xff] %vm756_vm8, %v819_v49  ;;  %v1803_v52 = vpack.c.bf16 %v834_v51, %v833_v50 }
 0x29a   : > { %1804 = vmatpush3.bf16.msra.mxu1 %v1803_v52 }
 0x29b   : > { %1805 = vmatprep.subr.bf16.mxu1 %v2120_v3  ;;  %v836_v54 = vld [vmem:[#allocation3 + $0x38] sm:$0xff]  ;;  %v837_v56 = vld [vmem:[#allocation3 + $0x40] sm:$0xff] }
 0x29c   : > { %v1806_v55 = vpack.c.bf16 %v836_v54, %v835_v53 }
 0x29e   : > { %1807 = vmatpush3.bf16.msra.mxu1 %v1806_v55 }
 0x29f   : > { %1808 = vmatprep.subr.bf16.mxu1 %v2120_v3  ;;  %v838_v57 = vld [vmem:[#allocation3 + $0x48] sm:$0xff]  ;;  %v839_v60 = vld [vmem:[#allocation3 + $0x50] sm:$0xff] }
 0x2a0   : > { %v1809_v58 = vpack.c.bf16 %v838_v57, %v837_v56  ;;  %v1121_v56 = vld [vmem:[%s2721_s7 + $0x8] sm:$0xff] }
 0x2a2   : > { %1810 = vmatpush3.bf16.msra.mxu1 %v1809_v58 }
 0x2a3   : > { %1734 = vmatprep.subr.mxu1 %v2126_v4 }
 0x2a6   : > { %1735 = vmatpush3.msra.mxu1 %v839_v60 }
 0x2a7   : > { %1737 = vmatmul.mubr.msk.f32.vlgmr.msra.gmra.mrb[2].mxu1 %vm846_vm10, %v828_v59 }
 0x2a8   : > { %v844_v61 = vpop.permute.xlu1 %843  ;;  %1774 = vmatprep.mubr.msk.f32.mxu1 %vm1139_vm14, %v1120_v45 }
 0x37a   : > { %v916_v62 = vpop.f32.mrb[2].mxu1 }
 0x37b   : > { %v917_v63 = vadd.f32 %v916_v62, %v844_v61  ;;  %v1738_v0 = vpop.f32.mrb[3].mxu1 }
 0x37d   : > { %v921_v1 = vmul.f32 0.2, %v917_v63  ;;  %vm920_vm11 = vcmp.gt.f32.partialorder %v917_v63, 0.0 }
 0x37f   : > { %v922_v2 = vsel %vm920_vm11, %v917_v63, %v921_v1 }
 0x380   : > { %926 = vrot.lane.b32.xlu0 %v922_v2, %s2714_s24  ;;  %923 = vst.msk [vmem:[%s2685_s4] sm:$0xff] %vm756_vm8, %v922_v2  ;;  %s2687_s24 = sand.u32 1, %s2245_s10  }
 0x3f2   : > { %v927_v5 = vpop.permute.xlu0 %926 }
 0x3f3   : > { %929 = vst.msk [vmem:[#allocation2] sm:$0xff] %vm764_vm9, %v927_v5 }
 0x3fa   : > { %v930_v6 = vld [vmem:[#allocation2] sm:$0xff] }
 0x3fb   : > { %931 = vst.msk [vmem:[#allocation3] sm:$0xff] %vm756_vm8, %v930_v6  ;;  %940 = vrot.lane.b32.xlu0 %v930_v6, %s2715_s1  ;;  %934 = vrot.lane.b32.xlu1 %v930_v6, %s2716_s2 }
 0x3fc   : > { %1087 = vst.msk [vmem:[#allocation2] sm:$0xff] %vm758_vm6, %v2126_v4 }
 0x3ff   : > { %952 = vrot.lane.b32.xlu0 %v930_v6, %s2717_s3  ;;  %946 = vrot.lane.b32.xlu1 %v930_v6, %s2705_s22 }
 0x402   : > { %v993_v14 = vld [vmem:[#allocation3] sm:$0xff] }
 0x403   : > { %964 = vrot.lane.b32.xlu0 %v930_v6, %s2706_s26  ;;  %958 = vrot.lane.b32.xlu1 %v930_v6, %s2707_s19 }
 0x407   : > { %976 = vrot.lane.b32.xlu0 %v930_v6, %s2708_s18  ;;  %970 = vrot.lane.b32.xlu1 %v930_v6, %s2709_s0  ;;  %s2133_s18 = smov 1   ;;  %s2470_s0 = sshll.u32 %s2245_s10, 7 }
 0x40b   : > { %988 = vrot.lane.b32.xlu0 %v930_v6, %s2710_s28  ;;  %982 = vrot.lane.b32.xlu1 %v930_v6, %s2711_s27  ;;  %s2132_s28 = smov 2   ;;  %s2686_s27 = scalar_lea.vmem [#allocation9], %s2327_s17 }
 0x40f   : > { %1007 = vperm.xlu1 %1927, %v1004_v7  }
 0x46d   : > { %v941_v8 = vpop.permute.xlu0 %940  ;;  %v935_v9 = vpop.permute.xlu1 %934 }
 0x46e   : > { %943 = vst.msk [vmem:[#allocation3 + $0x10] sm:$0xff] %vm756_vm8, %v941_v8  ;;  %937 = vst.msk [vmem:[#allocation3 + $0x8] sm:$0xff] %vm756_vm8, %v935_v9  ;;  %v1277_v9 = vld [vmem:[#allocation4] sm:$0x1] }
 0x471   : > { %v953_v10 = vpop.permute.xlu0 %952  ;;  %v947_v11 = vpop.permute.xlu1 %946 }
 0x472   : > { %955 = vst.msk [vmem:[#allocation3 + $0x20] sm:$0xff] %vm756_vm8, %v953_v10  ;;  %949 = vst.msk [vmem:[#allocation3 + $0x18] sm:$0xff] %vm756_vm8, %v947_v11 }
 0x475   : > { %v965_v12 = vpop.permute.xlu0 %964  ;;  %v959_v13 = vpop.permute.xlu1 %958  ;;  %v994_v15 = vld [vmem:[#allocation3 + $0x8] sm:$0xff]  ;;  %v995_v19 = vld [vmem:[#allocation3 + $0x10] sm:$0xff] }
 0x476   : > { %967 = vst.msk [vmem:[#allocation3 + $0x30] sm:$0xff] %vm756_vm8, %v965_v12  ;;  %961 = vst.msk [vmem:[#allocation3 + $0x28] sm:$0xff] %vm756_vm8, %v959_v13  ;;  %v1812_v16 = vpack.c.bf16 %v994_v15, %v993_v14 }
 0x478   : > { %1813 = vmatpush3.bf16.msra.mxu0 %v1812_v16 }
 0x479   : > { %v977_v17 = vpop.permute.xlu0 %976  ;;  %v971_v18 = vpop.permute.xlu1 %970  ;;  %1814 = vmatprep.subr.bf16.mxu0 %v2120_v3  ;;  %v996_v20 = vld [vmem:[#allocation3 + $0x18] sm:$0xff]  ;;  %v997_v24 = vld [vmem:[#allocation3 + $0x20] sm:$0xff] }
 0x47a   : > { %979 = vst.msk [vmem:[#allocation3 + $0x40] sm:$0xff] %vm756_vm8, %v977_v17  ;;  %973 = vst.msk [vmem:[#allocation3 + $0x38] sm:$0xff] %vm756_vm8, %v971_v18  ;;  %v1815_v21 = vpack.c.bf16 %v996_v20, %v995_v19 }
 0x47c   : > { %1816 = vmatpush3.bf16.msra.mxu0 %v1815_v21 }
 0x47d   : > { %v989_v22 = vpop.permute.xlu0 %988  ;;  %v983_v23 = vpop.permute.xlu1 %982  ;;  %1817 = vmatprep.subr.bf16.mxu0 %v2120_v3  ;;  %v998_v25 = vld [vmem:[#allocation3 + $0x28] sm:$0xff]  ;;  %v999_v27 = vld [vmem:[#allocation3 + $0x30] sm:$0xff] }
 0x47e   : > { %991 = vst.msk [vmem:[#allocation3 + $0x50] sm:$0xff] %vm756_vm8, %v989_v22  ;;  %985 = vst.msk [vmem:[#allocation3 + $0x48] sm:$0xff] %vm756_vm8, %v983_v23  ;;  %v1818_v26 = vpack.c.bf16 %v998_v25, %v997_v24  ;;  %v1270_v23 = vld [vmem:[%s2722_s9] sm:$0x1] }
 0x480   : > { %1819 = vmatpush3.bf16.msra.mxu0 %v1818_v26 }
 0x481   : > { %1820 = vmatprep.subr.bf16.mxu0 %v2120_v3  ;;  %v1000_v28 = vld [vmem:[#allocation3 + $0x38] sm:$0xff]  ;;  %v1001_v30 = vld [vmem:[#allocation3 + $0x40] sm:$0xff] }
 0x482   : > { %v1821_v29 = vpack.c.bf16 %v1000_v28, %v999_v27 }
 0x484   : > { %1822 = vmatpush3.bf16.msra.mxu0 %v1821_v29 }
 0x485   : > { %1823 = vmatprep.subr.bf16.mxu0 %v2120_v3  ;;  %v1002_v31 = vld [vmem:[#allocation3 + $0x48] sm:$0xff]  ;;  %v1003_v34 = vld [vmem:[#allocation3 + $0x50] sm:$0xff] }
 0x486   : > { %v1824_v32 = vpack.c.bf16 %v1002_v31, %v1001_v30 }
 0x488   : > { %1825 = vmatpush3.bf16.msra.mxu0 %v1824_v32 }
 0x489   : > { %1759 = vmatprep.subr.mxu0 %v2126_v4 }
 0x48c   : > { %1760 = vmatpush3.msra.mxu0 %v1003_v34 }
 0x48d   : > { %1762 = vmatmul.mubr.msk.f32.vlgmr.msra.gmra.mrb[0].mxu0 %vm846_vm10, %v992_v33  ;;  %1834 = vmatprep.subr.bf16.mxu0 %v2120_v3 }
 0x48e   : > { %1789 = vmatprep.mubr.msk.f32.mxu0 %vm2125_vm1, %v2126_v4  ;;  %v1008_v35 = vpop.permute.xlu1 %1007 }
 0x560   : > { %v1079_v36 = vpop.f32.mrb[0].mxu0 }
 0x561   : > { %v1080_v37 = vadd.f32 %v1079_v36, %v1008_v35  ;;  %v1763_v38 = vpop.f32.mrb[1].mxu0 }
 0x563   : > { %v1084_v39 = vmul.f32 0.2, %v1080_v37  ;;  %vm1083_vm12 = vcmp.gt.f32.partialorder %v1080_v37, 0.0 }
 0x565   : > { %v1085_v40 = vsel %vm1083_vm12, %v1080_v37, %v1084_v39 }
 0x566   : > { %1089 = vrot.lane.b32.xlu0 %v1085_v40, %s2132_s28  ;;  %1086 = vst.msk [vmem:[%s2686_s27] sm:$0xff] %vm756_vm8, %v1085_v40  ;;  %s1631_s28 = sshll.u32 %s2324_s16, 4  ;;  %s2134_s27 = smov [#allocation7]  }
 0x567   : > { %s2444_s19 = scalar_lea.vmem [#allocation10], %s1631_s28  ;;  %s2723_s28 = scalar_lea.vmem [#allocation7], %s2327_s17 }
 0x568   : > { %s1434_s26 = sshll.u32 %s2444_s19, 4  ;;  %s1932_s4 = sshll.u32 %s2134_s27, 4  ;;  %s2466_s26 = int_to_ptr.vmem [resolvable:$true] %s1434_s26  ;;  %s1933_s4 = int_to_ptr.vmem [resolvable:$false] %s1932_s4 }
 0x5d8   : > { %v1090_v41 = vpop.permute.xlu0 %1089 }
 0x5d9   : > { %1093 = vst.msk [vmem:[#allocation2] sm:$0xff] %vm1092_vm13, %v1090_v41 }
 0x5e0   : > { %v1094_v42 = vld [vmem:[#allocation2] sm:$0xff] }
 0x5e1   : > { %1095 = vst.msk [vmem:[#allocation3] sm:$0xff] %vm756_vm8, %v1094_v42  ;;  %1104 = vrot.lane.b32.xlu0 %v1094_v42, %s2715_s1  ;;  %1098 = vrot.lane.b32.xlu1 %v1094_v42, %s2716_s2 }
 0x5e2   : > { %1229 = vst.msk [vmem:[#allocation2] sm:$0xff] %vm758_vm6, %v2126_v4 }
 0x5e5   : > { %1116 = vrot.lane.b32.xlu0 %v1094_v42, %s2717_s3  ;;  %1110 = vrot.lane.b32.xlu1 %v1094_v42, %s2705_s22  ;;  %s2476_s22 = scalar_lea.hbm %s2657_s12, %s2470_s0  ;;  %s1934_s3 = scalar_lea.vmem %s1933_s4, 256 }
 0x5e8   : > { %v1122_v49 = vld [vmem:[#allocation3] sm:$0xff] }
 0x5e9   : > { %1136 = vperm.xlu0 %1926, %v1128_v43   ;;  %1131 = vperm.xlu1 %1927, %v1127_v44  }
 0x653   : > { %v1105_v4 = vpop.permute.xlu0 %1104  ;;  %v1099_v46 = vpop.permute.xlu1 %1098 }
 0x654   : > { %1107 = vst.msk [vmem:[#allocation3 + $0x10] sm:$0xff] %vm756_vm8, %v1105_v4  ;;  %1101 = vst.msk [vmem:[#allocation3 + $0x8] sm:$0xff] %vm756_vm8, %v1099_v46 }
 0x657   : > { %v1117_v47 = vpop.permute.xlu0 %1116  ;;  %v1111_v48 = vpop.permute.xlu1 %1110 }
 0x658   : > { %1119 = vst.msk [vmem:[#allocation3 + $0x20] sm:$0xff] %vm756_vm8, %v1117_v47  ;;  %1113 = vst.msk [vmem:[#allocation3 + $0x18] sm:$0xff] %vm756_vm8, %v1111_v48 }
 0x65b   : > { %v1123_v50 = vld [vmem:[#allocation3 + $0x8] sm:$0xff]  ;;  %v1124_v52 = vld [vmem:[#allocation3 + $0x10] sm:$0xff] }
 0x65c   : > { %v1826_v51 = vpack.c.bf16 %v1123_v50, %v1122_v49 }
 0x65e   : > { %1827 = vmatprep.subr.bf16.mxu1 %v1826_v51 }
 0x65f   : > { %1829 = vmatpush3.bf16.msra.mxu1 %v1826_v51  ;;  %v1125_v53 = vld [vmem:[#allocation3 + $0x18] sm:$0xff]  ;;  %v1126_v55 = vld [vmem:[#allocation3 + $0x20] sm:$0xff] }
 0x660   : > { %v1830_v54 = vpack.c.bf16 %v1125_v53, %v1124_v52 }
 0x662   : > { %1831 = vmatprep.subr.bf16.mxu1 %v1830_v54 }
 0x663   : > { %1833 = vmatpush3.bf16.msra.mxu1 %v1830_v54 }
 0x664   : > { %1772 = vmatprep.subr.mxu1 %v1126_v55 }
 0x667   : > { %1773 = vmatpush3.msra.mxu1 %v1126_v55 }
 0x668   : > { %1775 = vmatmul.mubr.msk.f32.vlgmr.msra.gmra.mrb[4].mxu1 %vm1139_vm14, %v1121_v56  ;;  %v1137_v57 = vpop.permute.xlu0 %1136  ;;  %v1132_v59 = vpop.permute.xlu1 %1131 }
 0x73b   : > { %v1776_v58 = vpop.f32.mrb[4].mxu1 }
 0x73c   : > { %v1218_v60 = vadd.f32 %v1776_v58, %v1137_v57  ;;  %v1212_v61 = vpop.f32.mrb[5].mxu1 }
 0x73d   : > { %v1213_v62 = vadd.f32 %v1212_v61, %v1132_v59 }
 0x73e   : > { %v1224_v63 = vmul.f32 0.2, %v1218_v60  ;;  %vm1222_vm15 = vcmp.gt.f32.partialorder %v1218_v60, 0.0 }
 0x73f   : > { %v1223_v0 = vmul.f32 0.2, %v1213_v62  ;;  %vm1221_vm1 = vcmp.gt.f32.partialorder %v1213_v62, 0.0 }
 0x740   : > { %v1226_v1 = vsel %vm1222_vm15, %v1218_v60, %v1224_v63 }
 0x741   : > { %1235 = vrot.lane.b32.xlu0 %v1226_v1, %s2133_s18  ;;  %1228 = vst.msk [vmem:[%s2444_s19 + $0x8] sm:$0xff] %vm756_vm8, %v1226_v1  ;;  %v1225_v2 = vsel %vm1221_vm1, %v1213_v62, %v1223_v0 }
 0x742   : > { %1233 = vrot.lane.b32.xlu1 %v1225_v2, %s2133_s18  ;;  %1227 = vst.msk [vmem:[%s2444_s19] sm:$0xff] %vm756_vm8, %v1225_v2  ;;  %s1408_s18 = sshll.u32 %s2723_s28, 4  ;;  %s2485_s19 = scalar_lea.sflag [#allocation8], %s2687_s24  ;;  %s2480_s18 = int_to_ptr.vmem [resolvable:$true] %s1408_s18 }
 0x743   : > { %p1935_p0 = scmp.lt.s32.totalorder %s2480_s18, %s1933_s4 }
 0x7b3   : > { %v1236_v5 = vpop.permute.xlu0 %1235 }
 0x7b4   : > { %1241 = vst.msk [vmem:[#allocation2 + $0x8] sm:$0xff] %vm1239_vm2, %v1236_v5  ;;  %v1234_v6 = vpop.permute.xlu1 %1233 }
 0x7b5   : > { %1240 = vst.msk [vmem:[#allocation2] sm:$0xff] %vm1239_vm2, %v1234_v6 }
 0x7bb   : > { %v1243_v7 = vld [vmem:[#allocation2 + $0x8] sm:$0xff] }
 0x7bc   : > { %1245 = vst.msk [vmem:[#allocation3 + $0x8] sm:$0xff] %vm756_vm8, %v1243_v7  ;;  %v1242_v8 = vld [vmem:[#allocation2] sm:$0xff]  ;;  %1252 = vrot.lane.b32.xlu0 %v1243_v7, %s2716_s2 }
 0x7bd   : > { %1244 = vst.msk [vmem:[#allocation3] sm:$0xff] %vm756_vm8, %v1242_v8  ;;  %1250 = vrot.lane.b32.xlu1 %v1242_v8, %s2716_s2  ;;  %s1928_s2 = scalar_lea.vmem %s2480_s18, 128 }
 0x7be   : > { %p1929_p11 = scmp.ne.s32.totalorder %s2480_s18, %s1928_s2  ;;  %p1936_p1 = scmp.lt.s32.totalorder %s1934_s3, %s1928_s2 }
 0x7c0   : > { %1264 = vrot.lane.b32.xlu0 %v1243_v7, %s2715_s1  ;;  %p1930_p12 = pnand %p1929_p11, %p2264_p5  ;;  %p1937_p2 = por %p1936_p1, %p1935_p0 }
 0x7c1   : > { %1262 = vrot.lane.b32.xlu1 %v1242_v8, %s2715_s1 }
 0x7c2   : > { %p1931_p13 = pneg %p1930_p12 }
 0x7c3   : > { %v1272_v10 = vld [vmem:[#allocation3 + $0x8] sm:$0xff] }
 0x7c4   : > { %v1271_v11 = vld [vmem:[#allocation3] sm:$0xff]  ;;  %p1938_p3 = pnand %p1937_p2, %p1931_p13 }
 0x7c5   : > { %1280 = vperm.xlu1 %1927, %v1277_v9   ;;  %v1835_v12 = vpack.c.bf16 %v1272_v10, %v1271_v11 }
 0x7c7   : > { %1836 = vmatpush3.bf16.msra.mxu0 %v1835_v12 }
 0x7c8   : > { %1837 = vmatprep.subr.bf16.mxu0 %v2120_v3 }
 0x82e   : > { %v1253_v13 = vpop.permute.xlu0 %1252 }
 0x82f   : > { %1257 = vst.msk [vmem:[#allocation3 + $0x18] sm:$0xff] %vm756_vm8, %v1253_v13  ;;  %v1251_v14 = vpop.permute.xlu1 %1250 }
 0x830   : > { %1256 = vst.msk [vmem:[#allocation3 + $0x10] sm:$0xff] %vm756_vm8, %v1251_v14 }
 0x832   : > { %v1265_v15 = vpop.permute.xlu0 %1264 }
 0x833   : > { %1269 = vst.msk [vmem:[#allocation3 + $0x28] sm:$0xff] %vm756_vm8, %v1265_v15  ;;  %v1263_v16 = vpop.permute.xlu1 %1262 }
 0x834   : > { %1268 = vst.msk [vmem:[#allocation3 + $0x20] sm:$0xff] %vm756_vm8, %v1263_v16 }
 0x836   : > { %v1274_v17 = vld [vmem:[#allocation3 + $0x18] sm:$0xff] }
 0x837   : > { %v1273_v18 = vld [vmem:[#allocation3 + $0x10] sm:$0xff] }
 0x838   : > { %v1838_v19 = vpack.c.bf16 %v1274_v17, %v1273_v18 }
 0x83a   : > { %1839 = vmatpush3.bf16.msra.mxu0 %v1838_v19  ;;  %v1276_v20 = vld [vmem:[#allocation3 + $0x28] sm:$0xff] }
 0x83b   : > { %1840 = vmatprep.subr.bf16.mxu0 %v2120_v3  ;;  %v1275_v21 = vld [vmem:[#allocation3 + $0x20] sm:$0xff] }
 0x83c   : > { %v1841_v22 = vpack.c.bf16 %v1276_v20, %v1275_v21 }
 0x83e   : > { %1842 = vmatpush3.bf16.msra.mxu0 %v1841_v22 }
 0x841   : > { %1790 = vmatmul.mubr.msk.f32.vlgmr.msra.gmra.mrb[2].mxu0 %vm1287_vm3, %v1270_v23 }
 0x842   : > { %1941 = shalt.err (!%p1938_p3)
}
 0x843   : > { %s1942_s28 = scalar_lea.hbm %s2476_s22, 128  ;;  %s1946_s27 = scalar_lea.hbm %s2657_s12, 256 }
 0x844   : > { %p1943_p4 = scmp.ne.s32.totalorder %s2476_s22, %s1942_s28  ;;  %p1947_p9 = scmp.lt.u32.totalorder %s2476_s22, %s2657_s12 }
 0x845   : > { %p1948_p10 = scmp.lt.u32.totalorder %s1946_s27, %s1942_s28  ;;  %p1950_p12 = scmp.lt.u32.totalorder %s1942_s28, %s2476_s22 }
 0x846   : > { %p1944_p7 = pnand %p1943_p4, %p2264_p5 }
 0x847   : > { %p1949_p11 = por %p1948_p10, %p1947_p9 }
 0x848   : > { %p1945_p8 = pneg %p1944_p7 }
 0x849   : > { %p1951_p13 = por %p1950_p12, %p1949_p11 }
 0x84b   : > { %p1952_p0 = pnand %p1951_p13, %p1945_p8 }
 0x84d   : > { %1955 = shalt.err (!%p1952_p0)
}
 0x84e   : > { %1844 = dma.vmem_to_hbm [thread:$0]  (%p2264_p5), %s2480_s18, 128, %s2476_s22, %s2485_s19  }
 0x84f   : > { %s2724_s5 = sshll.u32 %s2245_s10, 8  ;;  %s2725_s3 = sand.u32 1, %s2245_s10  }
 0x850   : > { %s2514_s2 = scalar_lea.hbm %s2659_s14, %s2724_s5  ;;  %s2518_s28 = scalar_lea.sflag [#allocation11], %s2725_s3 }
 0x851   : > { %s1956_s27 = scalar_lea.vmem %s2466_s26, 256  ;;  %s2135_s4 = smov [#allocation10]  }
 0x852   : > { %p1957_p1 = scmp.ne.s32.totalorder %s2466_s26, %s1956_s27  ;;  %s1960_s6 = sshll.u32 %s2135_s4, 4  ;;  %s1961_s6 = int_to_ptr.vmem [resolvable:$false] %s1960_s6 }
 0x853   : > { %s1962_s7 = scalar_lea.vmem %s1961_s6, 512  ;;  %p1963_p4 = scmp.lt.s32.totalorder %s2466_s26, %s1961_s6 }
 0x854   : > { %p1958_p2 = pnand %p1957_p1, %p2264_p5  ;;  %p1964_p7 = scmp.lt.s32.totalorder %s1962_s7, %s1956_s27 }
 0x856   : > { %p1959_p3 = pneg %p1958_p2  ;;  %p1965_p8 = por %p1964_p7, %p1963_p4 }
 0x858   : > { %p1966_p9 = pnand %p1965_p8, %p1959_p3 }
 0x85a   : > { %1969 = shalt.err (!%p1966_p9)
}
 0x85b   : > { %s1970_s22 = scalar_lea.hbm %s2514_s2, 256  ;;  %s1974_s24 = scalar_lea.hbm %s2659_s14, 512 }
 0x85c   : > { %p1971_p10 = scmp.ne.s32.totalorder %s2514_s2, %s1970_s22  ;;  %p1975_p13 = scmp.lt.u32.totalorder %s2514_s2, %s2659_s14 }
 0x85d   : > { %p1976_p0 = scmp.lt.u32.totalorder %s1974_s24, %s1970_s22  ;;  %p1978_p2 = scmp.lt.u32.totalorder %s1970_s22, %s2514_s2 }
 0x85e   : > { %p1972_p11 = pnand %p1971_p10, %p2264_p5 }
 0x85f   : > { %p1977_p1 = por %p1976_p0, %p1975_p13 }
 0x860   : > { %p1973_p12 = pneg %p1972_p11 }
 0x861   : > { %p1979_p3 = por %p1978_p2, %p1977_p1 }
 0x863   : > { %p1980_p4 = pnand %p1979_p3, %p1973_p12 }
 0x865   : > { %1983 = shalt.err (!%p1980_p4)
}
 0x866   : > { %s2136_s7 = smov 128   ;;  %s2137_s3 = smov 8  }
 0x867   : > { %1846 = dma.vmem_to_hbm [thread:$0]  (%p2264_p5), %s2466_s26, 256, %s2514_s2, %s2518_s28, %s2136_s7, %s2136_s7, %s2137_s3  }
 0x868   : > { %s2546_s22 = scalar_lea.hbm %s2656_s11, %s2470_s0  ;;  %s2726_s18 = scalar_lea.vmem [#allocation5], %s2327_s17 }
 0x869   : > { %s1395_s5 = sshll.u32 %s2726_s18, 4  ;;  %s2556_s6 = scalar_lea.hbm %s2658_s13, %s2470_s0  ;;  %s2550_s5 = int_to_ptr.vmem [resolvable:$true] %s1395_s5 }
 0x86a   : > { %s1363_s8 = scalar_lea.sflag [#allocation6], %s2324_s16  ;;  %s1984_s9 = scalar_lea.vmem %s2550_s5, 128 }
 0x86b   : > { %p1985_p7 = scmp.ne.s32.totalorder %s2550_s5, %s1984_s9  ;;  %s2138_s26 = smov [#allocation5]  }
 0x86c   : > { %s1988_s2 = sshll.u32 %s2138_s26, 4  ;;  %s1989_s2 = int_to_ptr.vmem [resolvable:$false] %s1988_s2 }
 0x86d   : > { %p1986_p8 = pnand %p1985_p7, %p2264_p5  ;;  %s1990_s7 = scalar_lea.vmem %s1989_s2, 256 }
 0x86e   : > { %p1991_p10 = scmp.lt.s32.totalorder %s2550_s5, %s1989_s2  ;;  %p1992_p11 = scmp.lt.s32.totalorder %s1990_s7, %s1984_s9 }
 0x86f   : > { %p1987_p9 = pneg %p1986_p8 }
 0x870   : > { %p1993_p12 = por %p1992_p11, %p1991_p10 }
 0x872   : > { %p1994_p13 = pnand %p1993_p12, %p1987_p9 }
 0x874   : > { %1997 = shalt.err (!%p1994_p13)
}
 0x875   : > { %s1998_s0 = scalar_lea.hbm %s2546_s22, 128  ;;  %s2002_s4 = scalar_lea.hbm %s2656_s11, 256 }
 0x876   : > { %p1999_p0 = scmp.ne.s32.totalorder %s2546_s22, %s1998_s0  ;;  %p2003_p3 = scmp.lt.u32.totalorder %s2546_s22, %s2656_s11 }
 0x877   : > { %p2004_p4 = scmp.lt.u32.totalorder %s2002_s4, %s1998_s0  ;;  %p2006_p8 = scmp.lt.u32.totalorder %s1998_s0, %s2546_s22 }
 0x878   : > { %p2000_p1 = pnand %p1999_p0, %p2264_p5 }
 0x879   : > { %p2005_p7 = por %p2004_p4, %p2003_p3 }
 0x87a   : > { %p2001_p2 = pneg %p2000_p1 }
 0x87b   : > { %p2007_p9 = por %p2006_p8, %p2005_p7 }
 0x87d   : > { %p2008_p10 = pnand %p2007_p9, %p2001_p2 }
 0x87f   : > { %2011 = shalt.err (!%p2008_p10)
}
 0x880   : > { %1843 = dma.vmem_to_hbm [thread:$0]  (%p2264_p5), %s2550_s5, 128, %s2546_s22, %s1363_s8  }
 0x881   : > { %s2727_s9 = scalar_lea.vmem [#allocation9], %s2327_s17  ;;  %s2139_s2 = smov [#allocation9]  }
 0x882   : > { %s1421_s1 = sshll.u32 %s2727_s9, 4  ;;  %s2016_s7 = sshll.u32 %s2139_s2, 4  ;;  %s1422_s1 = int_to_ptr.vmem [resolvable:$true] %s1421_s1  ;;  %s2017_s7 = int_to_ptr.vmem [resolvable:$false] %s2016_s7 }
 0x883   : > { %s2012_s26 = scalar_lea.vmem %s1422_s1, 128  ;;  %s2018_s0 = scalar_lea.vmem %s2017_s7, 256 }
 0x884   : > { %p2013_p11 = scmp.ne.s32.totalorder %s1422_s1, %s2012_s26  ;;  %p2019_p0 = scmp.lt.s32.totalorder %s1422_s1, %s2017_s7 }
 0x885   : > { %p2020_p1 = scmp.lt.s32.totalorder %s2018_s0, %s2012_s26 }
 0x886   : > { %p2014_p12 = pnand %p2013_p11, %p2264_p5 }
 0x887   : > { %p2021_p2 = por %p2020_p1, %p2019_p0 }
 0x888   : > { %p2015_p13 = pneg %p2014_p12 }
 0x88a   : > { %p2022_p3 = pnand %p2021_p2, %p2015_p13 }
 0x88c   : > { %2025 = shalt.err (!%p2022_p3)
}
 0x88d   : > { %s2026_s8 = scalar_lea.hbm %s2556_s6, 128  ;;  %s2030_s5 = scalar_lea.hbm %s2658_s13, 256 }
 0x88e   : > { %p2027_p4 = scmp.ne.s32.totalorder %s2556_s6, %s2026_s8  ;;  %p2031_p9 = scmp.lt.u32.totalorder %s2556_s6, %s2658_s13 }
 0x88f   : > { %p2032_p10 = scmp.lt.u32.totalorder %s2030_s5, %s2026_s8  ;;  %p2034_p12 = scmp.lt.u32.totalorder %s2026_s8, %s2556_s6 }
 0x890   : > { %p2028_p7 = pnand %p2027_p4, %p2264_p5 }
 0x891   : > { %p2033_p11 = por %p2032_p10, %p2031_p9 }
 0x892   : > { %p2029_p8 = pneg %p2028_p7 }
 0x893   : > { %p2035_p13 = por %p2034_p12, %p2033_p11 }
 0x895   : > { %p2036_p0 = pnand %p2035_p13, %p2029_p8 }
 0x897   : > { %2039 = shalt.err (!%p2036_p0)
}
 0x898   : > { %1845 = dma.vmem_to_hbm [thread:$0]  (%p2264_p5), %s1422_s1, 128, %s2556_s6, %s2485_s19   ;;  %v1283_v3 = vlaneseq  ;;  %v1281_v26 = vpop.permute.xlu1 %1280 }
 0x899   : > { %s1662_s4 = sshll.u32 %s2245_s10, 4  ;;  %s519_s18 = scalar_lea.vmem [#allocation12], %s2324_s16 }
 0x89a   : > { %v1284_v24 = vshrl.u32 %v1283_v3, 7  ;;  %s1450_s24 = sshll.u32 %s519_s18, 4  ;;  %s2605_s2 = scalar_lea.hbm %s2660_s15, %s1662_s4  ;;  %s1451_s24 = int_to_ptr.vmem [resolvable:$true] %s1450_s24 }
 0x89b   : > { %s2040_s19 = scalar_lea.vmem %s1451_s24, 16  ;;  %s2140_s10 = smov [#allocation12]  }
 0x89c   : > { %v1285_v25 = vsub.s32 0, %v1284_v24  ;;  %p2041_p1 = scmp.ne.s32.totalorder %s1451_s24, %s2040_s19  ;;  %s2044_s16 = sshll.u32 %s2140_s10, 4  ;;  %s2045_s16 = int_to_ptr.vmem [resolvable:$false] %s2044_s16 }
 0x89d   : > { %s2046_s6 = scalar_lea.vmem %s2045_s16, 32  ;;  %p2047_p4 = scmp.lt.s32.totalorder %s1451_s24, %s2045_s16 }
 0x89e   : > { %v1286_v27 = vrot.slane %v1281_v26, %v1285_v25  ;;  %p2042_p2 = pnand %p2041_p1, %p2264_p5  ;;  %p2048_p7 = scmp.lt.s32.totalorder %s2046_s6, %s2040_s19 }
 0x8a0   : > { %p2043_p3 = pneg %p2042_p2  ;;  %p2049_p8 = por %p2048_p7, %p2047_p4 }
 0x8a2   : > { %p2050_p9 = pnand %p2049_p8, %p2043_p3 }
 0x914   : > { %v1357_v28 = vpop.f32.mrb[2].mxu0 }
 0x915   : > { %v1358_v29 = vadd.f32 %v1357_v28, %v1286_v27  ;;  %v1791_v30 = vpop.f32.mrb[3].mxu0 }
 0x917   : > { %1361 = vst.msk [vmem:[%s519_s18] sm:$0x1] %vm524_vm0, %v1358_v29 }
 0x918   : > { %2053 = shalt.err (!%p2050_p9)
}
 0x919   : > { %s2054_s1 = scalar_lea.hbm %s2605_s2, 16  ;;  %s2058_s8 = scalar_lea.hbm %s2660_s15, 32 }
 0x91a   : > { %p2055_p10 = scmp.ne.s32.totalorder %s2605_s2, %s2054_s1  ;;  %p2059_p13 = scmp.lt.u32.totalorder %s2605_s2, %s2660_s15 }
 0x91b   : > { %p2060_p0 = scmp.lt.u32.totalorder %s2058_s8, %s2054_s1  ;;  %p2062_p2 = scmp.lt.u32.totalorder %s2054_s1, %s2605_s2 }
 0x91c   : > { %p2056_p11 = pnand %p2055_p10, %p2264_p5 }
 0x91d   : > { %p2061_p1 = por %p2060_p0, %p2059_p13 }
 0x91e   : > { %p2057_p12 = pneg %p2056_p11 }
 0x91f   : > { %p2063_p3 = por %p2062_p2, %p2061_p1 }
 0x921   : > { %p2064_p4 = pnand %p2063_p3, %p2057_p12 }
 0x923   : > { %2067 = shalt.err (!%p2064_p4)
}
 0x924   : > { %1847 = dma.vmem_to_hbm [thread:$0]  (%p2264_p5), %s1451_s24, 16, %s2605_s2, %s2518_s28  }
 0x925 PF: > { %p1869_p7 = scmp.ge.s32.totalorder %s2110_s23, 2  ;;  %s1462_s5 = sand.u32 1, %s2098_s20  }
 0x926   : > { %s1463_s3 = scalar_lea.sflag [#allocation6], %s1462_s5 }
 0x927   : > { %p1854_p8 = pnand %p1869_p7, %p2268_p6 }
 0x929   : > { %2085 = dma.done.wait (!%p1854_p8), %s1463_s3, 128  }
 0x92a   : > { %2087 = vsyncadd (!%p1854_p8), %s1463_s3, 4294967168  ;;  %s2728_s27 = sadd.s32 4294967294, %s2110_s23  }
 0x92b   : > { %s1471_s4 = sand.u32 1, %s2728_s27  }
 0x92c   : > { %s1472_s18 = scalar_lea.sflag [#allocation8], %s1471_s4 }
 0x92d   : > { %2089 = dma.done.wait (!%p1854_p8), %s1472_s18, 256  }
 0x92e   : > { %2091 = vsyncadd (!%p1854_p8), %s1472_s18, 4294967040  ;;  %s1490_s29 = scalar_lea.sflag [#allocation11], %s1471_s4 }
 0x92f   : > { %2093 = dma.done.wait (!%p1854_p8), %s1490_s29, 272  }
 0x930   : > { %2095 = vsyncadd (!%p1854_p8), %s1490_s29, 4294967024  ;;  %s2729_s28 = sld [smem:[#allocation16_spill]]  ;;  %s2730_s22 = sld [smem:[#allocation17_spill]] }
 0x931   : > { %p34_p5 = scmp.ge.s32.totalorder %s2249_s25, 4   ;;  %s2731_s20 = smov %s2102_s21 }
 0x932   : > { %s2733_s23 = smov %s2249_s25 }
 0x933   :  { %36 = sbr.rel (!%p34_p5) target bundleno = 18 (0x12), region = 163 }
 0x936   : > { %s2732_s21 = smov %s2729_s28 }
 0x93a   :  { %1503 = vsyncpa [#allocation6], 1 }
 0x93b   :  { %1505 = vsyncpa [#allocation6 + $0x1], 1 }
 0x93c   :  { %1506 = vsyncpa [#allocation8], 1 }
 0x93d   :  { %1508 = vsyncpa [#allocation8 + $0x1], 1 }
 0x93e   :  { %1509 = vsyncpa [#allocation11], 1 }
 0x93f   :  { %1511 = vsyncpa [#allocation11 + $0x1], 1 }

</bundles_post_ra>
